<compile_context>
chip_gen: v7x
topology: tpu7x:2x2x1
jax: 0.10.0
libtpu: 0.0.40
codegen_flags: <defaults>
</compile_context>

<pallas_src>
import math
import functools

import jax
import jax.numpy as jnp
from jax import lax
from jax.experimental import pallas as pl
from jax.experimental.pallas import tpu as pltpu


# ----------------------------- kernel helpers ------------------------------

def _layer_norm(v, w, b, eps=1e-5):
    mu = jnp.mean(v, axis=-1, keepdims=True)
    var = jnp.mean((v - mu) ** 2, axis=-1, keepdims=True)
    return (v - mu) * lax.rsqrt(var + eps) * w + b


# ------------------------- residual attention block ------------------------

def block_kernel(n_head, head_dim, causal, valid_len,
                 x_ref, ln1_w, ln1_b,
                 w_qkv, b_qkv, wo, bo,
                 ln2_w, ln2_b,
                 wfc, bfc, wpr, bpr,
                 o_ref, head_slab):
    Bt, L, D = x_ref.shape
    x = x_ref[...].reshape(Bt * L, D)                       # (Bt*L, D) f32

    # ---------------- attention branch: x + attn(ln_1(x)) -----------------
    h = _layer_norm(x, ln1_w[...], ln1_b[...])
    # Fused QKV projection: one (Bt*L, D) x (D, 3D) bf16 matmul, f32 accum,
    # then a single cast to bf16 (q/k/v are consumed in bf16 anyway).
    qkv = (jnp.dot(h.astype(jnp.bfloat16), w_qkv[...],
                   preferred_element_type=jnp.float32)
           + b_qkv[...]).astype(jnp.bfloat16)               # (Bt*L, 3D) bf16
    q = qkv[:, :D].reshape(Bt, L, D)                        # 1/sqrt(hd) folded in
    k = qkv[:, D:2 * D].reshape(Bt, L, D)
    v = qkv[:, 2 * D:].reshape(Bt, L, D)

    need_mask = causal or (valid_len != L)
    if need_mask:
        row = lax.broadcasted_iota(jnp.int32, (L, L), 0)
        col = lax.broadcasted_iota(jnp.int32, (L, L), 1)
        bad = col >= valid_len                              # padded key columns
        if causal:
            bad = jnp.logical_or(bad, col > row)
        # Keep mask at (1, L, L); the VPU add broadcasts over the batch dim.
        neg = jnp.where(bad, jnp.float32(-1e30), jnp.float32(0.0)).reshape(1, L, L)

    for hh in range(n_head):
        sl = slice(hh * head_dim, (hh + 1) * head_dim)
        s = jnp.einsum('bqd,bkd->bqk', q[:, :, sl], k[:, :, sl],
                       preferred_element_type=jnp.float32)
        if need_mask:
            s = s + neg
        s = s - jnp.max(s, axis=-1, keepdims=True)          # f32 softmax
        e = jnp.exp(s)
        p = e * pl.reciprocal(jnp.sum(e, axis=-1, keepdims=True), approx=True)
        # Write this head straight into the VMEM slab (no concatenate copy).
        head_slab[:, :, sl] = jnp.einsum(
            'bqk,bkd->bqd', p.astype(jnp.bfloat16), v[:, :, sl],
            preferred_element_type=jnp.float32).astype(jnp.bfloat16)

    cat = head_slab[...].reshape(Bt * L, D)                 # bf16
    attn = jnp.dot(cat, wo[...], preferred_element_type=jnp.float32) + bo[...]
    x = x + attn

    # ---------------- MLP branch: x + c_proj(QuickGELU(c_fc(ln_2(x)))) ----
    h2 = _layer_norm(x, ln2_w[...], ln2_b[...])
    f = jnp.dot(h2.astype(jnp.bfloat16), wfc[...],
                preferred_element_type=jnp.float32) + bfc[...]
    f = (f * jax.nn.sigmoid(1.702 * f)).astype(jnp.bfloat16)   # QuickGELU -> bf16
    m = jnp.dot(f, wpr[...], preferred_element_type=jnp.float32) + bpr[...]

    o_ref[...] = (x + m).reshape(Bt, L, D)


def residual_attention_block(x, p, n_head, *, causal=True, block_batch=None,
                             pad_seq_to_multiple=None,
                             vmem_limit_bytes=48 * 1024 * 1024,
                             single_buffer_weights=True):
    """Run one ResidualAttentionBlock on x of shape (B, L, D), f32.

    On v5e/v6e (128 MiB VMEM) consider vmem_limit_bytes ~96 MiB and a larger
    block_batch; on v7x keep the 48 MiB default and single-buffered weights.
    """
    B, L, D = x.shape
    F = 4 * D
    head_dim = D // n_head

    # Optional lane-dense sequence padding (e.g. CLIP L=77 -> 128); padded key
    # columns are masked additively inside the kernel, padded rows sliced off.
    Lp = L
    if pad_seq_to_multiple is not None:
        m = pad_seq_to_multiple
        Lp = ((L + m - 1) // m) * m
    if Lp != L:
        x = jnp.pad(x, ((0, 0), (0, Lp - L), (0, 0)))

    # >=2 grid steps whenever B allows it so megacore sharding has work.
    if block_batch is not None:
        bt = block_batch
    else:
        bt = max(1, min(B // 2, 8))
        while B % bt:                      # largest divisor of B <= target
            bt -= 1
    assert B % bt == 0, "batch must be divisible by block_batch"

    kernel = functools.partial(block_kernel, n_head, head_dim, causal, L)

    def run(weights_single_buffered):
        w_kwargs = ({'pipeline_mode': pl.Buffered(1)}
                    if weights_single_buffered else {})

        def w_spec(shape):
            nd = len(shape)
            # Grid-invariant: full-array block, block index 0 everywhere.
            return pl.BlockSpec(shape, lambda b, _nd=nd: (0,) * _nd, **w_kwargs)

        in_specs = [
            pl.BlockSpec((bt, Lp, D), lambda b: (b, 0, 0)),     # x
            w_spec((1, D)), w_spec((1, D)),                     # ln1 w, b (f32)
            w_spec((D, 3 * D)), w_spec((1, 3 * D)),             # fused QKV (bf16), bias
            w_spec((D, D)), w_spec((1, D)),                     # out proj (bf16), bias
            w_spec((1, D)), w_spec((1, D)),                     # ln2 w, b (f32)
            w_spec((D, F)), w_spec((1, F)),                     # c_fc (bf16), bias
            w_spec((F, D)), w_spec((1, D)),                     # c_proj (bf16), bias
        ]
        out_specs = pl.BlockSpec((bt, Lp, D), lambda b: (b, 0, 0))

        return pl.pallas_call(
            kernel,
            grid=(B // bt,),
            in_specs=in_specs,
            out_specs=out_specs,
            out_shape=jax.ShapeDtypeStruct((B, Lp, D), jnp.float32),
            scratch_shapes=[pltpu.VMEM((bt, Lp, D), jnp.bfloat16)],  # head slab
            compiler_params=pltpu.CompilerParams(
                dimension_semantics=("parallel",),
                vmem_limit_bytes=vmem_limit_bytes),
        )(x, p['ln1_w'], p['ln1_b'],
          p['w_qkv'], p['b_qkv'], p['wo'], p['bo'],
          p['ln2_w'], p['ln2_b'],
          p['wfc'], p['bfc'], p['wpr'], p['bpr'])

    if single_buffer_weights:
        try:
            out = run(True)
        except Exception:
            # Older jax versions may reject Buffered(1); default buffering.
            out = run(False)
    else:
        out = run(False)

    return out[:, :L, :] if Lp != L else out


# ------------------------------- parameters --------------------------------

def init_params(key, D, n_layers=1):
    """PyTorch-convention parameters (y = W x + b), all f32."""
    attn_std = D ** -0.5
    proj_std = attn_std * (2 * n_layers) ** -0.5
    fc_std = (2 * D) ** -0.5
    ks = jax.random.split(key, 8)
    return dict(
        ln1_w=jnp.ones((D,), jnp.float32), ln1_b=jnp.zeros((D,), jnp.float32),
        in_proj_w=attn_std * jax.random.normal(ks[0], (3 * D, D), jnp.float32),
        in_proj_b=0.02 * jax.random.normal(ks[1], (3 * D,), jnp.float32),
        out_w=proj_std * jax.random.normal(ks[2], (D, D), jnp.float32),
        out_b=0.02 * jax.random.normal(ks[3], (D,), jnp.float32),
        ln2_w=jnp.ones((D,), jnp.float32), ln2_b=jnp.zeros((D,), jnp.float32),
        fc_w=fc_std * jax.random.normal(ks[4], (4 * D, D), jnp.float32),
        fc_b=0.02 * jax.random.normal(ks[5], (4 * D,), jnp.float32),
        pr_w=proj_std * jax.random.normal(ks[6], (D, 4 * D), jnp.float32),
        pr_b=0.02 * jax.random.normal(ks[7], (D,), jnp.float32),
    )


def prepare_kernel_params(tp, n_head):
    """Pre-transpose, fuse QKV, fold 1/sqrt(hd) into q, cast matrices to bf16."""
    D = tp['ln1_w'].shape[0]
    hd = D // n_head
    scale = 1.0 / math.sqrt(hd)
    wq, wk, wv = jnp.split(tp['in_proj_w'], 3, axis=0)      # each (D, D), torch conv.
    bq, bk, bv = jnp.split(tp['in_proj_b'], 3)
    w_qkv = jnp.concatenate([wq.T * scale, wk.T, wv.T], axis=1)     # (D, 3D)
    b_qkv = jnp.concatenate([bq * scale, bk, bv]).reshape(1, 3 * D)
    return dict(
        ln1_w=tp['ln1_w'].reshape(1, D), ln1_b=tp['ln1_b'].reshape(1, D),
        w_qkv=w_qkv.astype(jnp.bfloat16), b_qkv=b_qkv,
        wo=tp['out_w'].T.astype(jnp.bfloat16), bo=tp['out_b'].reshape(1, D),
        ln2_w=tp['ln2_w'].reshape(1, D), ln2_b=tp['ln2_b'].reshape(1, D),
        wfc=tp['fc_w'].T.astype(jnp.bfloat16), bfc=tp['fc_b'].reshape(1, 4 * D),
        wpr=tp['pr_w'].T.astype(jnp.bfloat16), bpr=tp['pr_b'].reshape(1, D),
    )


# ------------------------- pure-JAX f32 reference ---------------------------

def reference_block(x, tp, n_head, causal=True):
    B, L, D = x.shape
    hd = D // n_head

    def ln(v, w, b, eps=1e-5):
        mu = jnp.mean(v, -1, keepdims=True)
        var = jnp.mean((v - mu) ** 2, -1, keepdims=True)
        return (v - mu) * lax.rsqrt(var + eps) * w + b

    h = ln(x, tp['ln1_w'], tp['ln1_b'])
    qkv = h @ tp['in_proj_w'].T + tp['in_proj_b']
    q, k, v = jnp.split(qkv, 3, axis=-1)
    q = q.reshape(B, L, n_head, hd).transpose(0, 2, 1, 3)
    k = k.reshape(B, L, n_head, hd).transpose(0, 2, 1, 3)
    v = v.reshape(B, L, n_head, hd).transpose(0, 2, 1, 3)
    s = jnp.einsum('bhqd,bhkd->bhqk', q, k) / math.sqrt(hd)
    if causal:
        s = s + jnp.triu(jnp.full((L, L), -1e30, jnp.float32), k=1)
    p = jax.nn.softmax(s, axis=-1)
    o = jnp.einsum('bhqk,bhkd->bhqd', p, v).transpose(0, 2, 1, 3).reshape(B, L, D)
    x = x + (o @ tp['out_w'].T + tp['out_b'])
    h2 = ln(x, tp['ln2_w'], tp['ln2_b'])
    f = h2 @ tp['fc_w'].T + tp['fc_b']
    f = f * jax.nn.sigmoid(1.702 * f)
    return x + (f @ tp['pr_w'].T + tp['pr_b'])


# ----------------------------------- main -----------------------------------

if __name__ == "__main__":
    B, L, D, H = 4, 16, 128, 4          # small, lane-dense (D multiple of 128)
    key = jax.random.PRNGKey(0)
    k_params, k_x = jax.random.split(key)

    torch_params = init_params(k_params, D)
    kparams = prepare_kernel_params(torch_params, H)
    x = jax.random.normal(k_x, (B, L, D), jnp.float32)

    ref = reference_block(x, torch_params, H, causal=True)

    # 1) plain run (default bt=2 -> grid=(2,), both v7x cores busy).
    out = jax.block_until_ready(
        residual_attention_block(x, kparams, H, causal=True))
    assert out.shape == (B, L, D) and out.dtype == jnp.float32
    err = float(jnp.max(jnp.abs(out - ref)))
    assert err < 0.2, f"max abs error (plain) vs f32 reference too large: {err}"

    # 2) lane-dense padded run (production path for sequences like CLIP L=77).
    out_p = jax.block_until_ready(
        residual_attention_block(x, kparams, H, causal=True,
                                 pad_seq_to_multiple=128))
    assert out_p.shape == (B, L, D)
    err_p = float(jnp.max(jnp.abs(out_p - ref)))
    assert err_p < 0.2, f"max abs error (padded) vs f32 reference too large: {err_p}"

    print("KERNEL_OK")
</pallas_src>

<mosaic_0001>
module attributes {stable_mosaic.version = 11 : i64} {
  func.func @block_kernel(%arg0: i32, %arg1: memref<2x16x128xf32, #tpu.memory_space<vmem>>, %arg2: memref<1x128xf32, #tpu.memory_space<vmem>>, %arg3: memref<1x128xf32, #tpu.memory_space<vmem>>, %arg4: memref<128x384xbf16, #tpu.memory_space<vmem>>, %arg5: memref<1x384xf32, #tpu.memory_space<vmem>>, %arg6: memref<128x128xbf16, #tpu.memory_space<vmem>>, %arg7: memref<1x128xf32, #tpu.memory_space<vmem>>, %arg8: memref<1x128xf32, #tpu.memory_space<vmem>>, %arg9: memref<1x128xf32, #tpu.memory_space<vmem>>, %arg10: memref<128x512xbf16, #tpu.memory_space<vmem>>, %arg11: memref<1x512xf32, #tpu.memory_space<vmem>>, %arg12: memref<512x128xbf16, #tpu.memory_space<vmem>>, %arg13: memref<1x128xf32, #tpu.memory_space<vmem>>, %arg14: memref<2x16x128xf32, #tpu.memory_space<vmem>>, %arg15: memref<2x16x128xbf16, #tpu.memory_space<vmem>>) attributes {dimension_semantics = [#tpu.dimension_semantics<parallel>], iteration_bounds = array<i64: 2>, scalar_prefetch = 0 : i64, scratch_operands = 1 : i64, tpu.core_type = #tpu.core_type<tc>, window_params = [{transform_indices = @transform_0, window_bounds = array<i64: 2, 16, 128>}, {pipeline_mode = #tpu.pipeline_mode<synchronous>, transform_indices = @transform_1, window_bounds = array<i64: 1, 128>}, {pipeline_mode = #tpu.pipeline_mode<synchronous>, transform_indices = @transform_2, window_bounds = array<i64: 1, 128>}, {pipeline_mode = #tpu.pipeline_mode<synchronous>, transform_indices = @transform_3, window_bounds = array<i64: 128, 384>}, {pipeline_mode = #tpu.pipeline_mode<synchronous>, transform_indices = @transform_4, window_bounds = array<i64: 1, 384>}, {pipeline_mode = #tpu.pipeline_mode<synchronous>, transform_indices = @transform_5, window_bounds = array<i64: 128, 128>}, {pipeline_mode = #tpu.pipeline_mode<synchronous>, transform_indices = @transform_6, window_bounds = array<i64: 1, 128>}, {pipeline_mode = #tpu.pipeline_mode<synchronous>, transform_indices = @transform_7, window_bounds = array<i64: 1, 128>}, {pipeline_mode = #tpu.pipeline_mode<synchronous>, transform_indices = @transform_8, window_bounds = array<i64: 1, 128>}, {pipeline_mode = #tpu.pipeline_mode<synchronous>, transform_indices = @transform_9, window_bounds = array<i64: 128, 512>}, {pipeline_mode = #tpu.pipeline_mode<synchronous>, transform_indices = @transform_10, window_bounds = array<i64: 1, 512>}, {pipeline_mode = #tpu.pipeline_mode<synchronous>, transform_indices = @transform_11, window_bounds = array<i64: 512, 128>}, {pipeline_mode = #tpu.pipeline_mode<synchronous>, transform_indices = @transform_12, window_bounds = array<i64: 1, 128>}, {transform_indices = @transform_13, window_bounds = array<i64: 2, 16, 128>}]} {
    %c0 = arith.constant 0 : index
    %c0_0 = arith.constant 0 : index
    %c0_1 = arith.constant 0 : index
    %0 = vector.load %arg1[%c0, %c0_0, %c0_1] : memref<2x16x128xf32, #tpu.memory_space<vmem>>, vector<2x16x128xf32>
    %1 = vector.shape_cast %0 : vector<2x16x128xf32> to vector<32x128xf32>
    %c0_2 = arith.constant 0 : index
    %c0_3 = arith.constant 0 : index
    %2 = vector.load %arg2[%c0_2, %c0_3] : memref<1x128xf32, #tpu.memory_space<vmem>>, vector<1x128xf32>
    %c0_4 = arith.constant 0 : index
    %c0_5 = arith.constant 0 : index
    %3 = vector.load %arg3[%c0_4, %c0_5] : memref<1x128xf32, #tpu.memory_space<vmem>>, vector<1x128xf32>
    %cst = arith.constant dense<0.000000e+00> : vector<32xf32>
    %4 = vector.multi_reduction <add>, %1, %cst [1] : vector<32x128xf32> to vector<32xf32>
    %5 = vector.shape_cast %4 : vector<32xf32> to vector<32x1xf32>
    %cst_6 = arith.constant 1.280000e+02 : f32
    %6 = vector.broadcast %cst_6 : f32 to vector<32x1xf32>
    %7 = arith.divf %5, %6 : vector<32x1xf32>
    %8 = vector.broadcast %7 : vector<32x1xf32> to vector<32x128xf32>
    %9 = arith.subf %1, %8 : vector<32x128xf32>
    %10 = arith.mulf %9, %9 : vector<32x128xf32>
    %cst_7 = arith.constant dense<0.000000e+00> : vector<32xf32>
    %11 = vector.multi_reduction <add>, %10, %cst_7 [1] : vector<32x128xf32> to vector<32xf32>
    %12 = vector.shape_cast %11 : vector<32xf32> to vector<32x1xf32>
    %cst_8 = arith.constant 1.280000e+02 : f32
    %13 = vector.broadcast %cst_8 : f32 to vector<32x1xf32>
    %14 = arith.divf %12, %13 : vector<32x1xf32>
    %15 = vector.broadcast %7 : vector<32x1xf32> to vector<32x128xf32>
    %16 = arith.subf %1, %15 : vector<32x128xf32>
    %cst_9 = arith.constant 9.99999974E-6 : f32
    %17 = vector.broadcast %cst_9 : f32 to vector<32x1xf32>
    %18 = arith.addf %14, %17 : vector<32x1xf32>
    %19 = math.rsqrt %18 : vector<32x1xf32>
    %20 = vector.broadcast %19 : vector<32x1xf32> to vector<32x128xf32>
    %21 = arith.mulf %16, %20 : vector<32x128xf32>
    %22 = vector.broadcast %2 : vector<1x128xf32> to vector<32x128xf32>
    %23 = arith.mulf %21, %22 : vector<32x128xf32>
    %24 = vector.broadcast %3 : vector<1x128xf32> to vector<32x128xf32>
    %25 = arith.addf %23, %24 : vector<32x128xf32>
    %26 = arith.truncf %25 : vector<32x128xf32> to vector<32x128xbf16>
    %c0_10 = arith.constant 0 : index
    %c0_11 = arith.constant 0 : index
    %27 = vector.load %arg4[%c0_10, %c0_11] : memref<128x384xbf16, #tpu.memory_space<vmem>>, vector<128x384xbf16>
    %cst_12 = arith.constant dense<0.000000e+00> : vector<32x384xf32>
    %28 = tpu.matmul %26, %27, %cst_12 {dimension_numbers = #tpu.dot_dimension_numbers<[1], [0], [0], [1], [0, 0, 1, 1], [], []>} : vector<32x128xbf16>, vector<128x384xbf16>, vector<32x384xf32> -> vector<32x384xf32>
    %c0_13 = arith.constant 0 : index
    %c0_14 = arith.constant 0 : index
    %29 = vector.load %arg5[%c0_13, %c0_14] : memref<1x384xf32, #tpu.memory_space<vmem>>, vector<1x384xf32>
    %30 = vector.broadcast %29 : vector<1x384xf32> to vector<32x384xf32>
    %31 = arith.addf %28, %30 : vector<32x384xf32>
    %32 = arith.truncf %31 : vector<32x384xf32> to vector<32x384xbf16>
    %33 = vector.extract_strided_slice %32 {offsets = [0, 0], sizes = [32, 128], strides = [1, 1]} : vector<32x384xbf16> to vector<32x128xbf16>
    %34 = vector.shape_cast %33 : vector<32x128xbf16> to vector<2x16x128xbf16>
    %35 = vector.extract_strided_slice %32 {offsets = [0, 128], sizes = [32, 128], strides = [1, 1]} : vector<32x384xbf16> to vector<32x128xbf16>
    %36 = vector.shape_cast %35 : vector<32x128xbf16> to vector<2x16x128xbf16>
    %37 = vector.extract_strided_slice %32 {offsets = [0, 256], sizes = [32, 128], strides = [1, 1]} : vector<32x384xbf16> to vector<32x128xbf16>
    %38 = vector.shape_cast %37 : vector<32x128xbf16> to vector<2x16x128xbf16>
    %39 = tpu.iota {dimensions = array<i32: 0>} : vector<16x16xi32>
    %40 = tpu.iota {dimensions = array<i32: 1>} : vector<16x16xi32>
    %c16_i32 = arith.constant 16 : i32
    %41 = vector.broadcast %c16_i32 : i32 to vector<16x16xi32>
    %42 = arith.cmpi sge, %40, %41 : vector<16x16xi32>
    %43 = arith.cmpi sgt, %40, %39 : vector<16x16xi32>
    %44 = arith.ori %42, %43 : vector<16x16xi1>
    %cst_15 = arith.constant -1.000000e+30 : f32
    %cst_16 = arith.constant 0.000000e+00 : f32
    %45 = vector.broadcast %cst_15 : f32 to vector<16x16xf32>
    %46 = vector.broadcast %cst_16 : f32 to vector<16x16xf32>
    %47 = arith.select %44, %45, %46 : vector<16x16xi1>, vector<16x16xf32>
    %48 = vector.shape_cast %47 : vector<16x16xf32> to vector<1x16x16xf32>
    %49 = vector.extract_strided_slice %34 {offsets = [0, 0, 0], sizes = [2, 16, 32], strides = [1, 1, 1]} : vector<2x16x128xbf16> to vector<2x16x32xbf16>
    %50 = vector.extract_strided_slice %36 {offsets = [0, 0, 0], sizes = [2, 16, 32], strides = [1, 1, 1]} : vector<2x16x128xbf16> to vector<2x16x32xbf16>
    "tpu.trace_start"() <{level = 10 : i32, message = "bqd,bkd->bqk"}> : () -> ()
    %cst_17 = arith.constant dense<0.000000e+00> : vector<2x16x16xf32>
    %51 = tpu.matmul %49, %50, %cst_17 {dimension_numbers = #tpu.dot_dimension_numbers<[2], [2], [1], [1], [0, 0, 0, 1, 1, 1], [0], [0]>} : vector<2x16x32xbf16>, vector<2x16x32xbf16>, vector<2x16x16xf32> -> vector<2x16x16xf32>
    "tpu.trace_stop"() : () -> ()
    %52 = vector.broadcast %48 : vector<1x16x16xf32> to vector<2x16x16xf32>
    %53 = arith.addf %51, %52 : vector<2x16x16xf32>
    %cst_18 = arith.constant dense<0xFF800000> : vector<2x16xf32>
    %54 = vector.multi_reduction <maximumf>, %53, %cst_18 [2] : vector<2x16x16xf32> to vector<2x16xf32>
    %55 = vector.shape_cast %54 : vector<2x16xf32> to vector<2x16x1xf32>
    %56 = vector.broadcast %55 : vector<2x16x1xf32> to vector<2x16x16xf32>
    %57 = arith.subf %53, %56 : vector<2x16x16xf32>
    %58 = math.exp %57 : vector<2x16x16xf32>
    %cst_19 = arith.constant dense<0.000000e+00> : vector<2x16xf32>
    %59 = vector.multi_reduction <add>, %58, %cst_19 [2] : vector<2x16x16xf32> to vector<2x16xf32>
    %60 = vector.shape_cast %59 : vector<2x16xf32> to vector<2x16x1xf32>
    %61 = tpu.reciprocal %60 {approx = true} : vector<2x16x1xf32> -> vector<2x16x1xf32>
    %62 = vector.broadcast %61 : vector<2x16x1xf32> to vector<2x16x16xf32>
    %63 = arith.mulf %58, %62 : vector<2x16x16xf32>
    %64 = arith.truncf %63 : vector<2x16x16xf32> to vector<2x16x16xbf16>
    %65 = vector.extract_strided_slice %38 {offsets = [0, 0, 0], sizes = [2, 16, 32], strides = [1, 1, 1]} : vector<2x16x128xbf16> to vector<2x16x32xbf16>
    "tpu.trace_start"() <{level = 10 : i32, message = "bqk,bkd->bqd"}> : () -> ()
    %cst_20 = arith.constant dense<0.000000e+00> : vector<2x16x32xf32>
    %66 = tpu.matmul %64, %65, %cst_20 {dimension_numbers = #tpu.dot_dimension_numbers<[2], [1], [1], [2], [0, 0, 0, 1, 1, 2], [0], [0]>} : vector<2x16x16xbf16>, vector<2x16x32xbf16>, vector<2x16x32xf32> -> vector<2x16x32xf32>
    "tpu.trace_stop"() : () -> ()
    %67 = arith.truncf %66 : vector<2x16x32xf32> to vector<2x16x32xbf16>
    %c0_21 = arith.constant 0 : index
    %c0_22 = arith.constant 0 : index
    %c0_23 = arith.constant 0 : index
    %68 = vector.load %arg15[%c0_21, %c0_22, %c0_23] : memref<2x16x128xbf16, #tpu.memory_space<vmem>>, vector<2x16x32xbf16>
    tpu.vector_store %arg15[%c0_21, %c0_22, %c0_23], %67 {strides = array<i32>} : memref<2x16x128xbf16, #tpu.memory_space<vmem>>, vector<2x16x32xbf16>,
    %69 = vector.extract_strided_slice %34 {offsets = [0, 0, 32], sizes = [2, 16, 32], strides = [1, 1, 1]} : vector<2x16x128xbf16> to vector<2x16x32xbf16>
    %70 = vector.extract_strided_slice %36 {offsets = [0, 0, 32], sizes = [2, 16, 32], strides = [1, 1, 1]} : vector<2x16x128xbf16> to vector<2x16x32xbf16>
    "tpu.trace_start"() <{level = 10 : i32, message = "bqd,bkd->bqk"}> : () -> ()
    %cst_24 = arith.constant dense<0.000000e+00> : vector<2x16x16xf32>
    %71 = tpu.matmul %69, %70, %cst_24 {dimension_numbers = #tpu.dot_dimension_numbers<[2], [2], [1], [1], [0, 0, 0, 1, 1, 1], [0], [0]>} : vector<2x16x32xbf16>, vector<2x16x32xbf16>, vector<2x16x16xf32> -> vector<2x16x16xf32>
    "tpu.trace_stop"() : () -> ()
    %72 = vector.broadcast %48 : vector<1x16x16xf32> to vector<2x16x16xf32>
    %73 = arith.addf %71, %72 : vector<2x16x16xf32>
    %cst_25 = arith.constant dense<0xFF800000> : vector<2x16xf32>
    %74 = vector.multi_reduction <maximumf>, %73, %cst_25 [2] : vector<2x16x16xf32> to vector<2x16xf32>
    %75 = vector.shape_cast %74 : vector<2x16xf32> to vector<2x16x1xf32>
    %76 = vector.broadcast %75 : vector<2x16x1xf32> to vector<2x16x16xf32>
    %77 = arith.subf %73, %76 : vector<2x16x16xf32>
    %78 = math.exp %77 : vector<2x16x16xf32>
    %cst_26 = arith.constant dense<0.000000e+00> : vector<2x16xf32>
    %79 = vector.multi_reduction <add>, %78, %cst_26 [2] : vector<2x16x16xf32> to vector<2x16xf32>
    %80 = vector.shape_cast %79 : vector<2x16xf32> to vector<2x16x1xf32>
    %81 = tpu.reciprocal %80 {approx = true} : vector<2x16x1xf32> -> vector<2x16x1xf32>
    %82 = vector.broadcast %81 : vector<2x16x1xf32> to vector<2x16x16xf32>
    %83 = arith.mulf %78, %82 : vector<2x16x16xf32>
    %84 = arith.truncf %83 : vector<2x16x16xf32> to vector<2x16x16xbf16>
    %85 = vector.extract_strided_slice %38 {offsets = [0, 0, 32], sizes = [2, 16, 32], strides = [1, 1, 1]} : vector<2x16x128xbf16> to vector<2x16x32xbf16>
    "tpu.trace_start"() <{level = 10 : i32, message = "bqk,bkd->bqd"}> : () -> ()
    %cst_27 = arith.constant dense<0.000000e+00> : vector<2x16x32xf32>
    %86 = tpu.matmul %84, %85, %cst_27 {dimension_numbers = #tpu.dot_dimension_numbers<[2], [1], [1], [2], [0, 0, 0, 1, 1, 2], [0], [0]>} : vector<2x16x16xbf16>, vector<2x16x32xbf16>, vector<2x16x32xf32> -> vector<2x16x32xf32>
    "tpu.trace_stop"() : () -> ()
    %87 = arith.truncf %86 : vector<2x16x32xf32> to vector<2x16x32xbf16>
    %c0_28 = arith.constant 0 : index
    %c0_29 = arith.constant 0 : index
    %c32 = arith.constant 32 : index
    %88 = vector.load %arg15[%c0_28, %c0_29, %c32] : memref<2x16x128xbf16, #tpu.memory_space<vmem>>, vector<2x16x32xbf16>
    tpu.vector_store %arg15[%c0_28, %c0_29, %c32], %87 {strides = array<i32>} : memref<2x16x128xbf16, #tpu.memory_space<vmem>>, vector<2x16x32xbf16>,
    %89 = vector.extract_strided_slice %34 {offsets = [0, 0, 64], sizes = [2, 16, 32], strides = [1, 1, 1]} : vector<2x16x128xbf16> to vector<2x16x32xbf16>
    %90 = vector.extract_strided_slice %36 {offsets = [0, 0, 64], sizes = [2, 16, 32], strides = [1, 1, 1]} : vector<2x16x128xbf16> to vector<2x16x32xbf16>
    "tpu.trace_start"() <{level = 10 : i32, message = "bqd,bkd->bqk"}> : () -> ()
    %cst_30 = arith.constant dense<0.000000e+00> : vector<2x16x16xf32>
    %91 = tpu.matmul %89, %90, %cst_30 {dimension_numbers = #tpu.dot_dimension_numbers<[2], [2], [1], [1], [0, 0, 0, 1, 1, 1], [0], [0]>} : vector<2x16x32xbf16>, vector<2x16x32xbf16>, vector<2x16x16xf32> -> vector<2x16x16xf32>
    "tpu.trace_stop"() : () -> ()
    %92 = vector.broadcast %48 : vector<1x16x16xf32> to vector<2x16x16xf32>
    %93 = arith.addf %91, %92 : vector<2x16x16xf32>
    %cst_31 = arith.constant dense<0xFF800000> : vector<2x16xf32>
    %94 = vector.multi_reduction <maximumf>, %93, %cst_31 [2] : vector<2x16x16xf32> to vector<2x16xf32>
    %95 = vector.shape_cast %94 : vector<2x16xf32> to vector<2x16x1xf32>
    %96 = vector.broadcast %95 : vector<2x16x1xf32> to vector<2x16x16xf32>
    %97 = arith.subf %93, %96 : vector<2x16x16xf32>
    %98 = math.exp %97 : vector<2x16x16xf32>
    %cst_32 = arith.constant dense<0.000000e+00> : vector<2x16xf32>
    %99 = vector.multi_reduction <add>, %98, %cst_32 [2] : vector<2x16x16xf32> to vector<2x16xf32>
    %100 = vector.shape_cast %99 : vector<2x16xf32> to vector<2x16x1xf32>
    %101 = tpu.reciprocal %100 {approx = true} : vector<2x16x1xf32> -> vector<2x16x1xf32>
    %102 = vector.broadcast %101 : vector<2x16x1xf32> to vector<2x16x16xf32>
    %103 = arith.mulf %98, %102 : vector<2x16x16xf32>
    %104 = arith.truncf %103 : vector<2x16x16xf32> to vector<2x16x16xbf16>
    %105 = vector.extract_strided_slice %38 {offsets = [0, 0, 64], sizes = [2, 16, 32], strides = [1, 1, 1]} : vector<2x16x128xbf16> to vector<2x16x32xbf16>
    "tpu.trace_start"() <{level = 10 : i32, message = "bqk,bkd->bqd"}> : () -> ()
    %cst_33 = arith.constant dense<0.000000e+00> : vector<2x16x32xf32>
    %106 = tpu.matmul %104, %105, %cst_33 {dimension_numbers = #tpu.dot_dimension_numbers<[2], [1], [1], [2], [0, 0, 0, 1, 1, 2], [0], [0]>} : vector<2x16x16xbf16>, vector<2x16x32xbf16>, vector<2x16x32xf32> -> vector<2x16x32xf32>
    "tpu.trace_stop"() : () -> ()
    %107 = arith.truncf %106 : vector<2x16x32xf32> to vector<2x16x32xbf16>
    %c0_34 = arith.constant 0 : index
    %c0_35 = arith.constant 0 : index
    %c64 = arith.constant 64 : index
    %108 = vector.load %arg15[%c0_34, %c0_35, %c64] : memref<2x16x128xbf16, #tpu.memory_space<vmem>>, vector<2x16x32xbf16>
    tpu.vector_store %arg15[%c0_34, %c0_35, %c64], %107 {strides = array<i32>} : memref<2x16x128xbf16, #tpu.memory_space<vmem>>, vector<2x16x32xbf16>,
    %109 = vector.extract_strided_slice %34 {offsets = [0, 0, 96], sizes = [2, 16, 32], strides = [1, 1, 1]} : vector<2x16x128xbf16> to vector<2x16x32xbf16>
    %110 = vector.extract_strided_slice %36 {offsets = [0, 0, 96], sizes = [2, 16, 32], strides = [1, 1, 1]} : vector<2x16x128xbf16> to vector<2x16x32xbf16>
    "tpu.trace_start"() <{level = 10 : i32, message = "bqd,bkd->bqk"}> : () -> ()
    %cst_36 = arith.constant dense<0.000000e+00> : vector<2x16x16xf32>
    %111 = tpu.matmul %109, %110, %cst_36 {dimension_numbers = #tpu.dot_dimension_numbers<[2], [2], [1], [1], [0, 0, 0, 1, 1, 1], [0], [0]>} : vector<2x16x32xbf16>, vector<2x16x32xbf16>, vector<2x16x16xf32> -> vector<2x16x16xf32>
    "tpu.trace_stop"() : () -> ()
    %112 = vector.broadcast %48 : vector<1x16x16xf32> to vector<2x16x16xf32>
    %113 = arith.addf %111, %112 : vector<2x16x16xf32>
    %cst_37 = arith.constant dense<0xFF800000> : vector<2x16xf32>
    %114 = vector.multi_reduction <maximumf>, %113, %cst_37 [2] : vector<2x16x16xf32> to vector<2x16xf32>
    %115 = vector.shape_cast %114 : vector<2x16xf32> to vector<2x16x1xf32>
    %116 = vector.broadcast %115 : vector<2x16x1xf32> to vector<2x16x16xf32>
    %117 = arith.subf %113, %116 : vector<2x16x16xf32>
    %118 = math.exp %117 : vector<2x16x16xf32>
    %cst_38 = arith.constant dense<0.000000e+00> : vector<2x16xf32>
    %119 = vector.multi_reduction <add>, %118, %cst_38 [2] : vector<2x16x16xf32> to vector<2x16xf32>
    %120 = vector.shape_cast %119 : vector<2x16xf32> to vector<2x16x1xf32>
    %121 = tpu.reciprocal %120 {approx = true} : vector<2x16x1xf32> -> vector<2x16x1xf32>
    %122 = vector.broadcast %121 : vector<2x16x1xf32> to vector<2x16x16xf32>
    %123 = arith.mulf %118, %122 : vector<2x16x16xf32>
    %124 = arith.truncf %123 : vector<2x16x16xf32> to vector<2x16x16xbf16>
    %125 = vector.extract_strided_slice %38 {offsets = [0, 0, 96], sizes = [2, 16, 32], strides = [1, 1, 1]} : vector<2x16x128xbf16> to vector<2x16x32xbf16>
    "tpu.trace_start"() <{level = 10 : i32, message = "bqk,bkd->bqd"}> : () -> ()
    %cst_39 = arith.constant dense<0.000000e+00> : vector<2x16x32xf32>
    %126 = tpu.matmul %124, %125, %cst_39 {dimension_numbers = #tpu.dot_dimension_numbers<[2], [1], [1], [2], [0, 0, 0, 1, 1, 2], [0], [0]>} : vector<2x16x16xbf16>, vector<2x16x32xbf16>, vector<2x16x32xf32> -> vector<2x16x32xf32>
    "tpu.trace_stop"() : () -> ()
    %127 = arith.truncf %126 : vector<2x16x32xf32> to vector<2x16x32xbf16>
    %c0_40 = arith.constant 0 : index
    %c0_41 = arith.constant 0 : index
    %c96 = arith.constant 96 : index
    %128 = vector.load %arg15[%c0_40, %c0_41, %c96] : memref<2x16x128xbf16, #tpu.memory_space<vmem>>, vector<2x16x32xbf16>
    tpu.vector_store %arg15[%c0_40, %c0_41, %c96], %127 {strides = array<i32>} : memref<2x16x128xbf16, #tpu.memory_space<vmem>>, vector<2x16x32xbf16>,
    %c0_42 = arith.constant 0 : index
    %c0_43 = arith.constant 0 : index
    %c0_44 = arith.constant 0 : index
    %129 = vector.load %arg15[%c0_42, %c0_43, %c0_44] : memref<2x16x128xbf16, #tpu.memory_space<vmem>>, vector<2x16x128xbf16>
    %130 = vector.shape_cast %129 : vector<2x16x128xbf16> to vector<32x128xbf16>
    %c0_45 = arith.constant 0 : index
    %c0_46 = arith.constant 0 : index
    %131 = vector.load %arg6[%c0_45, %c0_46] : memref<128x128xbf16, #tpu.memory_space<vmem>>, vector<128x128xbf16>
    %cst_47 = arith.constant dense<0.000000e+00> : vector<32x128xf32>
    %132 = tpu.matmul %130, %131, %cst_47 {dimension_numbers = #tpu.dot_dimension_numbers<[1], [0], [0], [1], [0, 0, 1, 1], [], []>} : vector<32x128xbf16>, vector<128x128xbf16>, vector<32x128xf32> -> vector<32x128xf32>
    %c0_48 = arith.constant 0 : index
    %c0_49 = arith.constant 0 : index
    %133 = vector.load %arg7[%c0_48, %c0_49] : memref<1x128xf32, #tpu.memory_space<vmem>>, vector<1x128xf32>
    %134 = vector.broadcast %133 : vector<1x128xf32> to vector<32x128xf32>
    %135 = arith.addf %132, %134 : vector<32x128xf32>
    %136 = arith.addf %1, %135 : vector<32x128xf32>
    %c0_50 = arith.constant 0 : index
    %c0_51 = arith.constant 0 : index
    %137 = vector.load %arg8[%c0_50, %c0_51] : memref<1x128xf32, #tpu.memory_space<vmem>>, vector<1x128xf32>
    %c0_52 = arith.constant 0 : index
    %c0_53 = arith.constant 0 : index
    %138 = vector.load %arg9[%c0_52, %c0_53] : memref<1x128xf32, #tpu.memory_space<vmem>>, vector<1x128xf32>
    %cst_54 = arith.constant dense<0.000000e+00> : vector<32xf32>
    %139 = vector.multi_reduction <add>, %136, %cst_54 [1] : vector<32x128xf32> to vector<32xf32>
    %140 = vector.shape_cast %139 : vector<32xf32> to vector<32x1xf32>
    %cst_55 = arith.constant 1.280000e+02 : f32
    %141 = vector.broadcast %cst_55 : f32 to vector<32x1xf32>
    %142 = arith.divf %140, %141 : vector<32x1xf32>
    %143 = vector.broadcast %142 : vector<32x1xf32> to vector<32x128xf32>
    %144 = arith.subf %136, %143 : vector<32x128xf32>
    %145 = arith.mulf %144, %144 : vector<32x128xf32>
    %cst_56 = arith.constant dense<0.000000e+00> : vector<32xf32>
    %146 = vector.multi_reduction <add>, %145, %cst_56 [1] : vector<32x128xf32> to vector<32xf32>
    %147 = vector.shape_cast %146 : vector<32xf32> to vector<32x1xf32>
    %cst_57 = arith.constant 1.280000e+02 : f32
    %148 = vector.broadcast %cst_57 : f32 to vector<32x1xf32>
    %149 = arith.divf %147, %148 : vector<32x1xf32>
    %150 = vector.broadcast %142 : vector<32x1xf32> to vector<32x128xf32>
    %151 = arith.subf %136, %150 : vector<32x128xf32>
    %cst_58 = arith.constant 9.99999974E-6 : f32
    %152 = vector.broadcast %cst_58 : f32 to vector<32x1xf32>
    %153 = arith.addf %149, %152 : vector<32x1xf32>
    %154 = math.rsqrt %153 : vector<32x1xf32>
    %155 = vector.broadcast %154 : vector<32x1xf32> to vector<32x128xf32>
    %156 = arith.mulf %151, %155 : vector<32x128xf32>
    %157 = vector.broadcast %137 : vector<1x128xf32> to vector<32x128xf32>
    %158 = arith.mulf %156, %157 : vector<32x128xf32>
    %159 = vector.broadcast %138 : vector<1x128xf32> to vector<32x128xf32>
    %160 = arith.addf %158, %159 : vector<32x128xf32>
    %161 = arith.truncf %160 : vector<32x128xf32> to vector<32x128xbf16>
    %c0_59 = arith.constant 0 : index
    %c0_60 = arith.constant 0 : index
    %162 = vector.load %arg10[%c0_59, %c0_60] : memref<128x512xbf16, #tpu.memory_space<vmem>>, vector<128x512xbf16>
    %cst_61 = arith.constant dense<0.000000e+00> : vector<32x512xf32>
    %163 = tpu.matmul %161, %162, %cst_61 {dimension_numbers = #tpu.dot_dimension_numbers<[1], [0], [0], [1], [0, 0, 1, 1], [], []>} : vector<32x128xbf16>, vector<128x512xbf16>, vector<32x512xf32> -> vector<32x512xf32>
    %c0_62 = arith.constant 0 : index
    %c0_63 = arith.constant 0 : index
    %164 = vector.load %arg11[%c0_62, %c0_63] : memref<1x512xf32, #tpu.memory_space<vmem>>, vector<1x512xf32>
    %165 = vector.broadcast %164 : vector<1x512xf32> to vector<32x512xf32>
    %166 = arith.addf %163, %165 : vector<32x512xf32>
    %cst_64 = arith.constant 1.702000e+00 : f32
    %167 = vector.broadcast %cst_64 : f32 to vector<32x512xf32>
    %168 = arith.mulf %167, %166 : vector<32x512xf32>
    %169 = arith.negf %168 : vector<32x512xf32>
    %170 = math.exp %169 : vector<32x512xf32>
    %cst_65 = arith.constant 1.000000e+00 : f32
    %171 = vector.broadcast %cst_65 : f32 to vector<32x512xf32>
    %172 = arith.addf %171, %170 : vector<32x512xf32>
    %173 = arith.divf %171, %172 : vector<32x512xf32>
    %174 = arith.mulf %166, %173 : vector<32x512xf32>
    %175 = arith.truncf %174 : vector<32x512xf32> to vector<32x512xbf16>
    %c0_66 = arith.constant 0 : index
    %c0_67 = arith.constant 0 : index
    %176 = vector.load %arg12[%c0_66, %c0_67] : memref<512x128xbf16, #tpu.memory_space<vmem>>, vector<512x128xbf16>
    %cst_68 = arith.constant dense<0.000000e+00> : vector<32x128xf32>
    %177 = tpu.matmul %175, %176, %cst_68 {dimension_numbers = #tpu.dot_dimension_numbers<[1], [0], [0], [1], [0, 0, 1, 1], [], []>} : vector<32x512xbf16>, vector<512x128xbf16>, vector<32x128xf32> -> vector<32x128xf32>
    %c0_69 = arith.constant 0 : index
    %c0_70 = arith.constant 0 : index
    %178 = vector.load %arg13[%c0_69, %c0_70] : memref<1x128xf32, #tpu.memory_space<vmem>>, vector<1x128xf32>
    %179 = vector.broadcast %178 : vector<1x128xf32> to vector<32x128xf32>
    %180 = arith.addf %177, %179 : vector<32x128xf32>
    %181 = arith.addf %136, %180 : vector<32x128xf32>
    %182 = vector.shape_cast %181 : vector<32x128xf32> to vector<2x16x128xf32>
    %c0_71 = arith.constant 0 : index
    %c0_72 = arith.constant 0 : index
    %c0_73 = arith.constant 0 : index
    %183 = vector.load %arg14[%c0_71, %c0_72, %c0_73] : memref<2x16x128xf32, #tpu.memory_space<vmem>>, vector<2x16x128xf32>
    tpu.vector_store %arg14[%c0_71, %c0_72, %c0_73], %182 {strides = array<i32>} : memref<2x16x128xf32, #tpu.memory_space<vmem>>, vector<2x16x128xf32>,
    return
  }
  func.func @transform_0(%arg0: i32) -> (i32, i32, i32) {
    %c0_i32 = arith.constant 0 : i32
    %c0_i32_0 = arith.constant 0 : i32
    %c0_i32_1 = arith.constant 0 : i32
    return %arg0, %c0_i32, %c0_i32_0 : i32, i32, i32
  }
  func.func @transform_1(%arg0: i32) -> (i32, i32) {
    %c0_i32 = arith.constant 0 : i32
    %c0_i32_0 = arith.constant 0 : i32
    %c0_i32_1 = arith.constant 0 : i32
    return %c0_i32, %c0_i32_0 : i32, i32
  }
  func.func @transform_2(%arg0: i32) -> (i32, i32) {
    %c0_i32 = arith.constant 0 : i32
    %c0_i32_0 = arith.constant 0 : i32
    %c0_i32_1 = arith.constant 0 : i32
    return %c0_i32, %c0_i32_0 : i32, i32
  }
  func.func @transform_3(%arg0: i32) -> (i32, i32) {
    %c0_i32 = arith.constant 0 : i32
    %c0_i32_0 = arith.constant 0 : i32
    %c0_i32_1 = arith.constant 0 : i32
    return %c0_i32, %c0_i32_0 : i32, i32
  }
  func.func @transform_4(%arg0: i32) -> (i32, i32) {
    %c0_i32 = arith.constant 0 : i32
    %c0_i32_0 = arith.constant 0 : i32
    %c0_i32_1 = arith.constant 0 : i32
    return %c0_i32, %c0_i32_0 : i32, i32
  }
  func.func @transform_5(%arg0: i32) -> (i32, i32) {
    %c0_i32 = arith.constant 0 : i32
    %c0_i32_0 = arith.constant 0 : i32
    %c0_i32_1 = arith.constant 0 : i32
    return %c0_i32, %c0_i32_0 : i32, i32
  }
  func.func @transform_6(%arg0: i32) -> (i32, i32) {
    %c0_i32 = arith.constant 0 : i32
    %c0_i32_0 = arith.constant 0 : i32
    %c0_i32_1 = arith.constant 0 : i32
    return %c0_i32, %c0_i32_0 : i32, i32
  }
  func.func @transform_7(%arg0: i32) -> (i32, i32) {
    %c0_i32 = arith.constant 0 : i32
    %c0_i32_0 = arith.constant 0 : i32
    %c0_i32_1 = arith.constant 0 : i32
    return %c0_i32, %c0_i32_0 : i32, i32
  }
  func.func @transform_8(%arg0: i32) -> (i32, i32) {
    %c0_i32 = arith.constant 0 : i32
    %c0_i32_0 = arith.constant 0 : i32
    %c0_i32_1 = arith.constant 0 : i32
    return %c0_i32, %c0_i32_0 : i32, i32
  }
  func.func @transform_9(%arg0: i32) -> (i32, i32) {
    %c0_i32 = arith.constant 0 : i32
    %c0_i32_0 = arith.constant 0 : i32
    %c0_i32_1 = arith.constant 0 : i32
    return %c0_i32, %c0_i32_0 : i32, i32
  }
  func.func @transform_10(%arg0: i32) -> (i32, i32) {
    %c0_i32 = arith.constant 0 : i32
    %c0_i32_0 = arith.constant 0 : i32
    %c0_i32_1 = arith.constant 0 : i32
    return %c0_i32, %c0_i32_0 : i32, i32
  }
  func.func @transform_11(%arg0: i32) -> (i32, i32) {
    %c0_i32 = arith.constant 0 : i32
    %c0_i32_0 = arith.constant 0 : i32
    %c0_i32_1 = arith.constant 0 : i32
    return %c0_i32, %c0_i32_0 : i32, i32
  }
  func.func @transform_12(%arg0: i32) -> (i32, i32) {
    %c0_i32 = arith.constant 0 : i32
    %c0_i32_0 = arith.constant 0 : i32
    %c0_i32_1 = arith.constant 0 : i32
    return %c0_i32, %c0_i32_0 : i32, i32
  }
  func.func @transform_13(%arg0: i32) -> (i32, i32, i32) {
    %c0_i32 = arith.constant 0 : i32
    %c0_i32_0 = arith.constant 0 : i32
    %c0_i32_1 = arith.constant 0 : i32
    return %arg0, %c0_i32, %c0_i32_0 : i32, i32, i32
  }
}

module attributes {stable_mosaic.version = 11 : i64} {
  func.func @block_kernel(%arg0: i32, %arg1: memref<2x16x128xf32, #tpu.memory_space<vmem>>, %arg2: memref<1x128xf32, #tpu.memory_space<vmem>>, %arg3: memref<1x128xf32, #tpu.memory_space<vmem>>, %arg4: memref<128x384xbf16, #tpu.memory_space<vmem>>, %arg5: memref<1x384xf32, #tpu.memory_space<vmem>>, %arg6: memref<128x128xbf16, #tpu.memory_space<vmem>>, %arg7: memref<1x128xf32, #tpu.memory_space<vmem>>, %arg8: memref<1x128xf32, #tpu.memory_space<vmem>>, %arg9: memref<1x128xf32, #tpu.memory_space<vmem>>, %arg10: memref<128x512xbf16, #tpu.memory_space<vmem>>, %arg11: memref<1x512xf32, #tpu.memory_space<vmem>>, %arg12: memref<512x128xbf16, #tpu.memory_space<vmem>>, %arg13: memref<1x128xf32, #tpu.memory_space<vmem>>, %arg14: memref<2x16x128xf32, #tpu.memory_space<vmem>>, %arg15: memref<2x16x128xbf16, #tpu.memory_space<vmem>>) attributes {dimension_semantics = [#tpu.dimension_semantics<parallel>], iteration_bounds = array<i64: 2>, scalar_prefetch = 0 : i64, scratch_operands = 1 : i64, tpu.core_type = #tpu.core_type<tc>, window_params = [{transform_indices = @transform_0, window_bounds = array<i64: 2, 16, 128>}, {pipeline_mode = #tpu.pipeline_mode<synchronous>, transform_indices = @transform_1, window_bounds = array<i64: 1, 128>}, {pipeline_mode = #tpu.pipeline_mode<synchronous>, transform_indices = @transform_2, window_bounds = array<i64: 1, 128>}, {pipeline_mode = #tpu.pipeline_mode<synchronous>, transform_indices = @transform_3, window_bounds = array<i64: 128, 384>}, {pipeline_mode = #tpu.pipeline_mode<synchronous>, transform_indices = @transform_4, window_bounds = array<i64: 1, 384>}, {pipeline_mode = #tpu.pipeline_mode<synchronous>, transform_indices = @transform_5, window_bounds = array<i64: 128, 128>}, {pipeline_mode = #tpu.pipeline_mode<synchronous>, transform_indices = @transform_6, window_bounds = array<i64: 1, 128>}, {pipeline_mode = #tpu.pipeline_mode<synchronous>, transform_indices = @transform_7, window_bounds = array<i64: 1, 128>}, {pipeline_mode = #tpu.pipeline_mode<synchronous>, transform_indices = @transform_8, window_bounds = array<i64: 1, 128>}, {pipeline_mode = #tpu.pipeline_mode<synchronous>, transform_indices = @transform_9, window_bounds = array<i64: 128, 512>}, {pipeline_mode = #tpu.pipeline_mode<synchronous>, transform_indices = @transform_10, window_bounds = array<i64: 1, 512>}, {pipeline_mode = #tpu.pipeline_mode<synchronous>, transform_indices = @transform_11, window_bounds = array<i64: 512, 128>}, {pipeline_mode = #tpu.pipeline_mode<synchronous>, transform_indices = @transform_12, window_bounds = array<i64: 1, 128>}, {transform_indices = @transform_13, window_bounds = array<i64: 2, 16, 128>}]} {
    %c0 = arith.constant 0 : index
    %c0_0 = arith.constant 0 : index
    %c0_1 = arith.constant 0 : index
    %0 = vector.load %arg1[%c0, %c0_0, %c0_1] : memref<2x16x128xf32, #tpu.memory_space<vmem>>, vector<2x16x128xf32>
    %1 = vector.shape_cast %0 : vector<2x16x128xf32> to vector<32x128xf32>
    %c0_2 = arith.constant 0 : index
    %c0_3 = arith.constant 0 : index
    %2 = vector.load %arg2[%c0_2, %c0_3] : memref<1x128xf32, #tpu.memory_space<vmem>>, vector<1x128xf32>
    %c0_4 = arith.constant 0 : index
    %c0_5 = arith.constant 0 : index
    %3 = vector.load %arg3[%c0_4, %c0_5] : memref<1x128xf32, #tpu.memory_space<vmem>>, vector<1x128xf32>
    %cst = arith.constant dense<0.000000e+00> : vector<32xf32>
    %4 = vector.multi_reduction <add>, %1, %cst [1] : vector<32x128xf32> to vector<32xf32>
    %5 = vector.shape_cast %4 : vector<32xf32> to vector<32x1xf32>
    %cst_6 = arith.constant 1.280000e+02 : f32
    %6 = vector.broadcast %cst_6 : f32 to vector<32x1xf32>
    %7 = arith.divf %5, %6 : vector<32x1xf32>
    %8 = vector.broadcast %7 : vector<32x1xf32> to vector<32x128xf32>
    %9 = arith.subf %1, %8 : vector<32x128xf32>
    %10 = arith.mulf %9, %9 : vector<32x128xf32>
    %cst_7 = arith.constant dense<0.000000e+00> : vector<32xf32>
    %11 = vector.multi_reduction <add>, %10, %cst_7 [1] : vector<32x128xf32> to vector<32xf32>
    %12 = vector.shape_cast %11 : vector<32xf32> to vector<32x1xf32>
    %cst_8 = arith.constant 1.280000e+02 : f32
    %13 = vector.broadcast %cst_8 : f32 to vector<32x1xf32>
    %14 = arith.divf %12, %13 : vector<32x1xf32>
    %15 = vector.broadcast %7 : vector<32x1xf32> to vector<32x128xf32>
    %16 = arith.subf %1, %15 : vector<32x128xf32>
    %cst_9 = arith.constant 9.99999974E-6 : f32
    %17 = vector.broadcast %cst_9 : f32 to vector<32x1xf32>
    %18 = arith.addf %14, %17 : vector<32x1xf32>
    %19 = math.rsqrt %18 : vector<32x1xf32>
    %20 = vector.broadcast %19 : vector<32x1xf32> to vector<32x128xf32>
    %21 = arith.mulf %16, %20 : vector<32x128xf32>
    %22 = vector.broadcast %2 : vector<1x128xf32> to vector<32x128xf32>
    %23 = arith.mulf %21, %22 : vector<32x128xf32>
    %24 = vector.broadcast %3 : vector<1x128xf32> to vector<32x128xf32>
    %25 = arith.addf %23, %24 : vector<32x128xf32>
    %26 = arith.truncf %25 : vector<32x128xf32> to vector<32x128xbf16>
    %c0_10 = arith.constant 0 : index
    %c0_11 = arith.constant 0 : index
    %27 = vector.load %arg4[%c0_10, %c0_11] : memref<128x384xbf16, #tpu.memory_space<vmem>>, vector<128x384xbf16>
    %cst_12 = arith.constant dense<0.000000e+00> : vector<32x384xf32>
    %28 = tpu.matmul %26, %27, %cst_12 {dimension_numbers = #tpu.dot_dimension_numbers<[1], [0], [0], [1], [0, 0, 1, 1], [], []>} : vector<32x128xbf16>, vector<128x384xbf16>, vector<32x384xf32> -> vector<32x384xf32>
    %c0_13 = arith.constant 0 : index
    %c0_14 = arith.constant 0 : index
    %29 = vector.load %arg5[%c0_13, %c0_14] : memref<1x384xf32, #tpu.memory_space<vmem>>, vector<1x384xf32>
    %30 = vector.broadcast %29 : vector<1x384xf32> to vector<32x384xf32>
    %31 = arith.addf %28, %30 : vector<32x384xf32>
    %32 = arith.truncf %31 : vector<32x384xf32> to vector<32x384xbf16>
    %33 = vector.extract_strided_slice %32 {offsets = [0, 0], sizes = [32, 128], strides = [1, 1]} : vector<32x384xbf16> to vector<32x128xbf16>
    %34 = vector.shape_cast %33 : vector<32x128xbf16> to vector<2x16x128xbf16>
    %35 = vector.extract_strided_slice %32 {offsets = [0, 128], sizes = [32, 128], strides = [1, 1]} : vector<32x384xbf16> to vector<32x128xbf16>
    %36 = vector.shape_cast %35 : vector<32x128xbf16> to vector<2x16x128xbf16>
    %37 = vector.extract_strided_slice %32 {offsets = [0, 256], sizes = [32, 128], strides = [1, 1]} : vector<32x384xbf16> to vector<32x128xbf16>
    %38 = vector.shape_cast %37 : vector<32x128xbf16> to vector<2x16x128xbf16>
    %39 = tpu.iota {dimensions = array<i32: 0>} : vector<16x16xi32>
    %40 = tpu.iota {dimensions = array<i32: 1>} : vector<16x16xi32>
    %c16_i32 = arith.constant 16 : i32
    %41 = vector.broadcast %c16_i32 : i32 to vector<16x16xi32>
    %42 = arith.cmpi sge, %40, %41 : vector<16x16xi32>
    %43 = arith.cmpi sgt, %40, %39 : vector<16x16xi32>
    %44 = arith.ori %42, %43 : vector<16x16xi1>
    %cst_15 = arith.constant -1.000000e+30 : f32
    %cst_16 = arith.constant 0.000000e+00 : f32
    %45 = vector.broadcast %cst_15 : f32 to vector<16x16xf32>
    %46 = vector.broadcast %cst_16 : f32 to vector<16x16xf32>
    %47 = arith.select %44, %45, %46 : vector<16x16xi1>, vector<16x16xf32>
    %48 = vector.shape_cast %47 : vector<16x16xf32> to vector<1x16x16xf32>
    %49 = vector.extract_strided_slice %34 {offsets = [0, 0, 0], sizes = [2, 16, 32], strides = [1, 1, 1]} : vector<2x16x128xbf16> to vector<2x16x32xbf16>
    %50 = vector.extract_strided_slice %36 {offsets = [0, 0, 0], sizes = [2, 16, 32], strides = [1, 1, 1]} : vector<2x16x128xbf16> to vector<2x16x32xbf16>
    "tpu.trace_start"() <{level = 10 : i32, message = "bqd,bkd->bqk"}> : () -> ()
    %cst_17 = arith.constant dense<0.000000e+00> : vector<2x16x16xf32>
    %51 = tpu.matmul %49, %50, %cst_17 {dimension_numbers = #tpu.dot_dimension_numbers<[2], [2], [1], [1], [0, 0, 0, 1, 1, 1], [0], [0]>} : vector<2x16x32xbf16>, vector<2x16x32xbf16>, vector<2x16x16xf32> -> vector<2x16x16xf32>
    "tpu.trace_stop"() : () -> ()
    %52 = vector.broadcast %48 : vector<1x16x16xf32> to vector<2x16x16xf32>
    %53 = arith.addf %51, %52 : vector<2x16x16xf32>
    %cst_18 = arith.constant dense<0xFF800000> : vector<2x16xf32>
    %54 = vector.multi_reduction <maximumf>, %53, %cst_18 [2] : vector<2x16x16xf32> to vector<2x16xf32>
    %55 = vector.shape_cast %54 : vector<2x16xf32> to vector<2x16x1xf32>
    %56 = vector.broadcast %55 : vector<2x16x1xf32> to vector<2x16x16xf32>
    %57 = arith.subf %53, %56 : vector<2x16x16xf32>
    %58 = math.exp %57 : vector<2x16x16xf32>
    %cst_19 = arith.constant dense<0.000000e+00> : vector<2x16xf32>
    %59 = vector.multi_reduction <add>, %58, %cst_19 [2] : vector<2x16x16xf32> to vector<2x16xf32>
    %60 = vector.shape_cast %59 : vector<2x16xf32> to vector<2x16x1xf32>
    %61 = tpu.reciprocal %60 {approx = true} : vector<2x16x1xf32> -> vector<2x16x1xf32>
    %62 = vector.broadcast %61 : vector<2x16x1xf32> to vector<2x16x16xf32>
    %63 = arith.mulf %58, %62 : vector<2x16x16xf32>
    %64 = arith.truncf %63 : vector<2x16x16xf32> to vector<2x16x16xbf16>
    %65 = vector.extract_strided_slice %38 {offsets = [0, 0, 0], sizes = [2, 16, 32], strides = [1, 1, 1]} : vector<2x16x128xbf16> to vector<2x16x32xbf16>
    "tpu.trace_start"() <{level = 10 : i32, message = "bqk,bkd->bqd"}> : () -> ()
    %cst_20 = arith.constant dense<0.000000e+00> : vector<2x16x32xf32>
    %66 = tpu.matmul %64, %65, %cst_20 {dimension_numbers = #tpu.dot_dimension_numbers<[2], [1], [1], [2], [0, 0, 0, 1, 1, 2], [0], [0]>} : vector<2x16x16xbf16>, vector<2x16x32xbf16>, vector<2x16x32xf32> -> vector<2x16x32xf32>
    "tpu.trace_stop"() : () -> ()
    %67 = arith.truncf %66 : vector<2x16x32xf32> to vector<2x16x32xbf16>
    %c0_21 = arith.constant 0 : index
    %c0_22 = arith.constant 0 : index
    %c0_23 = arith.constant 0 : index
    %68 = vector.load %arg15[%c0_21, %c0_22, %c0_23] : memref<2x16x128xbf16, #tpu.memory_space<vmem>>, vector<2x16x32xbf16>
    tpu.vector_store %arg15[%c0_21, %c0_22, %c0_23], %67 {strides = array<i32>} : memref<2x16x128xbf16, #tpu.memory_space<vmem>>, vector<2x16x32xbf16>,
    %69 = vector.extract_strided_slice %34 {offsets = [0, 0, 32], sizes = [2, 16, 32], strides = [1, 1, 1]} : vector<2x16x128xbf16> to vector<2x16x32xbf16>
    %70 = vector.extract_strided_slice %36 {offsets = [0, 0, 32], sizes = [2, 16, 32], strides = [1, 1, 1]} : vector<2x16x128xbf16> to vector<2x16x32xbf16>
    "tpu.trace_start"() <{level = 10 : i32, message = "bqd,bkd->bqk"}> : () -> ()
    %cst_24 = arith.constant dense<0.000000e+00> : vector<2x16x16xf32>
    %71 = tpu.matmul %69, %70, %cst_24 {dimension_numbers = #tpu.dot_dimension_numbers<[2], [2], [1], [1], [0, 0, 0, 1, 1, 1], [0], [0]>} : vector<2x16x32xbf16>, vector<2x16x32xbf16>, vector<2x16x16xf32> -> vector<2x16x16xf32>
    "tpu.trace_stop"() : () -> ()
    %72 = vector.broadcast %48 : vector<1x16x16xf32> to vector<2x16x16xf32>
    %73 = arith.addf %71, %72 : vector<2x16x16xf32>
    %cst_25 = arith.constant dense<0xFF800000> : vector<2x16xf32>
    %74 = vector.multi_reduction <maximumf>, %73, %cst_25 [2] : vector<2x16x16xf32> to vector<2x16xf32>
    %75 = vector.shape_cast %74 : vector<2x16xf32> to vector<2x16x1xf32>
    %76 = vector.broadcast %75 : vector<2x16x1xf32> to vector<2x16x16xf32>
    %77 = arith.subf %73, %76 : vector<2x16x16xf32>
    %78 = math.exp %77 : vector<2x16x16xf32>
    %cst_26 = arith.constant dense<0.000000e+00> : vector<2x16xf32>
    %79 = vector.multi_reduction <add>, %78, %cst_26 [2] : vector<2x16x16xf32> to vector<2x16xf32>
    %80 = vector.shape_cast %79 : vector<2x16xf32> to vector<2x16x1xf32>
    %81 = tpu.reciprocal %80 {approx = true} : vector<2x16x1xf32> -> vector<2x16x1xf32>
    %82 = vector.broadcast %81 : vector<2x16x1xf32> to vector<2x16x16xf32>
    %83 = arith.mulf %78, %82 : vector<2x16x16xf32>
    %84 = arith.truncf %83 : vector<2x16x16xf32> to vector<2x16x16xbf16>
    %85 = vector.extract_strided_slice %38 {offsets = [0, 0, 32], sizes = [2, 16, 32], strides = [1, 1, 1]} : vector<2x16x128xbf16> to vector<2x16x32xbf16>
    "tpu.trace_start"() <{level = 10 : i32, message = "bqk,bkd->bqd"}> : () -> ()
    %cst_27 = arith.constant dense<0.000000e+00> : vector<2x16x32xf32>
    %86 = tpu.matmul %84, %85, %cst_27 {dimension_numbers = #tpu.dot_dimension_numbers<[2], [1], [1], [2], [0, 0, 0, 1, 1, 2], [0], [0]>} : vector<2x16x16xbf16>, vector<2x16x32xbf16>, vector<2x16x32xf32> -> vector<2x16x32xf32>
    "tpu.trace_stop"() : () -> ()
    %87 = arith.truncf %86 : vector<2x16x32xf32> to vector<2x16x32xbf16>
    %c0_28 = arith.constant 0 : index
    %c0_29 = arith.constant 0 : index
    %c32 = arith.constant 32 : index
    %88 = vector.load %arg15[%c0_28, %c0_29, %c32] : memref<2x16x128xbf16, #tpu.memory_space<vmem>>, vector<2x16x32xbf16>
    tpu.vector_store %arg15[%c0_28, %c0_29, %c32], %87 {strides = array<i32>} : memref<2x16x128xbf16, #tpu.memory_space<vmem>>, vector<2x16x32xbf16>,
    %89 = vector.extract_strided_slice %34 {offsets = [0, 0, 64], sizes = [2, 16, 32], strides = [1, 1, 1]} : vector<2x16x128xbf16> to vector<2x16x32xbf16>
    %90 = vector.extract_strided_slice %36 {offsets = [0, 0, 64], sizes = [2, 16, 32], strides = [1, 1, 1]} : vector<2x16x128xbf16> to vector<2x16x32xbf16>
    "tpu.trace_start"() <{level = 10 : i32, message = "bqd,bkd->bqk"}> : () -> ()
    %cst_30 = arith.constant dense<0.000000e+00> : vector<2x16x16xf32>
    %91 = tpu.matmul %89, %90, %cst_30 {dimension_numbers = #tpu.dot_dimension_numbers<[2], [2], [1], [1], [0, 0, 0, 1, 1, 1], [0], [0]>} : vector<2x16x32xbf16>, vector<2x16x32xbf16>, vector<2x16x16xf32> -> vector<2x16x16xf32>
    "tpu.trace_stop"() : () -> ()
    %92 = vector.broadcast %48 : vector<1x16x16xf32> to vector<2x16x16xf32>
    %93 = arith.addf %91, %92 : vector<2x16x16xf32>
    %cst_31 = arith.constant dense<0xFF800000> : vector<2x16xf32>
    %94 = vector.multi_reduction <maximumf>, %93, %cst_31 [2] : vector<2x16x16xf32> to vector<2x16xf32>
    %95 = vector.shape_cast %94 : vector<2x16xf32> to vector<2x16x1xf32>
    %96 = vector.broadcast %95 : vector<2x16x1xf32> to vector<2x16x16xf32>
    %97 = arith.subf %93, %96 : vector<2x16x16xf32>
    %98 = math.exp %97 : vector<2x16x16xf32>
    %cst_32 = arith.constant dense<0.000000e+00> : vector<2x16xf32>
    %99 = vector.multi_reduction <add>, %98, %cst_32 [2] : vector<2x16x16xf32> to vector<2x16xf32>
    %100 = vector.shape_cast %99 : vector<2x16xf32> to vector<2x16x1xf32>
    %101 = tpu.reciprocal %100 {approx = true} : vector<2x16x1xf32> -> vector<2x16x1xf32>
    %102 = vector.broadcast %101 : vector<2x16x1xf32> to vector<2x16x16xf32>
    %103 = arith.mulf %98, %102 : vector<2x16x16xf32>
    %104 = arith.truncf %103 : vector<2x16x16xf32> to vector<2x16x16xbf16>
    %105 = vector.extract_strided_slice %38 {offsets = [0, 0, 64], sizes = [2, 16, 32], strides = [1, 1, 1]} : vector<2x16x128xbf16> to vector<2x16x32xbf16>
    "tpu.trace_start"() <{level = 10 : i32, message = "bqk,bkd->bqd"}> : () -> ()
    %cst_33 = arith.constant dense<0.000000e+00> : vector<2x16x32xf32>
    %106 = tpu.matmul %104, %105, %cst_33 {dimension_numbers = #tpu.dot_dimension_numbers<[2], [1], [1], [2], [0, 0, 0, 1, 1, 2], [0], [0]>} : vector<2x16x16xbf16>, vector<2x16x32xbf16>, vector<2x16x32xf32> -> vector<2x16x32xf32>
    "tpu.trace_stop"() : () -> ()
    %107 = arith.truncf %106 : vector<2x16x32xf32> to vector<2x16x32xbf16>
    %c0_34 = arith.constant 0 : index
    %c0_35 = arith.constant 0 : index
    %c64 = arith.constant 64 : index
    %108 = vector.load %arg15[%c0_34, %c0_35, %c64] : memref<2x16x128xbf16, #tpu.memory_space<vmem>>, vector<2x16x32xbf16>
    tpu.vector_store %arg15[%c0_34, %c0_35, %c64], %107 {strides = array<i32>} : memref<2x16x128xbf16, #tpu.memory_space<vmem>>, vector<2x16x32xbf16>,
    %109 = vector.extract_strided_slice %34 {offsets = [0, 0, 96], sizes = [2, 16, 32], strides = [1, 1, 1]} : vector<2x16x128xbf16> to vector<2x16x32xbf16>
    %110 = vector.extract_strided_slice %36 {offsets = [0, 0, 96], sizes = [2, 16, 32], strides = [1, 1, 1]} : vector<2x16x128xbf16> to vector<2x16x32xbf16>
    "tpu.trace_start"() <{level = 10 : i32, message = "bqd,bkd->bqk"}> : () -> ()
    %cst_36 = arith.constant dense<0.000000e+00> : vector<2x16x16xf32>
    %111 = tpu.matmul %109, %110, %cst_36 {dimension_numbers = #tpu.dot_dimension_numbers<[2], [2], [1], [1], [0, 0, 0, 1, 1, 1], [0], [0]>} : vector<2x16x32xbf16>, vector<2x16x32xbf16>, vector<2x16x16xf32> -> vector<2x16x16xf32>
    "tpu.trace_stop"() : () -> ()
    %112 = vector.broadcast %48 : vector<1x16x16xf32> to vector<2x16x16xf32>
    %113 = arith.addf %111, %112 : vector<2x16x16xf32>
    %cst_37 = arith.constant dense<0xFF800000> : vector<2x16xf32>
    %114 = vector.multi_reduction <maximumf>, %113, %cst_37 [2] : vector<2x16x16xf32> to vector<2x16xf32>
    %115 = vector.shape_cast %114 : vector<2x16xf32> to vector<2x16x1xf32>
    %116 = vector.broadcast %115 : vector<2x16x1xf32> to vector<2x16x16xf32>
    %117 = arith.subf %113, %116 : vector<2x16x16xf32>
    %118 = math.exp %117 : vector<2x16x16xf32>
    %cst_38 = arith.constant dense<0.000000e+00> : vector<2x16xf32>
    %119 = vector.multi_reduction <add>, %118, %cst_38 [2] : vector<2x16x16xf32> to vector<2x16xf32>
    %120 = vector.shape_cast %119 : vector<2x16xf32> to vector<2x16x1xf32>
    %121 = tpu.reciprocal %120 {approx = true} : vector<2x16x1xf32> -> vector<2x16x1xf32>
    %122 = vector.broadcast %121 : vector<2x16x1xf32> to vector<2x16x16xf32>
    %123 = arith.mulf %118, %122 : vector<2x16x16xf32>
    %124 = arith.truncf %123 : vector<2x16x16xf32> to vector<2x16x16xbf16>
    %125 = vector.extract_strided_slice %38 {offsets = [0, 0, 96], sizes = [2, 16, 32], strides = [1, 1, 1]} : vector<2x16x128xbf16> to vector<2x16x32xbf16>
    "tpu.trace_start"() <{level = 10 : i32, message = "bqk,bkd->bqd"}> : () -> ()
    %cst_39 = arith.constant dense<0.000000e+00> : vector<2x16x32xf32>
    %126 = tpu.matmul %124, %125, %cst_39 {dimension_numbers = #tpu.dot_dimension_numbers<[2], [1], [1], [2], [0, 0, 0, 1, 1, 2], [0], [0]>} : vector<2x16x16xbf16>, vector<2x16x32xbf16>, vector<2x16x32xf32> -> vector<2x16x32xf32>
    "tpu.trace_stop"() : () -> ()
    %127 = arith.truncf %126 : vector<2x16x32xf32> to vector<2x16x32xbf16>
    %c0_40 = arith.constant 0 : index
    %c0_41 = arith.constant 0 : index
    %c96 = arith.constant 96 : index
    %128 = vector.load %arg15[%c0_40, %c0_41, %c96] : memref<2x16x128xbf16, #tpu.memory_space<vmem>>, vector<2x16x32xbf16>
    tpu.vector_store %arg15[%c0_40, %c0_41, %c96], %127 {strides = array<i32>} : memref<2x16x128xbf16, #tpu.memory_space<vmem>>, vector<2x16x32xbf16>,
    %c0_42 = arith.constant 0 : index
    %c0_43 = arith.constant 0 : index
    %c0_44 = arith.constant 0 : index
    %129 = vector.load %arg15[%c0_42, %c0_43, %c0_44] : memref<2x16x128xbf16, #tpu.memory_space<vmem>>, vector<2x16x128xbf16>
    %130 = vector.shape_cast %129 : vector<2x16x128xbf16> to vector<32x128xbf16>
    %c0_45 = arith.constant 0 : index
    %c0_46 = arith.constant 0 : index
    %131 = vector.load %arg6[%c0_45, %c0_46] : memref<128x128xbf16, #tpu.memory_space<vmem>>, vector<128x128xbf16>
    %cst_47 = arith.constant dense<0.000000e+00> : vector<32x128xf32>
    %132 = tpu.matmul %130, %131, %cst_47 {dimension_numbers = #tpu.dot_dimension_numbers<[1], [0], [0], [1], [0, 0, 1, 1], [], []>} : vector<32x128xbf16>, vector<128x128xbf16>, vector<32x128xf32> -> vector<32x128xf32>
    %c0_48 = arith.constant 0 : index
    %c0_49 = arith.constant 0 : index
    %133 = vector.load %arg7[%c0_48, %c0_49] : memref<1x128xf32, #tpu.memory_space<vmem>>, vector<1x128xf32>
    %134 = vector.broadcast %133 : vector<1x128xf32> to vector<32x128xf32>
    %135 = arith.addf %132, %134 : vector<32x128xf32>
    %136 = arith.addf %1, %135 : vector<32x128xf32>
    %c0_50 = arith.constant 0 : index
    %c0_51 = arith.constant 0 : index
    %137 = vector.load %arg8[%c0_50, %c0_51] : memref<1x128xf32, #tpu.memory_space<vmem>>, vector<1x128xf32>
    %c0_52 = arith.constant 0 : index
    %c0_53 = arith.constant 0 : index
    %138 = vector.load %arg9[%c0_52, %c0_53] : memref<1x128xf32, #tpu.memory_space<vmem>>, vector<1x128xf32>
    %cst_54 = arith.constant dense<0.000000e+00> : vector<32xf32>
    %139 = vector.multi_reduction <add>, %136, %cst_54 [1] : vector<32x128xf32> to vector<32xf32>
    %140 = vector.shape_cast %139 : vector<32xf32> to vector<32x1xf32>
    %cst_55 = arith.constant 1.280000e+02 : f32
    %141 = vector.broadcast %cst_55 : f32 to vector<32x1xf32>
    %142 = arith.divf %140, %141 : vector<32x1xf32>
    %143 = vector.broadcast %142 : vector<32x1xf32> to vector<32x128xf32>
    %144 = arith.subf %136, %143 : vector<32x128xf32>
    %145 = arith.mulf %144, %144 : vector<32x128xf32>
    %cst_56 = arith.constant dense<0.000000e+00> : vector<32xf32>
    %146 = vector.multi_reduction <add>, %145, %cst_56 [1] : vector<32x128xf32> to vector<32xf32>
    %147 = vector.shape_cast %146 : vector<32xf32> to vector<32x1xf32>
    %cst_57 = arith.constant 1.280000e+02 : f32
    %148 = vector.broadcast %cst_57 : f32 to vector<32x1xf32>
    %149 = arith.divf %147, %148 : vector<32x1xf32>
    %150 = vector.broadcast %142 : vector<32x1xf32> to vector<32x128xf32>
    %151 = arith.subf %136, %150 : vector<32x128xf32>
    %cst_58 = arith.constant 9.99999974E-6 : f32
    %152 = vector.broadcast %cst_58 : f32 to vector<32x1xf32>
    %153 = arith.addf %149, %152 : vector<32x1xf32>
    %154 = math.rsqrt %153 : vector<32x1xf32>
    %155 = vector.broadcast %154 : vector<32x1xf32> to vector<32x128xf32>
    %156 = arith.mulf %151, %155 : vector<32x128xf32>
    %157 = vector.broadcast %137 : vector<1x128xf32> to vector<32x128xf32>
    %158 = arith.mulf %156, %157 : vector<32x128xf32>
    %159 = vector.broadcast %138 : vector<1x128xf32> to vector<32x128xf32>
    %160 = arith.addf %158, %159 : vector<32x128xf32>
    %161 = arith.truncf %160 : vector<32x128xf32> to vector<32x128xbf16>
    %c0_59 = arith.constant 0 : index
    %c0_60 = arith.constant 0 : index
    %162 = vector.load %arg10[%c0_59, %c0_60] : memref<128x512xbf16, #tpu.memory_space<vmem>>, vector<128x512xbf16>
    %cst_61 = arith.constant dense<0.000000e+00> : vector<32x512xf32>
    %163 = tpu.matmul %161, %162, %cst_61 {dimension_numbers = #tpu.dot_dimension_numbers<[1], [0], [0], [1], [0, 0, 1, 1], [], []>} : vector<32x128xbf16>, vector<128x512xbf16>, vector<32x512xf32> -> vector<32x512xf32>
    %c0_62 = arith.constant 0 : index
    %c0_63 = arith.constant 0 : index
    %164 = vector.load %arg11[%c0_62, %c0_63] : memref<1x512xf32, #tpu.memory_space<vmem>>, vector<1x512xf32>
    %165 = vector.broadcast %164 : vector<1x512xf32> to vector<32x512xf32>
    %166 = arith.addf %163, %165 : vector<32x512xf32>
    %cst_64 = arith.constant 1.702000e+00 : f32
    %167 = vector.broadcast %cst_64 : f32 to vector<32x512xf32>
    %168 = arith.mulf %167, %166 : vector<32x512xf32>
    %169 = arith.negf %168 : vector<32x512xf32>
    %170 = math.exp %169 : vector<32x512xf32>
    %cst_65 = arith.constant 1.000000e+00 : f32
    %171 = vector.broadcast %cst_65 : f32 to vector<32x512xf32>
    %172 = arith.addf %171, %170 : vector<32x512xf32>
    %173 = arith.divf %171, %172 : vector<32x512xf32>
    %174 = arith.mulf %166, %173 : vector<32x512xf32>
    %175 = arith.truncf %174 : vector<32x512xf32> to vector<32x512xbf16>
    %c0_66 = arith.constant 0 : index
    %c0_67 = arith.constant 0 : index
    %176 = vector.load %arg12[%c0_66, %c0_67] : memref<512x128xbf16, #tpu.memory_space<vmem>>, vector<512x128xbf16>
    %cst_68 = arith.constant dense<0.000000e+00> : vector<32x128xf32>
    %177 = tpu.matmul %175, %176, %cst_68 {dimension_numbers = #tpu.dot_dimension_numbers<[1], [0], [0], [1], [0, 0, 1, 1], [], []>} : vector<32x512xbf16>, vector<512x128xbf16>, vector<32x128xf32> -> vector<32x128xf32>
    %c0_69 = arith.constant 0 : index
    %c0_70 = arith.constant 0 : index
    %178 = vector.load %arg13[%c0_69, %c0_70] : memref<1x128xf32, #tpu.memory_space<vmem>>, vector<1x128xf32>
    %179 = vector.broadcast %178 : vector<1x128xf32> to vector<32x128xf32>
    %180 = arith.addf %177, %179 : vector<32x128xf32>
    %181 = arith.addf %136, %180 : vector<32x128xf32>
    %182 = vector.shape_cast %181 : vector<32x128xf32> to vector<2x16x128xf32>
    %c0_71 = arith.constant 0 : index
    %c0_72 = arith.constant 0 : index
    %c0_73 = arith.constant 0 : index
    %183 = vector.load %arg14[%c0_71, %c0_72, %c0_73] : memref<2x16x128xf32, #tpu.memory_space<vmem>>, vector<2x16x128xf32>
    tpu.vector_store %arg14[%c0_71, %c0_72, %c0_73], %182 {strides = array<i32>} : memref<2x16x128xf32, #tpu.memory_space<vmem>>, vector<2x16x128xf32>,
    return
  }
  func.func @transform_0(%arg0: i32) -> (i32, i32, i32) {
    %c0_i32 = arith.constant 0 : i32
    %c0_i32_0 = arith.constant 0 : i32
    %c0_i32_1 = arith.constant 0 : i32
    return %arg0, %c0_i32, %c0_i32_0 : i32, i32, i32
  }
  func.func @transform_1(%arg0: i32) -> (i32, i32) {
    %c0_i32 = arith.constant 0 : i32
    %c0_i32_0 = arith.constant 0 : i32
    %c0_i32_1 = arith.constant 0 : i32
    return %c0_i32, %c0_i32_0 : i32, i32
  }
  func.func @transform_2(%arg0: i32) -> (i32, i32) {
    %c0_i32 = arith.constant 0 : i32
    %c0_i32_0 = arith.constant 0 : i32
    %c0_i32_1 = arith.constant 0 : i32
    return %c0_i32, %c0_i32_0 : i32, i32
  }
  func.func @transform_3(%arg0: i32) -> (i32, i32) {
    %c0_i32 = arith.constant 0 : i32
    %c0_i32_0 = arith.constant 0 : i32
    %c0_i32_1 = arith.constant 0 : i32
    return %c0_i32, %c0_i32_0 : i32, i32
  }
  func.func @transform_4(%arg0: i32) -> (i32, i32) {
    %c0_i32 = arith.constant 0 : i32
    %c0_i32_0 = arith.constant 0 : i32
    %c0_i32_1 = arith.constant 0 : i32
    return %c0_i32, %c0_i32_0 : i32, i32
  }
  func.func @transform_5(%arg0: i32) -> (i32, i32) {
    %c0_i32 = arith.constant 0 : i32
    %c0_i32_0 = arith.constant 0 : i32
    %c0_i32_1 = arith.constant 0 : i32
    return %c0_i32, %c0_i32_0 : i32, i32
  }
  func.func @transform_6(%arg0: i32) -> (i32, i32) {
    %c0_i32 = arith.constant 0 : i32
    %c0_i32_0 = arith.constant 0 : i32
    %c0_i32_1 = arith.constant 0 : i32
    return %c0_i32, %c0_i32_0 : i32, i32
  }
  func.func @transform_7(%arg0: i32) -> (i32, i32) {
    %c0_i32 = arith.constant 0 : i32
    %c0_i32_0 = arith.constant 0 : i32
    %c0_i32_1 = arith.constant 0 : i32
    return %c0_i32, %c0_i32_0 : i32, i32
  }
  func.func @transform_8(%arg0: i32) -> (i32, i32) {
    %c0_i32 = arith.constant 0 : i32
    %c0_i32_0 = arith.constant 0 : i32
    %c0_i32_1 = arith.constant 0 : i32
    return %c0_i32, %c0_i32_0 : i32, i32
  }
  func.func @transform_9(%arg0: i32) -> (i32, i32) {
    %c0_i32 = arith.constant 0 : i32
    %c0_i32_0 = arith.constant 0 : i32
    %c0_i32_1 = arith.constant 0 : i32
    return %c0_i32, %c0_i32_0 : i32, i32
  }
  func.func @transform_10(%arg0: i32) -> (i32, i32) {
    %c0_i32 = arith.constant 0 : i32
    %c0_i32_0 = arith.constant 0 : i32
    %c0_i32_1 = arith.constant 0 : i32
    return %c0_i32, %c0_i32_0 : i32, i32
  }
  func.func @transform_11(%arg0: i32) -> (i32, i32) {
    %c0_i32 = arith.constant 0 : i32
    %c0_i32_0 = arith.constant 0 : i32
    %c0_i32_1 = arith.constant 0 : i32
    return %c0_i32, %c0_i32_0 : i32, i32
  }
  func.func @transform_12(%arg0: i32) -> (i32, i32) {
    %c0_i32 = arith.constant 0 : i32
    %c0_i32_0 = arith.constant 0 : i32
    %c0_i32_1 = arith.constant 0 : i32
    return %c0_i32, %c0_i32_0 : i32, i32
  }
  func.func @transform_13(%arg0: i32) -> (i32, i32, i32) {
    %c0_i32 = arith.constant 0 : i32
    %c0_i32_0 = arith.constant 0 : i32
    %c0_i32_1 = arith.constant 0 : i32
    return %arg0, %c0_i32, %c0_i32_0 : i32, i32, i32
  }
}

</mosaic_0001>

<bundles_post_ra>
// kernel: tpu_custom_call.1
= control target key start
LH: loop header
LB: loop body
LE: loop exit
PB: predicated region body
PF: predicated region fallthrough
CT: control target
= control target key end

     0   :  { %s4990_s0 = inlined_call_operand.hbm [shape: f32[4,16,128], index: 0, kind: input, shape index: {}]   ;;  %s4991_s1 = inlined_call_operand.hbm [shape: f32[1,128], index: 1, kind: input, shape index: {}]   ;;  %s4992_s2 = inlined_call_operand.hbm [shape: f32[1,128], index: 2, kind: input, shape index: {}]   ;;  %s4993_s3 = inlined_call_operand.hbm [shape: bf16[128,384], index: 3, kind: input, shape index: {}]   ;;  %s4994_s4 = inlined_call_operand.vmem [shape: f32[1,384], index: 4, kind: input, shape index: {}]   ;;  %s4995_s5 = inlined_call_operand.hbm [shape: bf16[128,128], index: 5, kind: input, shape index: {}]   ;;  %s4996_s6 = inlined_call_operand.vmem [shape: f32[1,128], index: 6, kind: input, shape index: {}]   ;;  %s4997_s7 = inlined_call_operand.vmem [shape: f32[1,128], index: 7, kind: input, shape index: {}]   ;;  %s4998_s8 = inlined_call_operand.vmem [shape: f32[1,128], index: 8, kind: input, shape index: {}]   ;;  %s4999_s9 = inlined_call_operand.hbm [shape: bf16[128,512], index: 9, kind: input, shape index: {}]   ;;  %s5000_s10 = inlined_call_operand.vmem [shape: f32[1,512], index: 10, kind: input, shape index: {}]   ;;  %s5001_s11 = inlined_call_operand.hbm [shape: bf16[512,128], index: 11, kind: input, shape index: {}]   ;;  %s5002_s12 = inlined_call_operand.vmem [shape: f32[1,128], index: 12, kind: input, shape index: {}]   ;;  %s5003_s13 = inlined_call_operand.hbm [shape: f32[4,16,128], index: 13, kind: output, shape index: {}]  }
   0x1   :  { %5008 = sst [smem:[#allocation21_spill]] %s4991_s1 }
   0x2   :  { %5009 = sst [smem:[#allocation22_spill]] %s4993_s3 }
   0x3   :  { %5010 = sst [smem:[#allocation23_spill]] %s4997_s7 }
   0x4   :  { %5011 = sst [smem:[#allocation24_spill]] %s4998_s8 }
   0x5   :  { %5012 = sst [smem:[#allocation25_spill]] %s5000_s10 }
   0x6   :  { %5013 = sst [smem:[#allocation26_spill]] %s5002_s12 }
   0x7   :  { %5014 = sst [smem:[#allocation27_spill]] %s5003_s13 }
   0x8   :  { %18 = vsyncpa [#allocation4], 0 }
   0x9   :  { %20 = vsyncpa [#allocation4 + $0x1], 0 }
   0xa   :  { %21 = vsyncpa [#allocation7], 0 }
   0xb   :  { %22 = vsyncpa [#allocation10], 0 }
   0xc   :  { %23 = vsyncpa [#allocation13], 0 }
   0xd   :  { %24 = vsyncpa [#allocation5], 0 }
   0xe   :  { %26 = vsyncpa [#allocation5 + $0x1], 0  ;;  %s4258_s25 = smov 0   ;;  %s4260_s26 = smov 0  }
   0xf   :  { %s4262_s27 = smov 0   ;;  %s4264_s28 = smov 0  }
  0x10 LB: > { %s4164_s29 = smov [#allocation6]   ;;  %s4279_s14 = sadd.s32 4294967295, %s4162_s28   ;;  %s4162_s28 = sphi %s4264_s28, %s5044_s28   ;;  %s4158_s27 = sphi %s4262_s27, %s5043_s27   ;;  %s4154_s26 = sphi %s4260_s26, %s5042_s26   ;;  %s4150_s25 = sphi %s4258_s25, %s5041_s25  }
  0x11   : > { %s354_s30 = sshll.u32 %s4164_s29, 4  ;;  %p3086_p0 = scmp.ge.s32.totalorder %s4162_s28, 1  ;;  %s4284_s30 = int_to_ptr.vmem [resolvable:$true] %s354_s30 }
  0x12   : > { %p5005_p1 = scmp.eq.s32.totalorder %s4279_s14, 0  ;;  %p341_p2 = scmp.lt.s32.totalorder %s4162_s28, 3 }
  0x13   : > { %s4165_s16 = smov [#allocation9]   ;;  %s4166_s19 = smov [#allocation12]  }
  0x14   : > { %p4286_p3 = pnand %p3086_p0, %p341_p2  ;;  %s375_s17 = sshll.u32 %s4165_s16, 4  ;;  %s4293_s17 = int_to_ptr.vmem [resolvable:$true] %s375_s17 }
  0x15   : > { %s413_s20 = sshll.u32 %s4166_s19, 4  ;;  %s5017_s1 = sld [smem:[#allocation21_spill]]  ;;  %s4301_s20 = int_to_ptr.vmem [resolvable:$true] %s413_s20 }
  0x16   : > { %s5015_s15 = scalar_select %p4286_p3, 1, 0 }
  0x17   : > { %p3523_p5 = pneg %p4286_p3 }
  0x19   : > { %p4297_p6 = pnand %p3523_p5, %p5005_p1 }
  0x1b   : > { %s3886_s23 = scalar_lea.hbm %s5017_s1, 16  ;;  %p4311_p8 = pneg %p4297_p6 }
  0x1c   : > { %p3887_p7 = scmp.ne.s32.totalorder %s5017_s1, %s3886_s23  ;;  %p3893_p11 = scmp.lt.u32.totalorder %s3886_s23, %s5017_s1 }
  0x1e   : > { %p3889_p9 = pnand %p4311_p8, %p3887_p7 }
  0x20   : > { %p3890_p10 = pneg %p3889_p9 }
  0x22   : > { %p3895_p12 = pnand %p3893_p11, %p3890_p10 }
  0x24   : > { %3898 = shalt.err (!%p3895_p12)
}
  0x25   : > { %s3899_s21 = scalar_lea.vmem %s4284_s30, 16  ;;  %s3906_s22 = scalar_lea.vmem %s4284_s30, 32 }
  0x26   : > { %p3900_p13 = scmp.ne.s32.totalorder %s4284_s30, %s3899_s21  ;;  %p3907_p5 = scmp.lt.s32.totalorder %s4284_s30, %s4284_s30 }
  0x27   : > { %p3908_p7 = scmp.lt.s32.totalorder %s3906_s22, %s3899_s21 }
  0x28   : > { %p3902_p0 = pnand %p3900_p13, %p4311_p8 }
  0x29   : > { %p3909_p9 = por %p3908_p7, %p3907_p5 }
  0x2a   : > { %p3903_p2 = pneg %p3902_p0 }
  0x2c   : > { %p3910_p4 = pnand %p3909_p9, %p3903_p2 }
  0x2e   : > { %3913 = shalt.err (!%p3910_p4)
}
  0x2f   : > { %3526 = dma.hbm_to_vmem [thread:$0]  (!%p4297_p6), %s5017_s1, 16, %s4284_s30, [#allocation7]  }
  0x30   : > { %s5019_s3 = sld [smem:[#allocation22_spill]] }
  0x36   : > { %s3914_s19 = scalar_lea.hbm %s5019_s3, 3072 }
  0x37   : > { %p3915_p10 = scmp.ne.s32.totalorder %s5019_s3, %s3914_s19  ;;  %p3921_p4 = scmp.lt.u32.totalorder %s3914_s19, %s5019_s3 }
  0x39   : > { %p3917_p11 = pnand %p3915_p10, %p4311_p8 }
  0x3b   : > { %p3918_p12 = pneg %p3917_p11 }
  0x3d   : > { %p3923_p13 = pnand %p3921_p4, %p3918_p12 }
  0x3f   : > { %3926 = shalt.err (!%p3923_p13)
}
  0x40   : > { %s3927_s30 = scalar_lea.vmem %s4293_s17, 3072  ;;  %p3935_p7 = scmp.lt.s32.totalorder %s4293_s17, %s4293_s17 }
  0x41   : > { %p3928_p0 = scmp.ne.s32.totalorder %s4293_s17, %s3927_s30  ;;  %p3936_p9 = scmp.lt.s32.totalorder %s3927_s30, %s3927_s30 }
  0x43   : > { %p3930_p2 = pnand %p3928_p0, %p4311_p8  ;;  %p3937_p10 = por %p3936_p9, %p3935_p7 }
  0x45   : > { %p3931_p5 = pneg %p3930_p2 }
  0x47   : > { %p3938_p11 = pnand %p3937_p10, %p3931_p5 }
  0x49   : > { %3941 = shalt.err (!%p3938_p11)
}
  0x4a   : > { %s4167_s10 = smov 192   ;;  %s4168_s12 = smov 12  }
  0x4b   : > { %3532 = dma.hbm_to_vmem [thread:$0]  (!%p4297_p6), %s5019_s3, 3072, %s4293_s17, [#allocation10], %s4167_s10, %s4167_s10, %s4168_s12  }
  0x4c   : > { %s3942_s19 = scalar_lea.hbm %s4999_s9, 4096 }
  0x4d   : > { %p3943_p12 = scmp.ne.s32.totalorder %s4999_s9, %s3942_s19  ;;  %p3949_p0 = scmp.lt.u32.totalorder %s3942_s19, %s4999_s9 }
  0x4f   : > { %p3945_p4 = pnand %p3943_p12, %p4311_p8 }
  0x51   : > { %p3946_p13 = pneg %p3945_p4 }
  0x53   : > { %p3951_p2 = pnand %p3949_p0, %p3946_p13 }
  0x55   : > { %3954 = shalt.err (!%p3951_p2)
}
  0x56   : > { %s3955_s17 = scalar_lea.vmem %s4301_s20, 4096  ;;  %p3963_p10 = scmp.lt.s32.totalorder %s4301_s20, %s4301_s20 }
  0x57   : > { %p3956_p5 = scmp.ne.s32.totalorder %s4301_s20, %s3955_s17  ;;  %p3964_p11 = scmp.lt.s32.totalorder %s3955_s17, %s3955_s17 }
  0x59   : > { %p3958_p7 = pnand %p3956_p5, %p4311_p8  ;;  %p3965_p12 = por %p3964_p11, %p3963_p10 }
  0x5b   : > { %p3959_p9 = pneg %p3958_p7 }
  0x5d   : > { %p3966_p4 = pnand %p3965_p12, %p3959_p9 }
  0x5f   : > { %3969 = shalt.err (!%p3966_p4)
}
  0x60   : > { %s4169_s10 = smov 256   ;;  %s4170_s1 = smov 16  }
  0x61   : > { %3538 = dma.hbm_to_vmem [thread:$0]  (!%p4297_p6), %s4999_s9, 4096, %s4301_s20, [#allocation13], %s4169_s10, %s4169_s10, %s4170_s1  }
  0x62   : > { %s4171_s23 = smov [#allocation8]   ;;  %s4172_s29 = smov [#allocation11]  }
  0x63   : > { %s365_s24 = sshll.u32 %s4171_s23, 4  ;;  %s391_s19 = sshll.u32 %s4172_s29, 4  ;;  %s366_s24 = int_to_ptr.vmem [resolvable:$true] %s365_s24  ;;  %s392_s19 = int_to_ptr.vmem [resolvable:$true] %s391_s19 }
  0x64   : > { %s3970_s30 = scalar_lea.hbm %s4992_s2, 16 }
  0x65   : > { %p3971_p13 = scmp.ne.s32.totalorder %s4992_s2, %s3970_s30  ;;  %p3977_p5 = scmp.lt.u32.totalorder %s3970_s30, %s4992_s2 }
  0x67   : > { %p3973_p0 = pnand %p3971_p13, %p4311_p8 }
  0x69   : > { %p3974_p2 = pneg %p3973_p0 }
  0x6b   : > { %p3979_p7 = pnand %p3977_p5, %p3974_p2 }
  0x6d   : > { %3982 = shalt.err (!%p3979_p7)
}
  0x6e   : > { %s3983_s20 = scalar_lea.vmem %s366_s24, 16  ;;  %s3990_s10 = scalar_lea.vmem %s366_s24, 32 }
  0x6f   : > { %p3984_p9 = scmp.ne.s32.totalorder %s366_s24, %s3983_s20  ;;  %p3991_p12 = scmp.lt.s32.totalorder %s366_s24, %s366_s24 }
  0x70   : > { %p3992_p4 = scmp.lt.s32.totalorder %s3990_s10, %s3983_s20 }
  0x71   : > { %p3986_p10 = pnand %p3984_p9, %p4311_p8 }
  0x72   : > { %p3993_p1 = por %p3992_p4, %p3991_p12 }
  0x73   : > { %p3987_p11 = pneg %p3986_p10 }
  0x75   : > { %p3994_p3 = pnand %p3993_p1, %p3987_p11 }
  0x77   : > { %3997 = shalt.err (!%p3994_p3)
}
  0x78   : > { %3529 = dma.hbm_to_vmem [thread:$0]  (!%p4297_p6), %s4992_s2, 16, %s366_s24, [#allocation7]  }
  0x79   : > { %s3998_s12 = scalar_lea.hbm %s4995_s5, 1024 }
  0x7a   : > { %p3999_p13 = scmp.ne.s32.totalorder %s4995_s5, %s3998_s12  ;;  %p4005_p3 = scmp.lt.u32.totalorder %s3998_s12, %s4995_s5 }
  0x7c   : > { %p4001_p0 = pnand %p3999_p13, %p4311_p8 }
  0x7e   : > { %p4002_p1 = pneg %p4001_p0 }
  0x80   : > { %p4007_p2 = pnand %p4005_p3, %p4002_p1 }
  0x82   : > { %4010 = shalt.err (!%p4007_p2)
}
  0x83   : > { %s4011_s22 = scalar_lea.vmem %s392_s19, 1024  ;;  %p4019_p10 = scmp.lt.s32.totalorder %s392_s19, %s392_s19 }
  0x84   : > { %p4012_p5 = scmp.ne.s32.totalorder %s392_s19, %s4011_s22  ;;  %p4020_p11 = scmp.lt.s32.totalorder %s4011_s22, %s4011_s22 }
  0x86   : > { %p4014_p7 = pnand %p4012_p5, %p4311_p8  ;;  %p4021_p12 = por %p4020_p11, %p4019_p10 }
  0x88   : > { %p4015_p9 = pneg %p4014_p7 }
  0x8a   : > { %p4022_p4 = pnand %p4021_p12, %p4015_p9 }
  0x8c   : > { %4025 = shalt.err (!%p4022_p4)
}
  0x8d   : > { %s4173_s24 = smov 64   ;;  %s4174_s30 = smov 4  }
  0x8e   : > { %3535 = dma.hbm_to_vmem [thread:$0]  (!%p4297_p6), %s4995_s5, 1024, %s392_s19, [#allocation10], %s4173_s24, %s4173_s24, %s4174_s30  }
  0x8f   : > { %s4175_s10 = smov [#allocation14]   ;;  %s4026_s8 = scalar_lea.hbm %s5001_s11, 4096 }
  0x90   : > { %s429_s3 = sshll.u32 %s4175_s10, 4  ;;  %p4027_p13 = scmp.ne.s32.totalorder %s5001_s11, %s4026_s8  ;;  %s430_s3 = int_to_ptr.vmem [resolvable:$true] %s429_s3 }
  0x91   : > { %p4033_p3 = scmp.lt.u32.totalorder %s4026_s8, %s5001_s11 }
  0x92   : > { %p4029_p0 = pnand %p4027_p13, %p4311_p8 }
  0x94   : > { %p4030_p1 = pneg %p4029_p0 }
  0x96   : > { %p4035_p2 = pnand %p4033_p3, %p4030_p1 }
  0x98   : > { %4038 = shalt.err (!%p4035_p2)
}
  0x99   : > { %s4039_s19 = scalar_lea.vmem %s430_s3, 4096  ;;  %p4047_p10 = scmp.lt.s32.totalorder %s430_s3, %s430_s3 }
  0x9a   : > { %p4040_p5 = scmp.ne.s32.totalorder %s430_s3, %s4039_s19  ;;  %p4048_p11 = scmp.lt.s32.totalorder %s4039_s19, %s4039_s19 }
  0x9c   : > { %p4042_p7 = pnand %p4040_p5, %p4311_p8  ;;  %p4049_p12 = por %p4048_p11, %p4047_p10 }
  0x9e   : > { %p4043_p9 = pneg %p4042_p7 }
  0xa0   : > { %p4050_p4 = pnand %p4049_p12, %p4043_p9 }
  0xa2   : > { %4053 = shalt.err (!%p4050_p4)
}
  0xa3   : > { %3541 = dma.hbm_to_vmem [thread:$0]  (!%p4297_p6), %s5001_s11, 4096, %s430_s3, [#allocation13], %s4173_s24, %s4173_s24, %s4174_s30  }
  0xa4   : > { %s3085_s16 = sadd.s32 4294967294, %s4162_s28   ;;  %s4435_s18 = sadd.s32 1, %s4162_s28  }
  0xa5   : > { %s36_s17 = ssub.s32 %s4162_s28, %s4435_s18  ;;  %s39_s20 = sadd.s32 1, %s4158_s27 }
  0xa6   : > { %p37_p8 = scmp.eq.s32.totalorder %s36_s17, 0  ;;  %p46_p13 = scmp.ne.s32.totalorder %s4158_s27, %s4154_s26 }
  0xa7   : > { %p47_p0 = scmp.eq.s32.totalorder %s4162_s28, 0  ;;  %p52_p1 = scmp.ne.s32.totalorder %s4154_s26, %s4150_s25 }
  0xa8   : > { %s4446_s10 = scalar_select %p37_p8, %s4158_s27, %s39_s20  }
  0xa9   : > { %p4448_p3 = por %p47_p0, %p46_p13  ;;  %p5021_p2 = scmp.eq.s32.totalorder %s4279_s14, 0 }
  0xaa   : > { %p328_p5 = scmp.eq.s32.totalorder %s4279_s14, 1  ;;  %p334_p7 = scmp.eq.s32.totalorder %s3085_s16, 1 }
  0xab   : > { %p4454_p6 = por %p5021_p2, %p52_p1  ;;  %p3556_p9 = scmp.lt.s32.totalorder %s4162_s28, 2 }
  0xac   : > { %s446_s30 = sand.u32 1, %s4158_s27   ;;  %p4461_p10 = por %p328_p5, %p46_p13 }
  0xad   : > { %p4465_p11 = por %p334_p7, %p52_p1  ;;  %s3094_s8 = sshll.u32 %s446_s30, 5 }
  0xae   : > { %s5023_s3 = scalar_select %p4461_p10, 1, 0 }
  0xaf   : > { %s5024_s7 = scalar_select %p4465_p11, 1, 0 }
  0xb0   : > { %s3248_s12 = sshll.u32 %s4162_s28, 9  ;;  %s450_s19 = scalar_lea.vmem [#allocation3], %s3094_s8 }
  0xb1   : > { %s4473_s29 = scalar_lea.hbm %s4990_s0, %s3248_s12  ;;  %s458_s21 = sshll.u32 %s450_s19, 4  ;;  %s4475_s21 = int_to_ptr.vmem [resolvable:$true] %s458_s21 }
  0xb2   : > { %p4479_p12 = pnand %p3556_p9, %p4448_p3  ;;  %s4483_s16 = scalar_lea.sflag [#allocation4], %s446_s30 }
  0xb3   : > { %s4054_s17 = scalar_lea.hbm %s4473_s29, 512  ;;  %s4059_s1 = scalar_lea.hbm %s4990_s0, 1024 }
  0xb4   : > { %p4055_p4 = scmp.ne.s32.totalorder %s4473_s29, %s4054_s17  ;;  %p4056_p8 = pneg %p4479_p12 }
  0xb5   : > { %p4060_p1 = scmp.lt.u32.totalorder %s4473_s29, %s4990_s0  ;;  %p4061_p3 = scmp.lt.u32.totalorder %s4059_s1, %s4054_s17 }
  0xb6   : > { %p4057_p13 = pnand %p4056_p8, %p4055_p4  ;;  %p4063_p5 = scmp.lt.u32.totalorder %s4054_s17, %s4473_s29 }
  0xb7   : > { %p4062_p2 = por %p4061_p3, %p4060_p1 }
  0xb8   : > { %p4058_p0 = pneg %p4057_p13 }
  0xb9   : > { %p4064_p7 = por %p4063_p5, %p4062_p2 }
  0xbb   : > { %p4065_p9 = pnand %p4064_p7, %p4058_p0 }
  0xbd   : > { %4068 = shalt.err (!%p4065_p9)
}
  0xbe   : > { %s4069_s30 = scalar_lea.vmem %s4475_s21, 512  ;;  %s4176_s23 = smov [#allocation3]  }
  0xbf   : > { %p4070_p4 = scmp.ne.s32.totalorder %s4475_s21, %s4069_s30  ;;  %s4074_s19 = sshll.u32 %s4176_s23, 4  ;;  %s4075_s19 = int_to_ptr.vmem [resolvable:$false] %s4074_s19 }
  0xc0   : > { %s4076_s20 = scalar_lea.vmem %s4075_s19, 1024  ;;  %p4077_p10 = scmp.lt.s32.totalorder %s4475_s21, %s4075_s19 }
  0xc1   : > { %p4072_p13 = pnand %p4070_p4, %p4056_p8  ;;  %p4078_p1 = scmp.lt.s32.totalorder %s4076_s20, %s4069_s30 }
  0xc3   : > { %p4073_p11 = pneg %p4072_p13  ;;  %p4079_p3 = por %p4078_p1, %p4077_p10 }
  0xc5   : > { %p4080_p2 = pnand %p4079_p3, %p4073_p11 }
  0xc7   : > { %4083 = shalt.err (!%p4080_p2)
}
  0xc8   : > { %s4177_s17 = smov 128   ;;  %s4178_s8 = smov 8  }
  0xc9   : > { %3545 = dma.hbm_to_vmem [thread:$0]  (!%p4479_p12), %s4473_s29, 512, %s4475_s21, %s4483_s16, %s4177_s17, %s4177_s17, %s4178_s8  }
  0xca   : > { %p5026_p8 = scmp.ne.s32.totalorder %s5015_s15, 0 }
  0xcb   : > { %s4514_s1 = sand.u32 (!%p5026_p8), 1, %s4154_s26  }
  0xcc   : > { %470 = sbr.rel (%p5026_p8) target bundleno = 4408 (0x1138), region = 72  ;;  %s3099_s12 = sshll.u32 (!%p5026_p8), %s4514_s1, 5 }
  0xcd   : > { %s473_s13 = scalar_lea.sflag (!%p5026_p8), [#allocation4], %s4514_s1  ;;  %s4520_s30 = scalar_lea.vmem (!%p5026_p8), [#allocation3], %s3099_s12 }
  0xd3   : > { %4129 = dma.done.wait (%p4454_p6), %s473_s13, 512  }
  0xd4   : > { %4131 = vsyncadd (%p4454_p6), %s473_s13, 4294966784  ;;  %p5027_p10 = scmp.eq.s32.totalorder %s4279_s14, 0 }
  0xd6   : > { %4133 = dma.done.wait (%p5027_p10), [#allocation7], 32   ;;  %p5028_p11 = pmov %p5027_p10 }
  0xd7   : > { %p5029_p12 = pmov %p5027_p10 }
  0xd8   : > { %4135 = vsyncadd (%p5028_p11), [#allocation7], 4294967264 }
  0xd9   : > { %4137 = dma.done.wait (%p5029_p12), [#allocation10], 4096   ;;  %p5030_p0 = pmov %p5027_p10 }
  0xdb   : > { %4139 = vsyncadd (%p5030_p0), [#allocation10], 4294963200  ;;  %p5031_p5 = pmov %p5030_p0 }
  0xdc   : > { %p5032_p7 = pmov %p5030_p0 }
  0xdd   : > { %4141 = dma.done.wait (%p5031_p5), [#allocation13], 8192  }
  0xde   : > { %4143 = vsyncadd (%p5032_p7), [#allocation13], 4294959104  ;;  %v546_v0 = vld [vmem:[%s4520_s30] sm:$0xff]  ;;  %v548_v1 = vld [vmem:[%s4520_s30 + $0x10] sm:$0xff]  ;;  %v4179_v39 = vmov 0   ;;  %vm4181_vm0 = vmmov 0  }
  0xdf   : > { %v547_v2 = vld [vmem:[%s4520_s30 + $0x8] sm:$0xff]  ;;  %552 = vadd.xlane.f32.xlu0 %v546_v0  ;;  %556 = vadd.xlane.f32.xlu1 %v548_v1  ;;  %v549_v3 = vld [vmem:[%s4520_s30 + $0x18] sm:$0xff]  ;;  %v3620_v5 = vld [vmem:[#allocation9] ss:$12 sps:$4 sm:$0xff]   ;;  %vm916_vm1 = vcmask 261120   ;;  %vm1011_vm7 = vcmask 130048  }
  0xe0   : > { %v3618_v4 = vld [vmem:[#allocation9 + $0x4] ss:$12 sps:$4 sm:$0xff]   ;;  %v3621_v6 = vld [vmem:[#allocation9 + $0x1c] ss:$12 sps:$4 sm:$0xff]   ;;  %v3625_v25 = vld [vmem:[#allocation9 + $0x34] ss:$12 sps:$4 sm:$0xff]   ;;  %828 = vmatprep.mubr.bf16.mxu0 %v4179_v39 }
  0xe1   : > { %v3623_v7 = vld [vmem:[#allocation9 + $0x8] ss:$12 sps:$4 sm:$0xff]   ;;  %796 = vmatprep.subr.bf16.mxu0 %v3618_v4  ;;  %v3624_v24 = vld [vmem:[#allocation9 + $0x18] ss:$12 sps:$4 sm:$0xff]   ;;  %v3627_v26 = vld [vmem:[#allocation9 + $0x20] ss:$12 sps:$4 sm:$0xff]  }
  0xe2   : > { %797 = vmatpush1.bf16.msra.mxu0 %v3620_v5  ;;  %3359 = vmatprep.subr.bf16.mxu1 %v3623_v7  ;;  %v3628_v27 = vld [vmem:[#allocation9 + $0x30] ss:$12 sps:$4 sm:$0xff]   ;;  %v3629_v28 = vld [vmem:[#allocation9 + $0x4c] ss:$12 sps:$4 sm:$0xff]   ;;  %v3632_v30 = vld [vmem:[#allocation9 + $0x48] ss:$12 sps:$4 sm:$0xff]  }
  0xe3   : > { %554 = vadd.xlane.f32.xlu0 %v547_v2  ;;  %558 = vadd.xlane.f32.xlu1 %v549_v3  ;;  %v3631_v29 = vld [vmem:[#allocation9 + $0x38] ss:$12 sps:$4 sm:$0xff]   ;;  %v3635_v32 = vld [vmem:[#allocation9 + $0x50] ss:$12 sps:$4 sm:$0xff]   ;;  %v3636_v33 = vld [vmem:[#allocation9 + $0x60] ss:$12 sps:$4 sm:$0xff]  }
  0xe4   : > { %798 = vmatprep.subr.bf16.mxu0 %v3621_v6  ;;  %3360 = vmatpush3.bf16.msra.mxu1 %v3623_v7  ;;  %v3633_v31 = vld [vmem:[#allocation9 + $0x64] ss:$12 sps:$4 sm:$0xff]   ;;  %v3637_v34 = vld [vmem:[#allocation9 + $0x7c] ss:$12 sps:$4 sm:$0xff]   ;;  %v3641_v37 = vld [vmem:[#allocation9 + $0x94] ss:$12 sps:$4 sm:$0xff]  }
  0xe5   : > { %3361 = vmatprep.subr.bf16.mxu1 %v3627_v26  ;;  %v3639_v35 = vld [vmem:[#allocation9 + $0x68] ss:$12 sps:$4 sm:$0xff]   ;;  %v3640_v36 = vld [vmem:[#allocation9 + $0x78] ss:$12 sps:$4 sm:$0xff]   ;;  %v3643_v38 = vld [vmem:[#allocation9 + $0x80] ss:$12 sps:$4 sm:$0xff]  }
  0xe6   : > { %799 = vmatpush1.bf16.msra.mxu0 %v3624_v24  ;;  %v3644_v40 = vld [vmem:[#allocation9 + $0x90] ss:$12 sps:$4 sm:$0xff]   ;;  %v3645_v41 = vld [vmem:[#allocation9 + $0xac] ss:$12 sps:$4 sm:$0xff]   ;;  %v3648_v43 = vld [vmem:[#allocation9 + $0xa8] ss:$12 sps:$4 sm:$0xff]  }
  0xe7   : > { %800 = vmatprep.subr.bf16.mxu0 %v3625_v25  ;;  %v3647_v42 = vld [vmem:[#allocation9 + $0x98] ss:$12 sps:$4 sm:$0xff]   ;;  %v3649_v44 = vld [vmem:[#allocation9 + $0xb0] ss:$12 sps:$4 sm:$0xff]   ;;  %s4182_s29 = smov 96   ;;  %s4183_s21 = smov 64  }
  0xe8   : > { %3362 = vmatpush3.bf16.msra.mxu1 %v3627_v26  ;;  %v3107_v59 = vld [vmem:[#allocation6] ss:$0 sm:$0xff]  ;;  %s4184_s22 = smov 32   ;;  %vm1408_vm8 = vcmask 523520   ;;  %vm1663_vm9 = vcmask 785920   ;;  %vm1918_vm10 = vcmask 1048320  }
  0xe9   : > { %3363 = vmatprep.subr.bf16.mxu1 %v3631_v29  ;;  %s5033_s17 = sld [smem:[#allocation23_spill]]  ;;  %s5036_s16 = sld [smem:[#allocation26_spill]] }
  0xea   : > { %801 = vmatpush1.bf16.msra.mxu0 %v3628_v27  ;;  %s542_s23 = scalar_lea.vmem [#allocation15], %s3099_s12  ;;  %s3250_s19 = sshll.u32 %s4279_s14, 9 }
  0xeb   : > { %802 = vmatprep.subr.bf16.mxu0 %v3629_v28  ;;  %s2955_s12 = sshll.u32 %s542_s23, 4  ;;  %s5037_s8 = sld [smem:[#allocation27_spill]]  ;;  %s4939_s12 = int_to_ptr.vmem [resolvable:$true] %s2955_s12 }
  0xec   : > { %3364 = vmatpush3.bf16.msra.mxu1 %v3631_v29  ;;  %s4084_s15 = scalar_lea.vmem %s4939_s12, 512  ;;  %p5038_p9 = scmp.ne.s32.totalorder %s5023_s3, 0 }
  0xed   : > { %3365 = vmatprep.subr.bf16.mxu1 %v3635_v32  ;;  %p4085_p6 = scmp.ne.s32.totalorder %s4939_s12, %s4084_s15  ;;  %s4185_s14 = smov [#allocation15]  }
  0xee   : > { %803 = vmatpush1.bf16.msra.mxu0 %v3632_v30  ;;  %s4088_s24 = sshll.u32 %s4185_s14, 4  ;;  %s4089_s24 = int_to_ptr.vmem [resolvable:$false] %s4088_s24 }
  0xef   : > { %804 = vmatprep.subr.bf16.mxu0 %v3633_v31  ;;  %p4086_p4 = pnand %p4085_p6, %p5038_p9  ;;  %p4091_p1 = scmp.lt.s32.totalorder %s4939_s12, %s4089_s24 }
  0xf0   : > { %3366 = vmatpush3.bf16.msra.mxu1 %v3635_v32 }
  0xf1   : > { %3367 = vmatprep.subr.bf16.mxu1 %v3639_v35  ;;  %s4945_s13 = scalar_lea.hbm %s5037_s8, %s3250_s19  ;;  %p4087_p13 = pneg %p4086_p4 }
  0xf2   : > { %805 = vmatpush1.bf16.msra.mxu0 %v3636_v33 }
  0xf3   : > { %806 = vmatprep.subr.bf16.mxu0 %v3637_v34 }
  0xf4   : > { %3368 = vmatpush3.bf16.msra.mxu1 %v3639_v35 }
  0xf5   : > { %3369 = vmatprep.subr.bf16.mxu1 %v3643_v38 }
  0xf6   : > { %807 = vmatpush1.bf16.msra.mxu0 %v3640_v36 }
  0xf7   : > { %808 = vmatprep.subr.bf16.mxu0 %v3641_v37 }
  0xf8   : > { %3370 = vmatpush3.bf16.msra.mxu1 %v3643_v38 }
  0xf9   : > { %3371 = vmatprep.subr.bf16.mxu1 %v3647_v42 }
  0xfa   : > { %809 = vmatpush1.bf16.msra.mxu0 %v3644_v40 }
  0xfb   : > { %810 = vmatprep.subr.bf16.mxu0 %v3645_v41 }
  0xfc   : > { %3372 = vmatpush3.bf16.msra.mxu1 %v3647_v42 }
  0xfd   : > { %3373 = vmatprep.subr.bf16.mxu1 %v3649_v44 }
  0xfe   : > { %811 = vmatpush1.bf16.msra.mxu0 %v3648_v43 }
 0x100   : > { %3374 = vmatpush3.bf16.msra.mxu1 %v3649_v44 }
 0x16c   : > { %v553_v8 = vpop.xlane.xlu0 %552  ;;  %v557_v9 = vpop.xlane.xlu1 %556 }
 0x16d   : > { %v561_v10 = vmul.f32 0.0078125, %v553_v8  ;;  %v563_v11 = vmul.f32 0.0078125, %v557_v9 }
 0x16f   : > { %v4542_v12 = vsub.f32 %v546_v0, %v561_v10  ;;  %v4544_v13 = vsub.f32 %v548_v1, %v563_v11  ;;  %v3108_v0 = vld [vmem:[#allocation8] ss:$0 sm:$0xff] }
 0x170   : > { %v555_v14 = vpop.xlane.xlu0 %554  ;;  %v559_v15 = vpop.xlane.xlu1 %558 }
 0x171   : > { %v562_v16 = vmul.f32 0.0078125, %v555_v14  ;;  %v569_v17 = vmul.f32 %v4542_v12, %v4542_v12  ;;  %v564_v18 = vmul.f32 0.0078125, %v559_v15  ;;  %v571_v21 = vmul.f32 %v4544_v13, %v4544_v13 }
 0x172   : > { %v4180_v14 = vmov 0.0  }
 0x173   : > { %v4548_v19 = vsub.f32 %v547_v2, %v562_v16  ;;  %573 = vadd.xlane.f32.xlu0 %v569_v17  ;;  %v4550_v20 = vsub.f32 %v549_v3, %v564_v18  ;;  %3379 = vmatprep.subr.bf16.mxu0 %v4180_v14  ;;  %v651_v17 = vld [vmem:[%s4994_s4] sm:$0x7] }
 0x174   : > { %3391 = vmatprep.subr.bf16.mxu1 %v4180_v14 }
 0x175   : > { %v570_v22 = vmul.f32 %v4548_v19, %v4548_v19  ;;  %v572_v23 = vmul.f32 %v4550_v20, %v4550_v20 }
 0x177   : > { %577 = vadd.xlane.f32.xlu0 %v571_v21  ;;  %575 = vadd.xlane.f32.xlu1 %v570_v22 }
 0x17b   : > { %579 = vadd.xlane.f32.xlu1 %v572_v23 }
 0x200   : > { %v574_v45 = vpop.xlane.xlu0 %573 }
 0x201   : > { %v581_v46 = vmul.f32 0.0078125, %v574_v45 }
 0x203   : > { %v585_v47 = vadd.f32 1e-05, %v581_v46 }
 0x204   : > { %v576_v48 = vpop.xlane.xlu1 %575  ;;  %v578_v49 = vpop.xlane.xlu0 %577 }
 0x205   : > { %3738 = vrsqrt.f32 %v585_v47  ;;  %v582_v50 = vmul.f32 0.0078125, %v576_v48  ;;  %v583_v51 = vmul.f32 0.0078125, %v578_v49 }
 0x207   : > { %v586_v52 = vadd.f32 1e-05, %v582_v50  ;;  %v587_v53 = vadd.f32 1e-05, %v583_v51 }
 0x208   : > { %v580_v54 = vpop.xlane.xlu1 %579 }
 0x209   : > { %3740 = vrsqrt.f32 %v586_v52  ;;  %v584_v55 = vmul.f32 0.0078125, %v580_v54 }
 0x20a   : > { %3742 = vrsqrt.f32 %v587_v53 }
 0x20b   : > { %v588_v56 = vadd.f32 1e-05, %v584_v55 }
 0x20d   : > { %3744 = vrsqrt.f32 %v588_v56 }
 0x20f   : > { %v3739_v57 = vpop.eup %3738 }
 0x210   : > { %v593_v58 = vmul.f32 %v3739_v57, %v4542_v12 }
 0x212   : > { %v603_v63 = vmul.f32 %v3107_v59, %v593_v58 }
 0x213   : > { %v3741_v60 = vpop.eup %3740 }
 0x214   : > { %v3743_v61 = vpop.eup %3742  ;;  %v594_v62 = vmul.f32 %v3741_v60, %v4548_v19  ;;  %v613_v4 = vadd.f32 %v3108_v0, %v603_v63 }
 0x215   : > { %v595_v1 = vmul.f32 %v3743_v61, %v4544_v13  ;;  %v653_v13 = vlaneseq }
 0x216   : > { %v604_v2 = vmul.f32 %v3107_v59, %v594_v62 }
 0x217   : > { %v3745_v3 = vpop.eup %3744  ;;  %v605_v7 = vmul.f32 %v3107_v59, %v595_v1  ;;  %v4570_v15 = vshrl.u32 %v653_v13, 7  ;;  %v908_v56 = vand.u32 127, %v653_v13 }
 0x218   : > { %v614_v5 = vadd.f32 %v3108_v0, %v604_v2  ;;  %v596_v6 = vmul.f32 %v3745_v3, %v4550_v20 }
 0x219   : > { %v615_v10 = vadd.f32 %v3108_v0, %v605_v7  ;;  %v655_v16 = vsub.s32 0, %v4570_v15  ;;  %v659_v18 = vsub.s32 1, %v4570_v15  ;;  %v663_v20 = vsub.s32 2, %v4570_v15 }
 0x21a   : > { %v617_v8 = vpack.c.bf16 %v614_v5, %v613_v4  ;;  %v606_v9 = vmul.f32 %v3107_v59, %v596_v6  ;;  %v906_v57 = vadd.s32 8, %v4570_v15  ;;  %vm909_vm2 = vcmp.ge.s32.totalorder %v908_v56, 16 }
 0x21b   : > { %v656_v19 = vrot.slane %v651_v17, %v655_v16  ;;  %v660_v22 = vrot.slane %v651_v17, %v659_v18  ;;  %v664_v28 = vrot.slane %v651_v17, %v663_v20  ;;  %vm910_vm3 = vcmp.gt.s32.totalorder %v908_v56, %v4570_v15 }
 0x21c   : > { %829 = vmatmul.mubr.bf16.vlgmr.msra.gmra.mrb[0].mxu0 %v617_v8  ;;  %3375 = vmatprep.mubr.bf16.mxu1 %v617_v8  ;;  %v616_v11 = vadd.f32 %v3108_v0, %v606_v9  ;;  %vm911_vm4 = vcmp.gt.s32.totalorder %v908_v56, %v906_v57  ;;  %vm912_vm5 = vmor %vm909_vm2, %vm910_vm3 }
 0x21d   : > { %838 = vmatprep.mubr.bf16.mxu0 %v4179_v39  ;;  %vm913_vm6 = vmor %vm909_vm2, %vm911_vm4  ;;  %v4617_v58 = vsel %vm912_vm5, -1e+30, %v4180_v14 }
 0x21e   : > { %v618_v12 = vpack.c.bf16 %v616_v11, %v615_v10  ;;  %v4620_v60 = vsel %vm913_vm6, -1e+30, %v4180_v14 }
 0x220   : > { %3376 = vmatmul.mubr.bf16.vlgmr.msra.gmra.mrb[0].mxu1 %v618_v12 }
 0x221   : > { %3393 = vmatprep.mubr.msk.bf16.mxu1 %vm4181_vm0, %v4180_v14 }
 0x224   : > { %839 = vmatmul.mubr.bf16.gmra.mrb[4].mxu0 %v618_v12 }
 0x225   : > { %3381 = vmatprep.mubr.msk.bf16.mxu0 %vm4181_vm0, %v4180_v14 }
 0x2ef   : > { %v830_v21 = vpop.f32.mrb[0].mxu0 }
 0x2f0   : > { %v832_v23 = vpop.f32.mrb[1].mxu0  ;;  %v831_v25 = vadd.f32 %v830_v21, %v656_v19 }
 0x2f1   : > { %v834_v24 = vpop.f32.mrb[2].mxu0  ;;  %v833_v29 = vadd.f32 %v832_v23, %v660_v22 }
 0x2f2   : > { %v835_v26 = vadd.f32 %v834_v24, %v656_v19  ;;  %v836_v27 = vpop.f32.mrb[3].mxu0 }
 0x2f3   : > { %v837_v30 = vadd.f32 %v836_v27, %v660_v22  ;;  %v3377_v31 = vpop.f32.mrb[0].mxu1 }
 0x2f4   : > { %v4584_v32 = vpack.c.bf16 %v835_v26, %v831_v25  ;;  %v883_v33 = vpop.f32.mrb[1].mxu1  ;;  %v892_v36 = vadd.f32 %v3377_v31, %v664_v28 }
 0x2f5   : > { %v4586_v34 = vpack.c.bf16 %v837_v30, %v833_v29  ;;  %v3378_v35 = vpop.f32.mrb[2].mxu1  ;;  %v884_v40 = vadd.f32 %v883_v33, %v664_v28 }
 0x2f6   : > { %v895_v37 = vadd.f32 %v3378_v35, %v664_v28  ;;  %v886_v38 = vpop.f32.mrb[3].mxu1 }
 0x2f7   : > { %v887_v41 = vadd.f32 %v886_v38, %v664_v28  ;;  %v840_v42 = vpop.f32.mrb[4].mxu0  ;;  %v921_v43 = vsel %vm916_vm1, %v4586_v34, 0 }
 0x2f8   : > { %v4590_v44 = vpack.c.bf16 %v895_v37, %v892_v36  ;;  %v842_v45 = vpop.f32.mrb[5].mxu0  ;;  %3380 = vmatpush3.bf16.xpose.msra.mxu0 %v921_v43  ;;  %v841_v48 = vadd.f32 %v840_v42, %v656_v19 }
 0x2f9   : > { %v4592_v46 = vpack.c.bf16 %v887_v41, %v884_v40  ;;  %v844_v47 = vpop.f32.mrb[6].mxu0  ;;  %3385 = vmatprep.subr.bf16.mxu0 %v4180_v14  ;;  %v843_v51 = vadd.f32 %v842_v45, %v660_v22 }
 0x2fa   : > { %v845_v49 = vadd.f32 %v844_v47, %v656_v19  ;;  %v846_v50 = vpop.f32.mrb[7].mxu0 }
 0x2fb   : > { %v847_v52 = vadd.f32 %v846_v50, %v660_v22  ;;  %3392 = vmatpush3.bf16.msra.mxu1 %v4592_v46 }
 0x2fc   : > { %v4596_v53 = vpack.c.bf16 %v845_v49, %v841_v48  ;;  %3403 = vmatprep.subr.bf16.mxu1 %v4180_v14 }
 0x2fd   : > { %v4599_v54 = vpack.c.bf16 %v847_v52, %v843_v51 }
 0x2ff   : > { %3382 = vmatmul.mubr.msk.bf16.vlgmr.msra.gmra.mrb[8].mxu0 %vm916_vm1, %v4584_v32  ;;  %v968_v55 = vsel %vm916_vm1, %v4599_v54, 0 }
 0x300   : > { %3386 = vmatpush3.bf16.xpose.msra.mxu0 %v968_v55  ;;  %3387 = vmatprep.mubr.msk.bf16.mxu0 %vm4181_vm0, %v4180_v14 }
 0x301   : > { %3397 = vmatprep.subr.bf16.mxu0 %v4180_v14 }
 0x307   : > { %3388 = vmatmul.mubr.msk.bf16.vlgmr.msra.gmra.mrb[12].mxu0 %vm916_vm1, %v4596_v53 }
 0x308   : > { %3398 = vmatpush3.bf16.msra.mxu0 %v4590_v44  ;;  %3399 = vmatprep.mubr.msk.bf16.mxu0 %vm4181_vm0, %v4180_v14 }
 0x309   : > { %3409 = vmatprep.subr.bf16.mxu0 %v4180_v14 }
 0x3d2   : > { %v957_v59 = vpop.f32.mrb[8].mxu0 }
 0x3d3   : > { %v958_v61 = vadd.f32 %v957_v59, %v4617_v58  ;;  %v3383_v62 = vpop.f32.mrb[9].mxu0 }
 0x3d4   : > { %v960_v63 = vpop.f32.mrb[10].mxu0 }
 0x3d5   : > { %v961_v0 = vadd.f32 %v960_v63, %v4620_v60  ;;  %v3384_v1 = vpop.f32.mrb[11].mxu0  ;;  %v1012_v2 = vsel %vm1011_vm7, %v958_v61, -inf }
 0x3d6   : > { %1013 = vmax.xlane.f32.xlu0 %v1012_v2 }
 0x3d7   : > { %v1015_v3 = vsel %vm1011_vm7, %v961_v0, -inf }
 0x3d8   : > { %1016 = vmax.xlane.f32.xlu1 %v1015_v3 }
 0x3da   : > { %v1004_v4 = vpop.f32.mrb[12].mxu0 }
 0x3db   : > { %v1005_v5 = vadd.f32 %v1004_v4, %v4617_v58  ;;  %v3389_v6 = vpop.f32.mrb[13].mxu0 }
 0x3dc   : > { %v1007_v7 = vpop.f32.mrb[14].mxu0 }
 0x3dd   : > { %v1008_v8 = vadd.f32 %v1007_v7, %v4620_v60  ;;  %v3390_v9 = vpop.f32.mrb[15].mxu0  ;;  %v1018_v10 = vsel %vm1011_vm7, %v1005_v5, -inf }
 0x3de   : > { %1019 = vmax.xlane.f32.xlu0 %v1018_v10 }
 0x3df   : > { %v1021_v11 = vsel %vm1011_vm7, %v1008_v8, -inf }
 0x3e0   : > { %1022 = vmax.xlane.f32.xlu1 %v1021_v11 }
 0x463   : > { %v1014_v12 = vpop.xlane.xlu0 %1013 }
 0x464   : > { %v1024_v13 = vsub.f32 %v958_v61, %v1014_v12 }
 0x465   : > { %v1017_v17 = vpop.xlane.xlu1 %1016 }
 0x466   : > { %v1028_v19 = vmul.f32 1.442695, %v1024_v13  ;;  %v1025_v21 = vsub.f32 %v961_v0, %v1017_v17 }
 0x468   : > { %3746 = vpow2.f32 %v1028_v19  ;;  %v1030_v22 = vmul.f32 1.442695, %v1025_v21 }
 0x46a   : > { %3748 = vpow2.f32 %v1030_v22 }
 0x46b   : > { %v1020_v23 = vpop.xlane.xlu0 %1019 }
 0x46c   : > { %v1026_v24 = vsub.f32 %v1005_v5, %v1020_v23 }
 0x46d   : > { %v1023_v33 = vpop.xlane.xlu1 %1022 }
 0x46e   : > { %v1032_v25 = vmul.f32 1.442695, %v1026_v24  ;;  %v1027_v35 = vsub.f32 %v1008_v8, %v1023_v33 }
 0x470   : > { %3750 = vpow2.f32 %v1032_v25  ;;  %v1034_v36 = vmul.f32 1.442695, %v1027_v35 }
 0x472   : > { %v3747_v26 = vpop.eup %3746  ;;  %3752 = vpow2.f32 %v1034_v36 }
 0x473   : > { %v1036_v27 = vsel %vm1011_vm7, %v3747_v26, 0.0 }
 0x474   : > { %v3749_v28 = vpop.eup %3748  ;;  %1037 = vadd.xlane.f32.xlu0 %v1036_v27 }
 0x475   : > { %v1039_v29 = vsel %vm1011_vm7, %v3749_v28, 0.0 }
 0x476   : > { %1040 = vadd.xlane.f32.xlu1 %v1039_v29 }
 0x47a   : > { %v3751_v30 = vpop.eup %3750 }
 0x47b   : > { %v1042_v31 = vsel %vm1011_vm7, %v3751_v30, 0.0 }
 0x47c   : > { %1043 = vadd.xlane.f32.xlu0 %v1042_v31  ;;  %v3753_v37 = vpop.eup %3752 }
 0x47d   : > { %v1045_v38 = vsel %vm1011_vm7, %v3753_v37, 0.0 }
 0x487   : > { %1207 = vrot.lane.b32.xlu1 %v4599_v54, %s4182_s29 }
 0x492   : > { %1154 = vrot.lane.b32.xlu0 %v4586_v34, %s4182_s29 }
 0x4ab   : > { %1046 = vadd.xlane.f32.xlu1 %v1045_v38 }
 0x4bc   : > { %1151 = vrot.lane.b32.xlu1 %v4584_v32, %s4182_s29 }
 0x4c0   : > { %1204 = vrot.lane.b32.xlu1 %v4596_v53, %s4182_s29 }
 0x501   : > { %v1038_v40 = vpop.xlane.xlu0 %1037 }
 0x502   : > { %3754 = vrcp.f32 %v1038_v40 }
 0x503   : > { %v1041_v41 = vpop.xlane.xlu1 %1040 }
 0x504   : > { %3756 = vrcp.f32 %v1041_v41 }
 0x507   : > { %v1208_v52 = vpop.permute.xlu1 %1207 }
 0x508   : > { %v1213_v0 = vsel %vm916_vm1, %v1208_v52, 0 }
 0x509   : > { %v1044_v42 = vpop.xlane.xlu0 %1043 }
 0x50a   : > { %3758 = vrcp.f32 %v1044_v42 }
 0x50c   : > { %v3755_v43 = vpop.eup %3754 }
 0x50d   : > { %v1052_v47 = vmul.f32 %v3755_v43, %v3747_v26  ;;  %v1155_v49 = vpop.permute.xlu0 %1154 }
 0x50e   : > { %v3757_v45 = vpop.eup %3756  ;;  %v1160_v51 = vsel %vm916_vm1, %v1155_v49, 0 }
 0x50f   : > { %v1053_v48 = vmul.f32 %v3757_v45, %v3749_v28 }
 0x511   : > { %v1056_v50 = vpack.c.bf16 %v1053_v48, %v1052_v47 }
 0x513   : > { %3394 = vmatmul.mubr.msk.bf16.vlgmr.msra.gmra.mrb[4].mxu1 %vm1011_vm7, %v1056_v50 }
 0x514   : > { %3404 = vmatpush3.bf16.xpose.msra.mxu1 %v1160_v51  ;;  %3405 = vmatprep.mubr.msk.bf16.mxu1 %vm4181_vm0, %v4180_v14  ;;  %v3759_v57 = vpop.eup %3758 }
 0x515   : > { %3415 = vmatprep.subr.bf16.mxu1 %v4180_v14  ;;  %v1054_v61 = vmul.f32 %v3759_v57, %v3751_v30 }
 0x538   : > { %v1047_v55 = vpop.xlane.xlu1 %1046 }
 0x539   : > { %3760 = vrcp.f32 %v1047_v55 }
 0x53c   : > { %v1152_v56 = vpop.permute.xlu1 %1151 }
 0x53d   : > { %3406 = vmatmul.mubr.msk.bf16.vlgmr.msra.gmra.mrb[8].mxu1 %vm916_vm1, %v1152_v56 }
 0x53e   : > { %3417 = vmatprep.mubr.msk.bf16.mxu1 %vm4181_vm0, %v4180_v14 }
 0x540   : > { %v1205_v1 = vpop.permute.xlu1 %1204 }
 0x543   : > { %v3761_v59 = vpop.eup %3760 }
 0x544   : > { %v1055_v62 = vmul.f32 %v3761_v59, %v3753_v37 }
 0x546   : > { %v1057_v63 = vpack.c.bf16 %v1055_v62, %v1054_v61 }
 0x548   : > { %3400 = vmatmul.mubr.msk.bf16.vlgmr.msra.gmra.mrb[16].mxu0 %vm1011_vm7, %v1057_v63 }
 0x549   : > { %3410 = vmatpush3.bf16.xpose.msra.mxu0 %v1213_v0  ;;  %3411 = vmatprep.mubr.msk.bf16.mxu0 %vm4181_vm0, %v4180_v14 }
 0x54a   : > { %3421 = vmatprep.subr.bf16.mxu0 %v4180_v14 }
 0x550   : > { %3412 = vmatmul.mubr.msk.bf16.vlgmr.msra.gmra.mrb[20].mxu0 %vm916_vm1, %v1205_v1 }
 0x551   : > { %3423 = vmatprep.mubr.msk.bf16.mxu0 %vm4181_vm0, %v4180_v14 }
 0x5e6   : > { %v1095_v2 = vpop.f32.mrb[4].mxu1 }
 0x5e7   : > { %v3395_v3 = vpop.f32.mrb[5].mxu1 }
 0x5e8   : > { %v1098_v4 = vpop.f32.mrb[6].mxu1 }
 0x5e9   : > { %v1146_v5 = vpack.c.bf16 %v1098_v4, %v1095_v2  ;;  %v3396_v6 = vpop.f32.mrb[7].mxu1 }
 0x5eb   : > { %1148 = vst.msk [vmem:[#allocation2] sm:$0xff] %vm916_vm1, %v1146_v5 }
 0x610   : > { %v1196_v7 = vpop.f32.mrb[8].mxu1 }
 0x611   : > { %v1197_v8 = vadd.f32 %v1196_v7, %v4617_v58  ;;  %v3407_v9 = vpop.f32.mrb[9].mxu1 }
 0x612   : > { %v1199_v10 = vpop.f32.mrb[10].mxu1 }
 0x613   : > { %v1200_v11 = vadd.f32 %v1199_v10, %v4620_v60  ;;  %v3408_v12 = vpop.f32.mrb[11].mxu1  ;;  %v1256_v13 = vsel %vm1011_vm7, %v1197_v8, -inf }
 0x614   : > { %1257 = vmax.xlane.f32.xlu0 %v1256_v13 }
 0x615   : > { %v1259_v17 = vsel %vm1011_vm7, %v1200_v11, -inf }
 0x616   : > { %1260 = vmax.xlane.f32.xlu1 %v1259_v17 }
 0x61b   : > { %v1139_v19 = vpop.f32.mrb[16].mxu0 }
 0x61c   : > { %v3401_v21 = vpop.f32.mrb[17].mxu0 }
 0x61d   : > { %v1142_v22 = vpop.f32.mrb[18].mxu0 }
 0x61e   : > { %v1147_v23 = vpack.c.bf16 %v1142_v22, %v1139_v19  ;;  %v3402_v24 = vpop.f32.mrb[19].mxu0 }
 0x620   : > { %1149 = vst.msk [vmem:[#allocation2 + $0x8] sm:$0xff] %vm916_vm1, %v1147_v23 }
 0x623   : > { %v1249_v25 = vpop.f32.mrb[20].mxu0 }
 0x624   : > { %v1250_v26 = vadd.f32 %v1249_v25, %v4617_v58  ;;  %v3413_v27 = vpop.f32.mrb[21].mxu0 }
 0x625   : > { %v1252_v28 = vpop.f32.mrb[22].mxu0 }
 0x626   : > { %v1253_v29 = vadd.f32 %v1252_v28, %v4620_v60  ;;  %v3414_v30 = vpop.f32.mrb[23].mxu0  ;;  %v1262_v31 = vsel %vm1011_vm7, %v1250_v26, -inf }
 0x627   : > { %1263 = vmax.xlane.f32.xlu0 %v1262_v31 }
 0x628   : > { %v1265_v33 = vsel %vm1011_vm7, %v1253_v29, -inf }
 0x62b   : > { %1266 = vmax.xlane.f32.xlu0 %v1265_v33 }
 0x6a1   : > { %v1258_v35 = vpop.xlane.xlu0 %1257 }
 0x6a2   : > { %v1268_v36 = vsub.f32 %v1197_v8, %v1258_v35 }
 0x6a3   : > { %v1261_v37 = vpop.xlane.xlu1 %1260 }
 0x6a4   : > { %v1272_v38 = vmul.f32 1.442695, %v1268_v36  ;;  %v1269_v40 = vsub.f32 %v1200_v11, %v1261_v37 }
 0x6a6   : > { %3762 = vpow2.f32 %v1272_v38  ;;  %v1274_v41 = vmul.f32 1.442695, %v1269_v40 }
 0x6a8   : > { %3764 = vpow2.f32 %v1274_v41 }
 0x6b0   : > { %v3763_v42 = vpop.eup %3762 }
 0x6b1   : > { %v1280_v43 = vsel %vm1011_vm7, %v3763_v42, 0.0 }
 0x6b2   : > { %v3765_v45 = vpop.eup %3764  ;;  %1281 = vadd.xlane.f32.xlu0 %v1280_v43 }
 0x6b3   : > { %v1283_v47 = vsel %vm1011_vm7, %v3765_v45, 0.0 }
 0x6b4   : > { %1284 = vadd.xlane.f32.xlu1 %v1283_v47  ;;  %v1264_v48 = vpop.xlane.xlu0 %1263 }
 0x6b5   : > { %v1270_v49 = vsub.f32 %v1250_v26, %v1264_v48 }
 0x6b7   : > { %v1276_v50 = vmul.f32 1.442695, %v1270_v49 }
 0x6b8   : > { %v1267_v55 = vpop.xlane.xlu0 %1266 }
 0x6b9   : > { %3766 = vpow2.f32 %v1276_v50  ;;  %v1271_v56 = vsub.f32 %v1253_v29, %v1267_v55 }
 0x6bb   : > { %v1278_v57 = vmul.f32 1.442695, %v1271_v56 }
 0x6bd   : > { %3768 = vpow2.f32 %v1278_v57 }
 0x6c3   : > { %v3767_v51 = vpop.eup %3766 }
 0x6c4   : > { %v1286_v52 = vsel %vm1011_vm7, %v3767_v51, 0.0 }
 0x6c5   : > { %1351 = vrot.lane.b32.xlu1 %v4590_v44, %s4182_s29  ;;  %1287 = vadd.xlane.f32.xlu0 %v1286_v52 }
 0x6c7   : > { %v3769_v59 = vpop.eup %3768 }
 0x6c8   : > { %v1289_v61 = vsel %vm1011_vm7, %v3769_v59, 0.0 }
 0x6c9   : > { %1413 = vrot.lane.b32.xlu1 %v4586_v34, %s4183_s21 }
 0x6db   : > { %1303 = vrot.lane.b32.xlu0 %v4592_v46, %s4182_s29 }
 0x6df   : > { %1411 = vrot.lane.b32.xlu0 %v4584_v32, %s4183_s21 }
 0x6ed   : > { %1290 = vadd.xlane.f32.xlu1 %v1289_v61 }
 0x6fe   : > { %1464 = vrot.lane.b32.xlu1 %v4599_v54, %s4183_s21 }
 0x702   : > { %1462 = vrot.lane.b32.xlu1 %v4596_v53, %s4183_s21 }
 0x73f   : > { %v1282_v0 = vpop.xlane.xlu0 %1281 }
 0x741   : > { %v1285_v62 = vpop.xlane.xlu1 %1284 }
 0x742   : > { %3770 = vrcp.f32 %v1285_v62 }
 0x743   : > { %3772 = vrcp.f32 %v1282_v0 }
 0x745   : > { %v1352_v63 = vpop.permute.xlu1 %1351 }
 0x746   : > { %3422 = vmatpush3.bf16.msra.mxu0 %v1352_v63 }
 0x747   : > { %3433 = vmatprep.subr.bf16.mxu0 %v4180_v14 }
 0x749   : > { %v1414_v8 = vpop.permute.xlu1 %1413 }
 0x74a   : > { %v1419_v9 = vsel %vm916_vm1, %v1414_v8, 0 }
 0x74c   : > { %v3771_v1 = vpop.eup %3770 }
 0x74d   : > { %v3773_v3 = vpop.eup %3772  ;;  %v1297_v4 = vmul.f32 %v3771_v1, %v3765_v45 }
 0x74e   : > { %v1296_v5 = vmul.f32 %v3773_v3, %v3763_v42 }
 0x750   : > { %v1300_v7 = vpack.c.bf16 %v1297_v4, %v1296_v5 }
 0x752   : > { %v1288_v2 = vpop.xlane.xlu0 %1287 }
 0x753   : > { %3774 = vrcp.f32 %v1288_v2 }
 0x756   : > { %v1304_v6 = vpop.permute.xlu0 %1303 }
 0x757   : > { %3416 = vmatpush3.bf16.msra.mxu1 %v1304_v6 }
 0x758   : > { %3427 = vmatprep.subr.bf16.mxu1 %v4180_v14 }
 0x75a   : > { %3418 = vmatmul.mubr.msk.bf16.vlgmr.msra.gmra.mrb[12].mxu1 %vm1011_vm7, %v1300_v7  ;;  %v1412_v10 = vpop.permute.xlu0 %1411 }
 0x75b   : > { %3429 = vmatprep.mubr.msk.bf16.mxu1 %vm4181_vm0, %v4180_v14 }
 0x75d   : > { %v3775_v12 = vpop.eup %3774 }
 0x75e   : > { %v1298_v17 = vmul.f32 %v3775_v12, %v3767_v51 }
 0x760   : > { %3428 = vmatpush3.bf16.xpose.msra.mxu1 %v1419_v9 }
 0x761   : > { %3439 = vmatprep.subr.bf16.mxu1 %v4180_v14 }
 0x767   : > { %3430 = vmatmul.mubr.msk.bf16.vlgmr.msra.gmra.mrb[16].mxu1 %vm916_vm1, %v1412_v10 }
 0x768   : > { %3441 = vmatprep.mubr.msk.bf16.mxu1 %vm4181_vm0, %v4180_v14 }
 0x77a   : > { %v1291_v11 = vpop.xlane.xlu1 %1290 }
 0x77b   : > { %3776 = vrcp.f32 %v1291_v11 }
 0x77e   : > { %v1465_v21 = vpop.permute.xlu1 %1464 }
 0x77f   : > { %v1470_v23 = vsel %vm916_vm1, %v1465_v21, 0 }
 0x782   : > { %v1463_v24 = vpop.permute.xlu1 %1462 }
 0x785   : > { %v3777_v13 = vpop.eup %3776 }
 0x786   : > { %v1299_v19 = vmul.f32 %v3777_v13, %v3769_v59 }
 0x788   : > { %v1301_v22 = vpack.c.bf16 %v1299_v19, %v1298_v17 }
 0x78a   : > { %3424 = vmatmul.mubr.msk.bf16.vlgmr.msra.gmra.mrb[24].mxu0 %vm1011_vm7, %v1301_v22 }
 0x78b   : > { %3434 = vmatpush3.bf16.xpose.msra.mxu0 %v1470_v23  ;;  %3435 = vmatprep.mubr.msk.bf16.mxu0 %vm4181_vm0, %v4180_v14 }
 0x78c   : > { %3445 = vmatprep.subr.bf16.mxu0 %v4180_v14 }
 0x792   : > { %3436 = vmatmul.mubr.msk.bf16.vlgmr.msra.gmra.mrb[28].mxu0 %vm916_vm1, %v1463_v24 }
 0x793   : > { %3447 = vmatprep.mubr.msk.bf16.mxu0 %vm4181_vm0, %v4180_v14 }
 0x82d   : > { %v4702_v25 = vpop.f32.mrb[12].mxu1 }
 0x82e   : > { %v3419_v26 = vpop.f32.mrb[13].mxu1 }
 0x82f   : > { %v4704_v27 = vpop.f32.mrb[14].mxu1 }
 0x830   : > { %v1398_v28 = vpack.c.bf16 %v4704_v27, %v4702_v25  ;;  %v3420_v29 = vpop.f32.mrb[15].mxu1 }
 0x83a   : > { %v1455_v30 = vpop.f32.mrb[16].mxu1 }
 0x83b   : > { %v1456_v31 = vadd.f32 %v1455_v30, %v4617_v58  ;;  %v3431_v33 = vpop.f32.mrb[17].mxu1 }
 0x83c   : > { %v1458_v35 = vpop.f32.mrb[18].mxu1 }
 0x83d   : > { %v1459_v36 = vadd.f32 %v1458_v35, %v4620_v60  ;;  %v3432_v37 = vpop.f32.mrb[19].mxu1  ;;  %v1513_v38 = vsel %vm1011_vm7, %v1456_v31, -inf }
 0x83e   : > { %1514 = vmax.xlane.f32.xlu0 %v1513_v38 }
 0x83f   : > { %v1516_v40 = vsel %vm1011_vm7, %v1459_v36, -inf }
 0x840   : > { %1517 = vmax.xlane.f32.xlu1 %v1516_v40 }
 0x85d   : > { %v4712_v41 = vpop.f32.mrb[24].mxu0 }
 0x85e   : > { %v3425_v42 = vpop.f32.mrb[25].mxu0 }
 0x85f   : > { %v4714_v43 = vpop.f32.mrb[26].mxu0 }
 0x860   : > { %v1399_v45 = vpack.c.bf16 %v4714_v43, %v4712_v41  ;;  %v3426_v47 = vpop.f32.mrb[27].mxu0 }
 0x865   : > { %v1506_v48 = vpop.f32.mrb[28].mxu0 }
 0x866   : > { %v1507_v49 = vadd.f32 %v1506_v48, %v4617_v58  ;;  %v3437_v50 = vpop.f32.mrb[29].mxu0 }
 0x867   : > { %v1509_v51 = vpop.f32.mrb[30].mxu0 }
 0x868   : > { %v1510_v52 = vadd.f32 %v1509_v51, %v4620_v60  ;;  %v3438_v55 = vpop.f32.mrb[31].mxu0  ;;  %v1519_v56 = vsel %vm1011_vm7, %v1507_v49, -inf }
 0x869   : > { %1520 = vmax.xlane.f32.xlu0 %v1519_v56 }
 0x86a   : > { %v1522_v57 = vsel %vm1011_vm7, %v1510_v52, -inf }
 0x86d   : > { %1523 = vmax.xlane.f32.xlu0 %v1522_v57 }
 0x8cb   : > { %v1515_v59 = vpop.xlane.xlu0 %1514 }
 0x8cc   : > { %v1525_v61 = vsub.f32 %v1456_v31, %v1515_v59 }
 0x8cd   : > { %v1518_v62 = vpop.xlane.xlu1 %1517 }
 0x8ce   : > { %v1529_v63 = vmul.f32 1.442695, %v1525_v61  ;;  %v1526_v0 = vsub.f32 %v1459_v36, %v1518_v62 }
 0x8d0   : > { %3778 = vpow2.f32 %v1529_v63  ;;  %v1531_v1 = vmul.f32 1.442695, %v1526_v0 }
 0x8d2   : > { %3780 = vpow2.f32 %v1531_v1 }
 0x8da   : > { %v3779_v2 = vpop.eup %3778 }
 0x8db   : > { %v1537_v3 = vsel %vm1011_vm7, %v3779_v2, 0.0 }
 0x8dc   : > { %v3781_v4 = vpop.eup %3780  ;;  %1538 = vadd.xlane.f32.xlu0 %v1537_v3 }
 0x8dd   : > { %v1540_v5 = vsel %vm1011_vm7, %v3781_v4, 0.0 }
 0x8de   : > { %1541 = vadd.xlane.f32.xlu1 %v1540_v5 }
 0x8ef   : > { %1606 = vrot.lane.b32.xlu1 %v4590_v44, %s4183_s21 }
 0x8f3   : > { %1668 = vrot.lane.b32.xlu1 %v4586_v34, %s4184_s22 }
 0x8f6   : > { %v1521_v6 = vpop.xlane.xlu0 %1520 }
 0x8f7   : > { %v1527_v7 = vsub.f32 %v1507_v49, %v1521_v6 }
 0x8f9   : > { %v1533_v8 = vmul.f32 1.442695, %v1527_v7 }
 0x8fa   : > { %v1524_v9 = vpop.xlane.xlu0 %1523 }
 0x8fb   : > { %3782 = vpow2.f32 %v1533_v8  ;;  %v1528_v10 = vsub.f32 %v1510_v52, %v1524_v9 }
 0x8fd   : > { %v1535_v12 = vmul.f32 1.442695, %v1528_v10 }
 0x8ff   : > { %3784 = vpow2.f32 %v1535_v12 }
 0x905   : > { %v3783_v11 = vpop.eup %3782 }
 0x906   : > { %v1543_v13 = vsel %vm1011_vm7, %v3783_v11, 0.0 }
 0x907   : > { %1544 = vadd.xlane.f32.xlu0 %v1543_v13 }
 0x909   : > { %v3785_v17 = vpop.eup %3784 }
 0x90a   : > { %v1546_v19 = vsel %vm1011_vm7, %v3785_v17, 0.0 }
 0x917   : > { %1547 = vadd.xlane.f32.xlu1 %v1546_v19 }
 0x91d   : > { %1559 = vrot.lane.b32.xlu0 %v4592_v46, %s4183_s21 }
 0x921   : > { %1666 = vrot.lane.b32.xlu0 %v4584_v32, %s4184_s22 }
 0x928   : > { %1719 = vrot.lane.b32.xlu1 %v4599_v54, %s4184_s22 }
 0x92c   : > { %1717 = vrot.lane.b32.xlu1 %v4596_v53, %s4184_s22 }
 0x969   : > { %v1539_v22 = vpop.xlane.xlu0 %1538 }
 0x96b   : > { %v1542_v34 = vpop.xlane.xlu1 %1541 }
 0x96c   : > { %3786 = vrcp.f32 %v1542_v34 }
 0x96d   : > { %3788 = vrcp.f32 %v1539_v22 }
 0x96f   : > { %v1607_v21 = vpop.permute.xlu1 %1606 }
 0x970   : > { %3446 = vmatpush3.bf16.msra.mxu0 %v1607_v21 }
 0x971   : > { %3457 = vmatprep.subr.bf16.mxu0 %v4180_v14 }
 0x973   : > { %v1669_v53 = vpop.permute.xlu1 %1668 }
 0x974   : > { %v1674_v54 = vsel %vm916_vm1, %v1669_v53, 0 }
 0x976   : > { %v3787_v23 = vpop.eup %3786 }
 0x977   : > { %v3789_v26 = vpop.eup %3788  ;;  %v1554_v29 = vmul.f32 %v3787_v23, %v3781_v4 }
 0x978   : > { %v1553_v30 = vmul.f32 %v3789_v26, %v3779_v2 }
 0x97a   : > { %v1557_v31 = vpack.c.bf16 %v1554_v29, %v1553_v30 }
 0x994   : > { %v1545_v24 = vpop.xlane.xlu0 %1544 }
 0x995   : > { %3790 = vrcp.f32 %v1545_v24 }
 0x998   : > { %v1560_v32 = vpop.permute.xlu0 %1559 }
 0x999   : > { %3440 = vmatpush3.bf16.msra.mxu1 %v1560_v32 }
 0x99a   : > { %3451 = vmatprep.subr.bf16.mxu1 %v4180_v14 }
 0x99c   : > { %3442 = vmatmul.mubr.msk.bf16.vlgmr.msra.gmra.mrb[20].mxu1 %vm1011_vm7, %v1557_v31  ;;  %v1667_v35 = vpop.permute.xlu0 %1666 }
 0x99d   : > { %3453 = vmatprep.mubr.msk.bf16.mxu1 %vm4181_vm0, %v4180_v14 }
 0x99f   : > { %v3791_v36 = vpop.eup %3790 }
 0x9a0   : > { %v1555_v38 = vmul.f32 %v3791_v36, %v3783_v11 }
 0x9a2   : > { %3452 = vmatpush3.bf16.xpose.msra.mxu1 %v1674_v54 }
 0x9a3   : > { %3463 = vmatprep.subr.bf16.mxu1 %v4180_v14 }
 0x9a4   : > { %v1548_v33 = vpop.xlane.xlu1 %1547 }
 0x9a5   : > { %3792 = vrcp.f32 %v1548_v33 }
 0x9a8   : > { %v1720_v42 = vpop.permute.xlu1 %1719 }
 0x9a9   : > { %3454 = vmatmul.mubr.msk.bf16.vlgmr.msra.gmra.mrb[24].mxu1 %vm916_vm1, %v1667_v35  ;;  %v1725_v48 = vsel %vm916_vm1, %v1720_v42, 0 }
 0x9aa   : > { %3465 = vmatprep.mubr.msk.bf16.mxu1 %vm4181_vm0, %v4180_v14 }
 0x9ac   : > { %v1718_v49 = vpop.permute.xlu1 %1717 }
 0x9af   : > { %v3793_v37 = vpop.eup %3792 }
 0x9b0   : > { %v1556_v40 = vmul.f32 %v3793_v37, %v3785_v17 }
 0x9b2   : > { %v1558_v47 = vpack.c.bf16 %v1556_v40, %v1555_v38 }
 0x9b4   : > { %3448 = vmatmul.mubr.msk.bf16.vlgmr.msra.gmra.mrb[32].mxu0 %vm1011_vm7, %v1558_v47 }
 0x9b5   : > { %3458 = vmatpush3.bf16.xpose.msra.mxu0 %v1725_v48  ;;  %3459 = vmatprep.mubr.msk.bf16.mxu0 %vm4181_vm0, %v4180_v14 }
 0x9b6   : > { %3469 = vmatprep.subr.bf16.mxu0 %v4180_v14 }
 0x9bc   : > { %3460 = vmatmul.mubr.msk.bf16.vlgmr.msra.gmra.mrb[36].mxu0 %vm916_vm1, %v1718_v49 }
 0x9bd   : > { %3471 = vmatprep.mubr.msk.bf16.mxu0 %vm4181_vm0, %v4180_v14 }
 0xa6f   : > { %v1599_v50 = vpop.f32.mrb[20].mxu1 }
 0xa70   : > { %v3443_v51 = vpop.f32.mrb[21].mxu1 }
 0xa71   : > { %v1602_v52 = vpop.f32.mrb[22].mxu1 }
 0xa72   : > { %v1653_v55 = vpack.c.bf16 %v1602_v52, %v1599_v50  ;;  %v3444_v56 = vpop.f32.mrb[23].mxu1 }
 0xa7c   : > { %v1710_v57 = vpop.f32.mrb[24].mxu1 }
 0xa7d   : > { %v1711_v59 = vadd.f32 %v1710_v57, %v4617_v58  ;;  %v3455_v61 = vpop.f32.mrb[25].mxu1 }
 0xa7e   : > { %v1713_v62 = vpop.f32.mrb[26].mxu1  ;;  %v3650_v61 = vld [vmem:[#allocation11] sm:$0xff]  }
 0xa7f   : > { %v1714_v63 = vadd.f32 %v1713_v62, %v4620_v60  ;;  %v3456_v0 = vpop.f32.mrb[27].mxu1  ;;  %v1768_v1 = vsel %vm1011_vm7, %v1711_v59, -inf  ;;  %v3651_v62 = vld [vmem:[#allocation11 + $0x8] sm:$0xff]  }
 0xa80   : > { %1769 = vmax.xlane.f32.xlu0 %v1768_v1  ;;  %v3653_v0 = vld [vmem:[#allocation11 + $0x18] sm:$0xff]   ;;  %v3654_v1 = vld [vmem:[#allocation11 + $0x20] sm:$0xff]  }
 0xa81   : > { %v1771_v2 = vsel %vm1011_vm7, %v1714_v63, -inf }
 0xa82   : > { %1772 = vmax.xlane.f32.xlu1 %v1771_v2  ;;  %v3655_v2 = vld [vmem:[#allocation11 + $0x28] sm:$0xff]  }
 0xa87   : > { %v1646_v14 = vpop.f32.mrb[32].mxu0 }
 0xa88   : > { %v3449_v3 = vpop.f32.mrb[33].mxu0 }
 0xa89   : > { %v1649_v4 = vpop.f32.mrb[34].mxu0 }
 0xa8a   : > { %v1654_v5 = vpack.c.bf16 %v1649_v4, %v1646_v14  ;;  %v3450_v6 = vpop.f32.mrb[35].mxu0 }
 0xa8f   : > { %v1761_v7 = vpop.f32.mrb[36].mxu0 }
 0xa90   : > { %v1762_v8 = vadd.f32 %v1761_v7, %v4617_v58  ;;  %v3461_v9 = vpop.f32.mrb[37].mxu0  ;;  %v3656_v7 = vld [vmem:[#allocation11 + $0x30] sm:$0xff]  }
 0xa91   : > { %v1764_v10 = vpop.f32.mrb[38].mxu0 }
 0xa92   : > { %v1765_v11 = vadd.f32 %v1764_v10, %v4620_v60  ;;  %v3462_v12 = vpop.f32.mrb[39].mxu0  ;;  %v1774_v13 = vsel %vm1011_vm7, %v1762_v8, -inf }
 0xa93   : > { %1775 = vmax.xlane.f32.xlu0 %v1774_v13 }
 0xa94   : > { %v1777_v17 = vsel %vm1011_vm7, %v1765_v11, -inf }
 0xa97   : > { %1778 = vmax.xlane.f32.xlu0 %v1777_v17 }
 0xb0d   : > { %v1770_v19 = vpop.xlane.xlu0 %1769 }
 0xb0e   : > { %v1780_v34 = vsub.f32 %v1711_v59, %v1770_v19 }
 0xb0f   : > { %v1773_v21 = vpop.xlane.xlu1 %1772 }
 0xb10   : > { %v1784_v22 = vmul.f32 1.442695, %v1780_v34  ;;  %v1781_v23 = vsub.f32 %v1714_v63, %v1773_v21  ;;  %v3652_v63 = vld [vmem:[#allocation11 + $0x10] sm:$0xff]  }
 0xb12   : > { %3794 = vpow2.f32 %v1784_v22  ;;  %v1786_v24 = vmul.f32 1.442695, %v1781_v23  ;;  %v3149_v22 = vld [vmem:[%s4996_s6] ss:$0 sm:$0xff] }
 0xb14   : > { %3796 = vpow2.f32 %v1786_v24 }
 0xb1c   : > { %v3795_v58 = vpop.eup %3794 }
 0xb1d   : > { %v1792_v26 = vsel %vm1011_vm7, %v3795_v58, 0.0 }
 0xb1e   : > { %v3797_v29 = vpop.eup %3796  ;;  %1793 = vadd.xlane.f32.xlu0 %v1792_v26 }
 0xb1f   : > { %v1795_v60 = vsel %vm1011_vm7, %v3797_v29, 0.0 }
 0xb20   : > { %1796 = vadd.xlane.f32.xlu1 %v1795_v60  ;;  %v1776_v30 = vpop.xlane.xlu0 %1775 }
 0xb21   : > { %v1782_v32 = vsub.f32 %v1762_v8, %v1776_v30  ;;  %v3657_v8 = vld [vmem:[#allocation11 + $0x38] sm:$0xff]  }
 0xb22   : > { %v3882_v30 = vld [vmem:[%s4520_s30] sm:$0xff] }
 0xb23   : > { %v1788_v31 = vmul.f32 1.442695, %v1782_v32 }
 0xb24   : > { %v1779_v53 = vpop.xlane.xlu0 %1778 }
 0xb25   : > { %3798 = vpow2.f32 %v1788_v31  ;;  %v1783_v54 = vsub.f32 %v1765_v11, %v1779_v53  ;;  %v3883_v53 = vld [vmem:[%s4520_s30 + $0x8] sm:$0xff] }
 0xb27   : > { %v1790_v33 = vmul.f32 1.442695, %v1783_v54 }
 0xb29   : > { %3800 = vpow2.f32 %v1790_v33  ;;  %v3884_v33 = vld [vmem:[%s4520_s30 + $0x10] sm:$0xff] }
 0xb2f   : > { %v3799_v35 = vpop.eup %3798 }
 0xb30   : > { %v1798_v36 = vsel %vm1011_vm7, %v3799_v35, 0.0 }
 0xb31   : > { %1799 = vadd.xlane.f32.xlu0 %v1798_v36 }
 0xb33   : > { %v3801_v37 = vpop.eup %3800 }
 0xb34   : > { %v1801_v38 = vsel %vm1011_vm7, %v3801_v37, 0.0 }
 0xb35   : > { %1802 = vadd.xlane.f32.xlu1 %v1801_v38 }
 0xb46   : > { %1861 = vrot.lane.b32.xlu1 %v4590_v44, %s4184_s22 }
 0xb47   : > { %1814 = vrot.lane.b32.xlu0 %v4592_v46, %s4184_s22 }
 0xb4a   : > { %1402 = vrot.lane.b32.xlu1 %v1398_v28, %s4184_s22 }
 0xb4b   : > { %1657 = vrot.lane.b32.xlu0 %v1653_v55, %s4183_s21 }
 0xb4e   : > { %1404 = vrot.lane.b32.xlu1 %v1399_v45, %s4184_s22 }
 0xb52   : > { %1659 = vrot.lane.b32.xlu1 %v1654_v5, %s4183_s21 }
 0xbab   : > { %v1794_v42 = vpop.xlane.xlu0 %1793 }
 0xbad   : > { %v1797_v40 = vpop.xlane.xlu1 %1796 }
 0xbae   : > { %3802 = vrcp.f32 %v1797_v40  ;;  %v3658_v40 = vld [vmem:[#allocation12] ss:$16 sps:$4 sm:$0xff]  }
 0xbaf   : > { %3804 = vrcp.f32 %v1794_v42  ;;  %v3660_v42 = vld [vmem:[#allocation12 + $0x4] ss:$16 sps:$4 sm:$0xff]  }
 0xbb8   : > { %v3803_v44 = vpop.eup %3802 }
 0xbb9   : > { %v3805_v47 = vpop.eup %3804  ;;  %v1809_v48 = vmul.f32 %v3803_v44, %v3797_v29  ;;  %v3661_v44 = vld [vmem:[#allocation12 + $0x8] ss:$16 sps:$4 sm:$0xff]  }
 0xbba   : > { %v1808_v25 = vmul.f32 %v3805_v47, %v3795_v58  ;;  %v3666_v47 = vld [vmem:[#allocation12 + $0x24] ss:$16 sps:$4 sm:$0xff]  }
 0xbbc   : > { %v1812_v49 = vpack.c.bf16 %v1809_v48, %v1808_v25  ;;  %v3669_v48 = vld [vmem:[#allocation12 + $0x2c] ss:$16 sps:$4 sm:$0xff]   ;;  %v3664_v25 = vld [vmem:[#allocation12 + $0x20] ss:$16 sps:$4 sm:$0xff]  }
 0xbbe   : > { %v1800_v46 = vpop.xlane.xlu0 %1799 }
 0xbbf   : > { %3806 = vrcp.f32 %v1800_v46  ;;  %v3663_v46 = vld [vmem:[#allocation12 + $0xc] ss:$16 sps:$4 sm:$0xff]  }
 0xbc2   : > { %v1803_v27 = vpop.xlane.xlu1 %1802  ;;  %v1815_v28 = vpop.permute.xlu0 %1814 }
 0xbc3   : > { %3808 = vrcp.f32 %v1803_v27  ;;  %3464 = vmatpush3.bf16.msra.mxu1 %v1815_v28  ;;  %v3667_v27 = vld [vmem:[#allocation12 + $0x28] ss:$16 sps:$4 sm:$0xff]  }
 0xbc4   : > { %3475 = vmatprep.subr.bf16.mxu1 %v3650_v61 }
 0xbc6   : > { %v1862_v50 = vpop.permute.xlu1 %1861  ;;  %3466 = vmatmul.mubr.msk.bf16.vlgmr.msra.gmra.mrb[28].mxu1 %vm1011_vm7, %v1812_v49  ;;  %v1658_v45 = vpop.permute.xlu0 %1657 }
 0xbc7   : > { %3470 = vmatpush3.bf16.msra.mxu0 %v1862_v50  ;;  %3476 = vmatpush3.bf16.msra.mxu1 %v3650_v61 }
 0xbc8   : > { %3477 = vmatprep.subr.bf16.mxu1 %v3651_v62  ;;  %2329 = vmatprep.subr.bf16.mxu0 %v3660_v42 }
 0xbc9   : > { %v3807_v43 = vpop.eup %3806 }
 0xbca   : > { %v1403_v41 = vpop.permute.xlu1 %1402  ;;  %v1810_v52 = vmul.f32 %v3807_v43, %v3799_v35 }
 0xbcb   : > { %1409 = vst.msk [vmem:[#allocation2] sm:$0xff] %vm1408_vm8, %v1403_v41  ;;  %3478 = vmatpush3.bf16.msra.mxu1 %v3651_v62 }
 0xbcc   : > { %1664 = vst.msk [vmem:[#allocation2] sm:$0xff] %vm1663_vm9, %v1658_v45  ;;  %3479 = vmatprep.subr.bf16.mxu1 %v3652_v63 }
 0xbcd   : > { %v3809_v51 = vpop.eup %3808 }
 0xbce   : > { %v1811_v55 = vmul.f32 %v3809_v51, %v3801_v37  ;;  %v1405_v56 = vpop.permute.xlu1 %1404  ;;  %v3885_v37 = vld [vmem:[%s4520_s30 + $0x18] sm:$0xff]  ;;  %s5034_s30 = sld [smem:[#allocation24_spill]] }
 0xbcf   : > { %1410 = vst.msk [vmem:[#allocation2 + $0x8] sm:$0xff] %vm1408_vm8, %v1405_v56  ;;  %3480 = vmatpush3.bf16.msra.mxu1 %v3652_v63 }
 0xbd0   : > { %v1813_v57 = vpack.c.bf16 %v1811_v55, %v1810_v52  ;;  %3481 = vmatprep.subr.bf16.mxu1 %v3653_v0 }
 0xbd2   : > { %v1660_v59 = vpop.permute.xlu1 %1659  ;;  %3472 = vmatmul.mubr.msk.bf16.vlgmr.msra.gmra.mrb[40].mxu0 %vm1011_vm7, %v1813_v57 }
 0xbd3   : > { %1665 = vst.msk [vmem:[#allocation2 + $0x8] sm:$0xff] %vm1663_vm9, %v1660_v59  ;;  %2361 = vmatprep.mubr.bf16.mxu0 %v4179_v39  ;;  %3482 = vmatpush3.bf16.msra.mxu1 %v3653_v0 }
 0xbd4   : > { %3483 = vmatprep.subr.bf16.mxu1 %v3654_v1  ;;  %2330 = vmatpush1.bf16.msra.mxu0 %v3658_v40 }
 0xbd5   : > { %2331 = vmatprep.subr.bf16.mxu0 %v3666_v47 }
 0xbd7   : > { %3484 = vmatpush3.bf16.msra.mxu1 %v3654_v1  ;;  %v3672_v1 = vld [vmem:[#allocation12 + $0x44] ss:$16 sps:$4 sm:$0xff]  }
 0xbd8   : > { %3485 = vmatprep.subr.bf16.mxu1 %v3655_v2  ;;  %2332 = vmatpush1.bf16.msra.mxu0 %v3664_v25  ;;  %v3158_v25 = vld [vmem:[%s5033_s17] ss:$0 sm:$0xff] }
 0xbd9   : > { %2333 = vmatprep.subr.bf16.mxu0 %v3672_v1 }
 0xbdb   : > { %3486 = vmatpush3.bf16.msra.mxu1 %v3655_v2  ;;  %v3675_v2 = vld [vmem:[#allocation12 + $0x4c] ss:$16 sps:$4 sm:$0xff]  }
 0xbdc   : > { %3487 = vmatprep.subr.bf16.mxu1 %v3656_v7 }
 0xbdf   : > { %3488 = vmatpush3.bf16.msra.mxu1 %v3656_v7  ;;  %v3679_v7 = vld [vmem:[#allocation12 + $0x68] ss:$16 sps:$4 sm:$0xff]  }
 0xbe0   : > { %3489 = vmatprep.subr.bf16.mxu1 %v3657_v8 }
 0xbe3   : > { %3490 = vmatpush3.bf16.msra.mxu1 %v3657_v8  ;;  %v3684_v8 = vld [vmem:[#allocation12 + $0x84] ss:$16 sps:$4 sm:$0xff]  }
 0xbe4   : > { %2382 = vmatprep.subr.bf16.mxu1 %v3663_v46 }
 0xc99   : > { %v1854_v14 = vpop.f32.mrb[28].mxu1 }
 0xc9a   : > { %v3467_v3 = vpop.f32.mrb[29].mxu1 }
 0xc9b   : > { %v1857_v4 = vpop.f32.mrb[30].mxu1  ;;  %v3673_v3 = vld [vmem:[#allocation12 + $0x48] ss:$16 sps:$4 sm:$0xff]  }
 0xc9c   : > { %v1908_v5 = vpack.c.bf16 %v1857_v4, %v1854_v14  ;;  %v3468_v6 = vpop.f32.mrb[31].mxu1  ;;  %v3670_v14 = vld [vmem:[#allocation12 + $0x40] ss:$16 sps:$4 sm:$0xff]   ;;  %v3678_v4 = vld [vmem:[#allocation12 + $0x64] ss:$16 sps:$4 sm:$0xff]  }
 0xc9d   : > { %2334 = vmatpush1.bf16.msra.mxu0 %v3670_v14  ;;  %v3676_v6 = vld [vmem:[#allocation12 + $0x60] ss:$16 sps:$4 sm:$0xff]  }
 0xc9e   : > { %1912 = vrot.lane.b32.xlu0 %v1908_v5, %s4182_s29  ;;  %v3681_v5 = vld [vmem:[#allocation12 + $0x6c] ss:$16 sps:$4 sm:$0xff]   ;;  %2335 = vmatprep.subr.bf16.mxu0 %v3678_v4  ;;  %v3707_v4 = vld [vmem:[#allocation14 + $0xc0] sm:$0xff]  }
 0xca1   : > { %2336 = vmatpush1.bf16.msra.mxu0 %v3676_v6  ;;  %v3711_v6 = vld [vmem:[#allocation14 + $0xc8] sm:$0xff]  }
 0xca2   : > { %2337 = vmatprep.subr.bf16.mxu0 %v3684_v8  ;;  %v3713_v8 = vld [vmem:[#allocation14 + $0x88] sm:$0xff]  }
 0xca5   : > { %v1901_v9 = vpop.f32.mrb[40].mxu0 }
 0xca6   : > { %v3473_v10 = vpop.f32.mrb[41].mxu0 }
 0xca7   : > { %v1904_v11 = vpop.f32.mrb[42].mxu0  ;;  %v3682_v10 = vld [vmem:[#allocation12 + $0x80] ss:$16 sps:$4 sm:$0xff]  }
 0xca8   : > { %v1909_v12 = vpack.c.bf16 %v1904_v11, %v1901_v9  ;;  %v3474_v13 = vpop.f32.mrb[43].mxu0  ;;  %v3687_v9 = vld [vmem:[#allocation12 + $0x8c] ss:$16 sps:$4 sm:$0xff]   ;;  %v3685_v11 = vld [vmem:[#allocation12 + $0x88] ss:$16 sps:$4 sm:$0xff]   ;;  %2338 = vmatpush1.bf16.msra.mxu0 %v3682_v10  ;;  %v3716_v10 = vld [vmem:[#allocation14 + $0x10] sm:$0xff]  }
 0xca9   : > { %v3693_v13 = vld [vmem:[#allocation12 + $0xac] ss:$16 sps:$4 sm:$0xff]  }
 0xcaa   : > { %1914 = vrot.lane.b32.xlu1 %v1909_v12, %s4182_s29  ;;  %v3690_v12 = vld [vmem:[#allocation12 + $0xa4] ss:$16 sps:$4 sm:$0xff]   ;;  %s5035_s29 = sld [smem:[#allocation25_spill]] }
 0xcab   : > { %2339 = vmatprep.subr.bf16.mxu0 %v3690_v12  ;;  %v3718_v12 = vld [vmem:[#allocation14 + $0x58] sm:$0xff]  }
 0xd10   : > { %v1913_v17 = vpop.permute.xlu0 %1912 }
 0xd11   : > { %1919 = vst.msk [vmem:[#allocation2] sm:$0xff] %vm1918_vm10, %v1913_v17  ;;  %v3688_v17 = vld [vmem:[#allocation12 + $0xa0] ss:$16 sps:$4 sm:$0xff]  }
 0xd12   : > { %2340 = vmatpush1.bf16.msra.mxu0 %v3688_v17  ;;  %v3720_v17 = vld [vmem:[#allocation14 + $0x18] sm:$0xff]  }
 0xd18   : > { %v1921_v19 = vld [vmem:[#allocation2] sm:$0xff] }
 0xd19   : > { %3491 = vmatprep.mubr.bf16.mxu1 %v1921_v19  ;;  %v3691_v19 = vld [vmem:[#allocation12 + $0xa8] ss:$16 sps:$4 sm:$0xff]  }
 0xd1c   : > { %v1915_v34 = vpop.permute.xlu1 %1914 }
 0xd1d   : > { %1920 = vst.msk [vmem:[#allocation2 + $0x8] sm:$0xff] %vm1918_vm10, %v1915_v34  ;;  %v3696_v34 = vld [vmem:[#allocation12 + $0xc4] ss:$16 sps:$4 sm:$0xff]  }
 0xd1e   : > { %2341 = vmatprep.subr.bf16.mxu0 %v3696_v34  ;;  %v3722_v34 = vld [vmem:[#allocation14 + $0x60] sm:$0xff]  }
 0xd24   : > { %v1922_v21 = vld [vmem:[#allocation2 + $0x8] sm:$0xff] }
 0xd25   : > { %3492 = vmatmul.mubr.bf16.vlgmr.msra.gmra.mrb[32].mxu1 %v1922_v21  ;;  %v3699_v21 = vld [vmem:[#allocation12 + $0xcc] ss:$16 sps:$4 sm:$0xff]  }
 0xd26   : > { %2414 = vmatprep.mubr.bf16.mxu1 %v4179_v39  ;;  %2383 = vmatpush1.bf16.msra.mxu1 %v3661_v44 }
 0xd27   : > { %2384 = vmatprep.subr.bf16.mxu1 %v3669_v48 }
 0xd2a   : > { %2385 = vmatpush1.bf16.msra.mxu1 %v3667_v27 }
 0xd2b   : > { %2386 = vmatprep.subr.bf16.mxu1 %v3675_v2 }
 0xd2e   : > { %2387 = vmatpush1.bf16.msra.mxu1 %v3673_v3  ;;  %v3706_v3 = vld [vmem:[#allocation14 + $0x40] sm:$0xff]  }
 0xd2f   : > { %2388 = vmatprep.subr.bf16.mxu1 %v3681_v5  ;;  %v3709_v5 = vld [vmem:[#allocation14 + $0x80] sm:$0xff]  }
 0xd32   : > { %2389 = vmatpush1.bf16.msra.mxu1 %v3679_v7  ;;  %v3712_v7 = vld [vmem:[#allocation14 + $0x8] sm:$0xff]  }
 0xd33   : > { %2390 = vmatprep.subr.bf16.mxu1 %v3687_v9  ;;  %v3715_v9 = vld [vmem:[#allocation14 + $0xd0] sm:$0xff]  }
 0xd36   : > { %2391 = vmatpush1.bf16.msra.mxu1 %v3685_v11  ;;  %v3717_v11 = vld [vmem:[#allocation14 + $0x90] sm:$0xff]  }
 0xd37   : > { %2392 = vmatprep.subr.bf16.mxu1 %v3693_v13  ;;  %v3719_v13 = vld [vmem:[#allocation14 + $0xd8] sm:$0xff]  }
 0xd3a   : > { %2393 = vmatpush1.bf16.msra.mxu1 %v3691_v19  ;;  %v3721_v19 = vld [vmem:[#allocation14 + $0x98] sm:$0xff]  }
 0xd3b   : > { %2394 = vmatprep.subr.bf16.mxu1 %v3699_v21  ;;  %v3723_v21 = vld [vmem:[#allocation14 + $0xe0] sm:$0xff]  }
 0xdf8   : > { %v3493_v23 = vpop.f32.mrb[32].mxu1 }
 0xdf9   : > { %v2028_v24 = vpop.f32.mrb[33].mxu1  ;;  %v2037_v60 = vadd.f32 %v3493_v23, %v3149_v22  ;;  %v3697_v23 = vld [vmem:[#allocation12 + $0xc8] ss:$16 sps:$4 sm:$0xff]  }
 0xdfa   : > { %v2029_v58 = vadd.f32 %v3149_v22, %v2028_v24  ;;  %v3494_v26 = vpop.f32.mrb[34].mxu1  ;;  %v3702_v24 = vld [vmem:[#allocation12 + $0xe4] ss:$16 sps:$4 sm:$0xff]   ;;  %2395 = vmatpush1.bf16.msra.mxu1 %v3697_v23 }
 0xdfb   : > { %v2031_v29 = vpop.f32.mrb[35].mxu1  ;;  %v4799_v35 = vadd.f32 %v3884_v33, %v2037_v60  ;;  %v2040_v36 = vadd.f32 %v3494_v26, %v3149_v22  ;;  %v3700_v26 = vld [vmem:[#allocation12 + $0xe0] ss:$16 sps:$4 sm:$0xff]  }
 0xdfc   : > { %v4792_v32 = vadd.f32 %v3882_v30, %v2029_v58  ;;  %v2032_v31 = vadd.f32 %v3149_v22, %v2031_v29  ;;  %v3694_v22 = vld [vmem:[#allocation12 + $0xc0] ss:$16 sps:$4 sm:$0xff]   ;;  %v3705_v58 = vld [vmem:[#allocation12 + $0xec] ss:$16 sps:$4 sm:$0xff]   ;;  %v3703_v29 = vld [vmem:[#allocation12 + $0xe8] ss:$16 sps:$4 sm:$0xff]  }
 0xdfd   : > { %v4804_v38 = vadd.f32 %v3885_v37, %v2040_v36  ;;  %2342 = vmatpush1.bf16.msra.mxu0 %v3694_v22  ;;  %2396 = vmatprep.subr.bf16.mxu1 %v3705_v58  ;;  %v3724_v22 = vld [vmem:[#allocation14 + $0x20] sm:$0xff]   ;;  %v3727_v58 = vld [vmem:[#allocation14 + $0xe8] sm:$0xff]  }
 0xdfe   : > { %v4795_v54 = vadd.f32 %v3883_v53, %v2032_v31  ;;  %2049 = vadd.xlane.f32.xlu0 %v4792_v32  ;;  %2343 = vmatprep.subr.bf16.mxu0 %v3702_v24  ;;  %v3725_v23 = vld [vmem:[#allocation14 + $0xa0] sm:$0xff]   ;;  %v3726_v24 = vld [vmem:[#allocation14 + $0x68] sm:$0xff]  }
 0xdff   : > { %2397 = vmatpush1.bf16.msra.mxu1 %v3703_v29  ;;  %v3729_v29 = vld [vmem:[#allocation14 + $0xa8] sm:$0xff]  }
 0xe00   : > { %2051 = vadd.xlane.f32.xlu1 %v4795_v54  ;;  %3331 = vmatprep.subr.bf16.mxu1 %v3707_v4 }
 0xe01   : > { %2344 = vmatpush1.bf16.msra.mxu0 %v3700_v26  ;;  %v3728_v26 = vld [vmem:[#allocation14 + $0x28] sm:$0xff]  }
 0xe02   : > { %2053 = vadd.xlane.f32.xlu0 %v4799_v35  ;;  %3303 = vmatprep.subr.bf16.mxu0 %v3706_v3 }
 0xe06   : > { %2055 = vadd.xlane.f32.xlu0 %v4804_v38 }
 0xe8b   : > { %v2050_v28 = vpop.xlane.xlu0 %2049 }
 0xe8c   : > { %v2057_v49 = vmul.f32 0.0078125, %v2050_v28 }
 0xe8d   : > { %v2052_v50 = vpop.xlane.xlu1 %2051 }
 0xe8e   : > { %v4808_v41 = vsub.f32 %v4792_v32, %v2057_v49  ;;  %v2058_v43 = vmul.f32 0.0078125, %v2052_v50 }
 0xe8f   : > { %v2054_v45 = vpop.xlane.xlu0 %2053 }
 0xe90   : > { %v4811_v51 = vsub.f32 %v4795_v54, %v2058_v43  ;;  %v2059_v52 = vmul.f32 0.0078125, %v2054_v45  ;;  %v2065_v55 = vmul.f32 %v4808_v41, %v4808_v41  ;;  %v3159_v45 = vld [vmem:[%s5034_s30] ss:$0 sm:$0xff]  ;;  %s2941_s30 = scalar_lea.sflag [#allocation5], %s4514_s1 }
 0xe92   : > { %v4816_v56 = vsub.f32 %v4799_v35, %v2059_v52  ;;  %2069 = vadd.xlane.f32.xlu0 %v2065_v55  ;;  %v2066_v57 = vmul.f32 %v4811_v51, %v4811_v51 }
 0xe93   : > { %v2056_v59 = vpop.xlane.xlu0 %2055 }
 0xe94   : > { %v2060_v61 = vmul.f32 0.0078125, %v2056_v59  ;;  %2071 = vadd.xlane.f32.xlu1 %v2066_v57  ;;  %v2067_v62 = vmul.f32 %v4816_v56, %v4816_v56 }
 0xe96   : > { %v4823_v63 = vsub.f32 %v4804_v38, %v2060_v61  ;;  %2073 = vadd.xlane.f32.xlu0 %v2067_v62 }
 0xe98   : > { %v2068_v0 = vmul.f32 %v4823_v63, %v4823_v63 }
 0xe9a   : > { %2075 = vadd.xlane.f32.xlu1 %v2068_v0 }
 0xf1f   : > { %v2070_v60 = vpop.xlane.xlu0 %2069 }
 0xf20   : > { %v2077_v30 = vmul.f32 0.0078125, %v2070_v60  ;;  %v3730_v60 = vld [vmem:[#allocation14 + $0x70] sm:$0xff]  }
 0xf21   : > { %v2072_v31 = vpop.xlane.xlu1 %2071 }
 0xf22   : > { %v2081_v53 = vadd.f32 1e-05, %v2077_v30  ;;  %v2078_v33 = vmul.f32 0.0078125, %v2072_v31  ;;  %v3731_v30 = vld [vmem:[#allocation14 + $0xf0] sm:$0xff]  }
 0xf23   : > { %v2074_v36 = vpop.xlane.xlu0 %2073  ;;  %v3732_v31 = vld [vmem:[#allocation14 + $0x30] sm:$0xff]  }
 0xf24   : > { %3810 = vrsqrt.f32 %v2081_v53  ;;  %v2082_v37 = vadd.f32 1e-05, %v2078_v33  ;;  %v2079_v40 = vmul.f32 0.0078125, %v2074_v36  ;;  %v3733_v53 = vld [vmem:[#allocation14 + $0xb0] sm:$0xff]   ;;  %v3734_v33 = vld [vmem:[#allocation14 + $0x78] sm:$0xff]  }
 0xf25   : > { %v3735_v36 = vld [vmem:[#allocation14 + $0xf8] sm:$0xff]  }
 0xf26   : > { %3812 = vrsqrt.f32 %v2082_v37  ;;  %v2083_v42 = vadd.f32 1e-05, %v2079_v40  ;;  %v3736_v37 = vld [vmem:[#allocation14 + $0x38] sm:$0xff]  }
 0xf27   : > { %v2076_v44 = vpop.xlane.xlu1 %2075  ;;  %v3737_v40 = vld [vmem:[#allocation14 + $0xb8] sm:$0xff]  }
 0xf28   : > { %3814 = vrsqrt.f32 %v2083_v42  ;;  %v2080_v46 = vmul.f32 0.0078125, %v2076_v44  ;;  %v2147_v42 = vld [vmem:[%s5035_s29] sm:$0xf]  ;;  %v2163_v44 = vsub.s32 3, %v4570_v15  ;;  %s4090_s29 = scalar_lea.vmem %s4089_s24, 1024 }
 0xf29   : > { %p4092_p3 = scmp.lt.s32.totalorder %s4090_s29, %s4084_s15 }
 0xf2a   : > { %v2084_v47 = vadd.f32 1e-05, %v2080_v46  ;;  %v2152_v46 = vrot.slane %v2147_v42, %v655_v16 }
 0xf2b   : > { %p4093_p2 = por %p4092_p3, %p4091_p1 }
 0xf2c   : > { %3816 = vrsqrt.f32 %v2084_v47  ;;  %v4847_v47 = vrot.slane %v2147_v42, %v663_v20 }
 0xf2d   : > { %p4094_p8 = pnand %p4093_p2, %p4087_p13 }
 0xf2e   : > { %v3811_v48 = vpop.eup %3810 }
 0xf2f   : > { %v2089_v27 = vmul.f32 %v3811_v48, %v4808_v41  ;;  %v4851_v48 = vrot.slane %v2147_v42, %v659_v18 }
 0xf30   : > { %v3813_v28 = vpop.eup %3812 }
 0xf31   : > { %v2090_v49 = vmul.f32 %v3813_v28, %v4811_v51  ;;  %v2099_v50 = vmul.f32 %v3158_v25, %v2089_v27 }
 0xf32   : > { %v3815_v43 = vpop.eup %3814 }
 0xf33   : > { %v2100_v52 = vmul.f32 %v3158_v25, %v2090_v49  ;;  %v2109_v55 = vadd.f32 %v3159_v45, %v2099_v50  ;;  %v2091_v59 = vmul.f32 %v3815_v43, %v4816_v56  ;;  %v3708_v56 = vld [vmem:[#allocation14] sm:$0xff]  }
 0xf35   : > { %v2110_v57 = vadd.f32 %v3159_v45, %v2100_v52  ;;  %v2101_v41 = vmul.f32 %v3158_v25, %v2091_v59 }
 0xf36   : > { %v3817_v61 = vpop.eup %3816 }
 0xf37   : > { %v2113_v62 = vpack.c.bf16 %v2110_v57, %v2109_v55  ;;  %v2092_v0 = vmul.f32 %v3817_v61, %v4823_v63  ;;  %v2111_v2 = vadd.f32 %v3159_v45, %v2101_v41  ;;  %v3710_v63 = vld [vmem:[#allocation14 + $0x48] sm:$0xff]  }
 0xf39   : > { %2362 = vmatmul.mubr.bf16.vlgmr.msra.gmra.mrb[44].mxu0 %v2113_v62  ;;  %2415 = vmatmul.mubr.bf16.vlgmr.msra.gmra.mrb[36].mxu1 %v2113_v62  ;;  %v2102_v1 = vmul.f32 %v3158_v25, %v2092_v0  ;;  %v4853_v25 = vrot.slane %v2147_v42, %v2163_v44 }
 0xf3a   : > { %2371 = vmatprep.mubr.bf16.mxu0 %v4179_v39  ;;  %2424 = vmatprep.mubr.bf16.mxu1 %v4179_v39  ;;  %v3714_v39 = vld [vmem:[#allocation14 + $0x50] sm:$0xff]  }
 0xf3b   : > { %v2112_v51 = vadd.f32 %v3159_v45, %v2102_v1  ;;  %3304 = vmatpush3.bf16.msra.mxu0 %v3708_v56  ;;  %3332 = vmatpush3.bf16.msra.mxu1 %v3709_v5 }
 0xf3c   : > { %3305 = vmatprep.subr.bf16.mxu0 %v3710_v63  ;;  %3333 = vmatprep.subr.bf16.mxu1 %v3711_v6 }
 0xf3d   : > { %v2114_v14 = vpack.c.bf16 %v2112_v51, %v2111_v2 }
 0xf3f   : > { %3306 = vmatpush3.bf16.msra.mxu0 %v3712_v7  ;;  %3334 = vmatpush3.bf16.msra.mxu1 %v3713_v8 }
 0xf40   : > { %3307 = vmatprep.subr.bf16.mxu0 %v3714_v39  ;;  %3335 = vmatprep.subr.bf16.mxu1 %v3715_v9 }
 0xf41   : > { %2372 = vmatmul.mubr.bf16.gmra.mrb[48].mxu0 %v2114_v14  ;;  %2425 = vmatmul.mubr.bf16.gmra.mrb[40].mxu1 %v2114_v14 }
 0xf43   : > { %3308 = vmatpush3.bf16.msra.mxu0 %v3716_v10  ;;  %3336 = vmatpush3.bf16.msra.mxu1 %v3717_v11 }
 0xf44   : > { %3309 = vmatprep.subr.bf16.mxu0 %v3718_v12  ;;  %3337 = vmatprep.subr.bf16.mxu1 %v3719_v13 }
 0xf47   : > { %3310 = vmatpush3.bf16.msra.mxu0 %v3720_v17  ;;  %3338 = vmatpush3.bf16.msra.mxu1 %v3721_v19 }
 0xf48   : > { %3311 = vmatprep.subr.bf16.mxu0 %v3722_v34  ;;  %3339 = vmatprep.subr.bf16.mxu1 %v3723_v21 }
 0xf4b   : > { %3312 = vmatpush3.bf16.msra.mxu0 %v3724_v22  ;;  %3340 = vmatpush3.bf16.msra.mxu1 %v3725_v23 }
 0xf4c   : > { %3313 = vmatprep.subr.bf16.mxu0 %v3726_v24  ;;  %3341 = vmatprep.subr.bf16.mxu1 %v3727_v58 }
 0xf4f   : > { %3314 = vmatpush3.bf16.msra.mxu0 %v3728_v26  ;;  %3342 = vmatpush3.bf16.msra.mxu1 %v3729_v29 }
 0xf50   : > { %3315 = vmatprep.subr.bf16.mxu0 %v3730_v60  ;;  %3343 = vmatprep.subr.bf16.mxu1 %v3731_v30 }
 0xf53   : > { %3316 = vmatpush3.bf16.msra.mxu0 %v3732_v31  ;;  %3344 = vmatpush3.bf16.msra.mxu1 %v3733_v53 }
 0xf54   : > { %3317 = vmatprep.subr.bf16.mxu0 %v3734_v33  ;;  %3345 = vmatprep.subr.bf16.mxu1 %v3735_v36 }
 0xf57   : > { %3318 = vmatpush3.bf16.msra.mxu0 %v3736_v37  ;;  %3346 = vmatpush3.bf16.msra.mxu1 %v3737_v40 }
0x100c   : > { %v2363_v27 = vpop.f32.mrb[44].mxu0  ;;  %v2416_v28 = vpop.f32.mrb[36].mxu1 }
0x100d   : > { %v4855_v49 = vadd.f32 %v2363_v27, %v2152_v46  ;;  %v4858_v50 = vadd.f32 %v2416_v28, %v4847_v47  ;;  %v2365_v43 = vpop.f32.mrb[45].mxu0  ;;  %v2418_v45 = vpop.f32.mrb[37].mxu1 }
0x100e   : > { %v4861_v16 = vadd.f32 %v2365_v43, %v4851_v48  ;;  %v4864_v20 = vadd.f32 %v2418_v45, %v4853_v25  ;;  %v2367_v15 = vpop.f32.mrb[46].mxu0  ;;  %v2420_v18 = vpop.f32.mrb[38].mxu1 }
0x100f   : > { %v3192_v52 = vmul.f32 -1.702, %v4855_v49  ;;  %v3194_v55 = vmul.f32 -1.702, %v4858_v50  ;;  %v4868_v57 = vadd.f32 %v2367_v15, %v2152_v46  ;;  %v4871_v59 = vadd.f32 %v2420_v18, %v4847_v47  ;;  %v2369_v61 = vpop.f32.mrb[47].mxu0  ;;  %v2422_v62 = vpop.f32.mrb[39].mxu1 }
0x1010   : > { %v3193_v0 = vmul.f32 -1.702, %v4861_v16  ;;  %v3195_v41 = vmul.f32 -1.702, %v4864_v20  ;;  %v4876_v1 = vadd.f32 %v2369_v61, %v4851_v48  ;;  %v4879_v51 = vadd.f32 %v2422_v62, %v4853_v25 }
0x1011   : > { %v2467_v2 = vmul.f32 1.442695, %v3192_v52  ;;  %v2471_v14 = vmul.f32 1.442695, %v3194_v55  ;;  %v3196_v3 = vmul.f32 -1.702, %v4868_v57 }
0x1012   : > { %v2469_v4 = vmul.f32 1.442695, %v3193_v0  ;;  %v2473_v56 = vmul.f32 1.442695, %v3195_v41  ;;  %v3198_v5 = vmul.f32 -1.702, %v4871_v59 }
0x1013   : > { %3818 = vpow2.f32 %v2467_v2  ;;  %v2475_v63 = vmul.f32 1.442695, %v3196_v3  ;;  %v3197_v6 = vmul.f32 -1.702, %v4876_v1  ;;  %v3199_v7 = vmul.f32 -1.702, %v4879_v51 }
0x1014   : > { %3820 = vpow2.f32 %v2471_v14  ;;  %v2479_v8 = vmul.f32 1.442695, %v3198_v5  ;;  %v2373_v39 = vpop.f32.mrb[48].mxu0  ;;  %v2426_v9 = vpop.f32.mrb[40].mxu1 }
0x1015   : > { %3822 = vpow2.f32 %v2469_v4  ;;  %v2477_v10 = vmul.f32 1.442695, %v3197_v6  ;;  %v4885_v11 = vadd.f32 %v2373_v39, %v2152_v46  ;;  %v2375_v12 = vpop.f32.mrb[49].mxu0  ;;  %v2428_v13 = vpop.f32.mrb[41].mxu1  ;;  %v2481_v17 = vmul.f32 1.442695, %v3199_v7 }
0x1016   : > { %3824 = vpow2.f32 %v2473_v56  ;;  %v4888_v19 = vadd.f32 %v2426_v9, %v4847_v47  ;;  %v4891_v34 = vadd.f32 %v2375_v12, %v4851_v48  ;;  %v2377_v21 = vpop.f32.mrb[50].mxu0  ;;  %v2430_v22 = vpop.f32.mrb[42].mxu1  ;;  %v4900_v37 = vadd.f32 %v2428_v13, %v4853_v25 }
0x1017   : > { %3826 = vpow2.f32 %v2475_v63  ;;  %v3200_v23 = vmul.f32 -1.702, %v4885_v11  ;;  %v4894_v24 = vadd.f32 %v2377_v21, %v2152_v46  ;;  %v2379_v58 = vpop.f32.mrb[51].mxu0  ;;  %v2432_v26 = vpop.f32.mrb[43].mxu1  ;;  %v4904_v52 = vadd.f32 %v2430_v22, %v4847_v47 }
0x1018   : > { %3828 = vpow2.f32 %v2479_v8  ;;  %v3202_v29 = vmul.f32 -1.702, %v4888_v19  ;;  %v3201_v60 = vmul.f32 -1.702, %v4891_v34  ;;  %v3203_v45 = vmul.f32 -1.702, %v4900_v37 }
0x1019   : > { %3830 = vpow2.f32 %v2477_v10  ;;  %v2483_v30 = vmul.f32 1.442695, %v3200_v23  ;;  %v3204_v31 = vmul.f32 -1.702, %v4894_v24  ;;  %v4907_v62 = vadd.f32 %v2379_v58, %v4851_v48 }
0x101a   : > { %3832 = vpow2.f32 %v2481_v17  ;;  %v2487_v53 = vmul.f32 1.442695, %v3202_v29  ;;  %v2485_v33 = vmul.f32 1.442695, %v3201_v60  ;;  %v4910_v2 = vadd.f32 %v2432_v26, %v4853_v25 }
0x101b   : > { %3834 = vpow2.f32 %v2483_v30  ;;  %v2491_v36 = vmul.f32 1.442695, %v3204_v31  ;;  %v2489_v4 = vmul.f32 1.442695, %v3203_v45  ;;  %v3206_v5 = vmul.f32 -1.702, %v4904_v52 }
0x101c   : > { %3836 = vpow2.f32 %v2487_v53  ;;  %v3205_v48 = vmul.f32 -1.702, %v4907_v62  ;;  %v3207_v7 = vmul.f32 -1.702, %v4910_v2 }
0x101d   : > { %v3819_v40 = vpop.eup %3818  ;;  %3838 = vpow2.f32 %v2485_v33  ;;  %v2495_v39 = vmul.f32 1.442695, %v3206_v5 }
0x101e   : > { %v3821_v42 = vpop.eup %3820  ;;  %v2499_v44 = vadd.f32 1.0, %v3819_v40  ;;  %3840 = vpow2.f32 %v2491_v36  ;;  %v2493_v12 = vmul.f32 1.442695, %v3205_v48  ;;  %v2497_v17 = vmul.f32 1.442695, %v3207_v7 }
0x101f   : > { %v3823_v46 = vpop.eup %3822  ;;  %v2501_v27 = vadd.f32 1.0, %v3821_v42 }
0x1020   : > { %v3825_v28 = vpop.eup %3824  ;;  %3842 = vrcp.f32 %v2499_v44  ;;  %v2500_v43 = vadd.f32 1.0, %v3823_v46 }
0x1021   : > { %v3827_v15 = vpop.eup %3826  ;;  %3844 = vrcp.f32 %v2501_v27  ;;  %v2502_v18 = vadd.f32 1.0, %v3825_v28 }
0x1022   : > { %v3829_v55 = vpop.eup %3828  ;;  %3846 = vrcp.f32 %v2500_v43  ;;  %v2503_v61 = vadd.f32 1.0, %v3827_v15 }
0x1023   : > { %v3831_v0 = vpop.eup %3830  ;;  %3848 = vrcp.f32 %v2502_v18  ;;  %v2505_v41 = vadd.f32 1.0, %v3829_v55 }
0x1024   : > { %v3833_v14 = vpop.eup %3832  ;;  %3850 = vrcp.f32 %v2503_v61  ;;  %v2504_v3 = vadd.f32 1.0, %v3831_v0 }
0x1025   : > { %v3835_v56 = vpop.eup %3834  ;;  %3852 = vrcp.f32 %v2505_v41  ;;  %v2506_v47 = vadd.f32 1.0, %v3833_v14 }
0x1026   : > { %3854 = vrcp.f32 %v2504_v3  ;;  %v2507_v63 = vadd.f32 1.0, %v3835_v56  ;;  %v3837_v6 = vpop.eup %3836 }
0x1027   : > { %3856 = vrcp.f32 %v2506_v47  ;;  %v3839_v8 = vpop.eup %3838  ;;  %v2509_v27 = vadd.f32 1.0, %v3837_v6 }
0x1028   : > { %3858 = vpow2.f32 %v2489_v4  ;;  %v3841_v25 = vpop.eup %3840  ;;  %v2508_v43 = vadd.f32 1.0, %v3839_v8 }
0x1029   : > { %3860 = vrcp.f32 %v2507_v63  ;;  %v2511_v10 = vadd.f32 1.0, %v3841_v25 }
0x102a   : > { %v3843_v9 = vpop.eup %3842 }
0x102b   : > { %v3845_v13 = vpop.eup %3844  ;;  %3862 = vrcp.f32 %v2511_v10  ;;  %v2547_v26 = vmul.f32 %v3843_v9, %v4855_v49 }
0x102c   : > { %v3847_v21 = vpop.eup %3846  ;;  %3864 = vpow2.f32 %v2495_v39  ;;  %v2549_v30 = vmul.f32 %v3845_v13, %v4858_v50 }
0x102d   : > { %v3849_v22 = vpop.eup %3848  ;;  %3866 = vpow2.f32 %v2493_v12  ;;  %v2548_v33 = vmul.f32 %v3847_v21, %v4861_v16 }
0x102e   : > { %v3851_v23 = vpop.eup %3850  ;;  %3868 = vpow2.f32 %v2497_v17  ;;  %v2550_v44 = vmul.f32 %v3849_v22, %v4864_v20 }
0x102f   : > { %v3853_v58 = vpop.eup %3852  ;;  %v2551_v29 = vmul.f32 %v3851_v23, %v4868_v57  ;;  %3870 = vrcp.f32 %v2509_v27 }
0x1030   : > { %v3855_v60 = vpop.eup %3854  ;;  %v2553_v31 = vmul.f32 %v3853_v58, %v4871_v59  ;;  %3872 = vrcp.f32 %v2508_v43 }
0x1031   : > { %v3857_v53 = vpop.eup %3856  ;;  %v2563_v36 = vpack.c.bf16 %v2551_v29, %v2547_v26  ;;  %v2552_v40 = vmul.f32 %v3855_v60, %v4876_v1 }
0x1032   : > { %v3859_v42 = vpop.eup %3858  ;;  %v2565_v46 = vpack.c.bf16 %v2553_v31, %v2549_v30  ;;  %v2554_v49 = vmul.f32 %v3857_v53, %v4879_v51 }
0x1033   : > { %v2564_v57 = vpack.c.bf16 %v2552_v40, %v2548_v33  ;;  %v3861_v28 = vpop.eup %3860  ;;  %v2510_v50 = vadd.f32 1.0, %v3859_v42 }
0x1034   : > { %v2566_v45 = vpack.c.bf16 %v2554_v49, %v2550_v44  ;;  %v2555_v15 = vmul.f32 %v3861_v28, %v4885_v11 }
0x1035   : > { %2866 = vmatprep.mubr.bf16.mxu0 %v2564_v57  ;;  %v3863_v59 = vpop.eup %3862  ;;  %3874 = vrcp.f32 %v2510_v50 }
0x1036   : > { %2915 = vmatprep.mubr.bf16.mxu1 %v2566_v45  ;;  %2867 = vmatmul.mubr.bf16.vlgmr.msra.gmra.mrb[52].mxu0 %v2563_v36  ;;  %v3865_v16 = vpop.eup %3864  ;;  %v2559_v1 = vmul.f32 %v3863_v59, %v4894_v24 }
0x1037   : > { %2916 = vmatmul.mubr.bf16.vlgmr.msra.gmra.mrb[44].mxu1 %v2565_v46  ;;  %v3867_v20 = vpop.eup %3866  ;;  %v2513_v51 = vadd.f32 1.0, %v3865_v16 }
0x1038   : > { %v3869_v18 = vpop.eup %3868  ;;  %v2512_v55 = vadd.f32 1.0, %v3867_v20  ;;  %v2567_v61 = vpack.c.bf16 %v2559_v1, %v2555_v15 }
0x1039   : > { %3876 = vrcp.f32 %v2513_v51  ;;  %v2514_v0 = vadd.f32 1.0, %v3869_v18  ;;  %v3871_v41 = vpop.eup %3870 }
0x103a   : > { %3878 = vrcp.f32 %v2512_v55  ;;  %v3873_v14 = vpop.eup %3872  ;;  %v2557_v56 = vmul.f32 %v3871_v41, %v4888_v19 }
0x103b   : > { %3880 = vrcp.f32 %v2514_v0  ;;  %v2556_v5 = vmul.f32 %v3873_v14, %v4891_v34 }
0x103f   : > { %v3875_v3 = vpop.eup %3874 }
0x1040   : > { %v2558_v48 = vmul.f32 %v3875_v3, %v4900_v37 }
0x1043   : > { %v3877_v4 = vpop.eup %3876 }
0x1044   : > { %v3879_v11 = vpop.eup %3878  ;;  %v2561_v24 = vmul.f32 %v3877_v4, %v4904_v52  ;;  %v3208_v52 = vld [vmem:[%s5036_s16] ss:$0 sm:$0xff] }
0x1045   : > { %v3881_v47 = vpop.eup %3880  ;;  %v2560_v63 = vmul.f32 %v3879_v11, %v4907_v62 }
0x1046   : > { %v2562_v6 = vmul.f32 %v3881_v47, %v4910_v2  ;;  %v2569_v7 = vpack.c.bf16 %v2561_v24, %v2557_v56 }
0x1047   : > { %v2568_v8 = vpack.c.bf16 %v2560_v63, %v2556_v5 }
0x1048   : > { %v2570_v25 = vpack.c.bf16 %v2562_v6, %v2558_v48 }
0x1049   : > { %2874 = vmatprep.mubr.bf16.mxu0 %v2568_v8 }
0x104a   : > { %2923 = vmatprep.mubr.bf16.mxu1 %v2570_v25  ;;  %2875 = vmatmul.mubr.bf16.gmra.mrb[56].mxu0 %v2567_v61 }
0x104b   : > { %2924 = vmatmul.mubr.bf16.gmra.mrb[48].mxu1 %v2569_v7 }
0x1109   : > { %v3319_v39 = vpop.f32.mrb[52].mxu0 }
0x110a   : > { %v3347_v19 = vpop.f32.mrb[44].mxu1  ;;  %v3320_v34 = vpop.f32.mrb[53].mxu0 }
0x110b   : > { %v3321_v62 = vadd.f32 %v3320_v34, %v3319_v39  ;;  %v3348_v9 = vpop.f32.mrb[45].mxu1  ;;  %v3322_v37 = vpop.f32.mrb[54].mxu0 }
0x110c   : > { %v3349_v10 = vadd.f32 %v3348_v9, %v3347_v19  ;;  %v3350_v2 = vpop.f32.mrb[46].mxu1  ;;  %v3323_v12 = vpop.f32.mrb[55].mxu0 }
0x110d   : > { %v2869_v13 = vadd.f32 %v3321_v62, %v3208_v52  ;;  %v3324_v17 = vadd.f32 %v3323_v12, %v3322_v37  ;;  %v3351_v21 = vpop.f32.mrb[47].mxu1 }
0x110e   : > { %v3352_v22 = vadd.f32 %v3351_v21, %v3350_v2 }
0x110f   : > { %v2918_v23 = vadd.f32 %v3349_v10, %v2869_v13  ;;  %v2872_v58 = vadd.f32 %v3324_v17, %v3208_v52 }
0x1111   : > { %v2932_v26 = vadd.f32 %v2918_v23, %v4792_v32  ;;  %v2921_v29 = vadd.f32 %v3352_v22, %v2872_v58 }
0x1113   : > { %2936 = vst [vmem:[%s542_s23] sm:$0xff] %v2932_v26  ;;  %v2933_v60 = vadd.f32 %v2921_v29, %v4795_v54 }
0x1115   : > { %2937 = vst [vmem:[%s542_s23 + $0x8] sm:$0xff] %v2933_v60 }
0x111d   : > { %v3325_v30 = vpop.f32.mrb[56].mxu0 }
0x111e   : > { %v3353_v31 = vpop.f32.mrb[48].mxu1  ;;  %v3326_v53 = vpop.f32.mrb[57].mxu0 }
0x111f   : > { %v3327_v33 = vadd.f32 %v3326_v53, %v3325_v30  ;;  %v3354_v36 = vpop.f32.mrb[49].mxu1  ;;  %v3328_v40 = vpop.f32.mrb[58].mxu0 }
0x1120   : > { %v3355_v42 = vadd.f32 %v3354_v36, %v3353_v31  ;;  %v3356_v44 = vpop.f32.mrb[50].mxu1  ;;  %v3329_v46 = vpop.f32.mrb[59].mxu0 }
0x1121   : > { %v2877_v49 = vadd.f32 %v3327_v33, %v3208_v52  ;;  %v3330_v32 = vadd.f32 %v3329_v46, %v3328_v40  ;;  %v3357_v27 = vpop.f32.mrb[51].mxu1 }
0x1122   : > { %v3358_v57 = vadd.f32 %v3357_v27, %v3356_v44 }
0x1123   : > { %v2926_v28 = vadd.f32 %v3355_v42, %v2877_v49  ;;  %v2880_v54 = vadd.f32 %v3330_v32, %v3208_v52 }
0x1125   : > { %v2934_v43 = vadd.f32 %v2926_v28, %v4799_v35  ;;  %v2929_v45 = vadd.f32 %v3358_v57, %v2880_v54 }
0x1127   : > { %2938 = vst [vmem:[%s542_s23 + $0x10] sm:$0xff] %v2934_v43  ;;  %v2935_v50 = vadd.f32 %v2929_v45, %v4804_v38 }
0x1129   : > { %2939 = vst [vmem:[%s542_s23 + $0x18] sm:$0xff] %v2935_v50 }
0x112a   : > { %4097 = shalt.err (!%p4094_p8)
}
0x112b   : > { %s4098_s21 = scalar_lea.hbm %s4945_s13, 512  ;;  %s4102_s23 = scalar_lea.hbm %s5037_s8, 1024 }
0x112c   : > { %p4099_p10 = scmp.ne.s32.totalorder %s4945_s13, %s4098_s21  ;;  %p4103_p0 = scmp.lt.u32.totalorder %s4945_s13, %s5037_s8 }
0x112d   : > { %p4104_p5 = scmp.lt.u32.totalorder %s4102_s23, %s4098_s21  ;;  %p4106_p6 = scmp.lt.u32.totalorder %s4098_s21, %s4945_s13 }
0x112e   : > { %p4100_p11 = pnand %p4099_p10, %p5038_p9 }
0x112f   : > { %p4105_p7 = por %p4104_p5, %p4103_p0 }
0x1130   : > { %p4101_p12 = pneg %p4100_p11 }
0x1131   : > { %p4107_p4 = por %p4106_p6, %p4105_p7 }
0x1133   : > { %p4108_p13 = pnand %p4107_p4, %p4101_p12 }
0x1135   : > { %4111 = shalt.err (!%p4108_p13)
}
0x1136   : > { %s4186_s17 = smov 128   ;;  %s4187_s15 = smov 8  }
0x1137   : > { %3521 = dma.vmem_to_hbm [thread:$0]  (%p5038_p9), %s4939_s12, 512, %s4945_s13, %s2941_s30, %s4186_s17, %s4186_s17, %s4187_s15  }
0x1138 PF: > { %s2970_s14 = sand.u32 1, %s4150_s25   ;;  %p5039_p1 = scmp.ne.s32.totalorder %s5024_s7, 0 }
0x1139   : > { %p5040_p3 = scmp.ge.s32.totalorder %s4162_s28, 2  ;;  %s2971_s24 = scalar_lea.sflag [#allocation5], %s2970_s14 }
0x113b   : > { %p3547_p2 = pnand %p5040_p3, %p5039_p1 }
0x113d   : > { %4145 = dma.done.wait (!%p3547_p2), %s2971_s24, 512  }
0x113e   : > { %4147 = vsyncadd (!%p3547_p2), %s2971_s24, 4294966784  ;;  %p29_p8 = scmp.ge.s32.totalorder %s4435_s18, 4   ;;  %s5041_s25 = smov %s4154_s26 }
0x113f   : > { %s5042_s26 = smov %s4158_s27  ;;  %s5043_s27 = smov %s4446_s10 }
0x1140   : > { %s5044_s28 = smov %s4435_s18  ;;  %31 = sbr.rel (!%p29_p8) target bundleno = 16 (0x10), region = 141 }
0x1147   :  { %2976 = vsyncpa [#allocation4], 1 }
0x1148   :  { %2978 = vsyncpa [#allocation4 + $0x1], 1 }
0x1149   :  { %2979 = vsyncpa [#allocation7], 1 }
0x114a   :  { %2980 = vsyncpa [#allocation10], 1 }
0x114b   :  { %2981 = vsyncpa [#allocation13], 1 }
0x114c   :  { %2982 = vsyncpa [#allocation5], 1 }
0x114d   :  { %2984 = vsyncpa [#allocation5 + $0x1], 1 }

// kernel: tpu_custom_call.1
= control target key start
LH: loop header
LB: loop body
LE: loop exit
PB: predicated region body
PF: predicated region fallthrough
CT: control target
= control target key end

     0   :  { %s4990_s0 = inlined_call_operand.hbm [shape: f32[4,16,128], index: 0, kind: input, shape index: {}]   ;;  %s4991_s1 = inlined_call_operand.hbm [shape: f32[1,128], index: 1, kind: input, shape index: {}]   ;;  %s4992_s2 = inlined_call_operand.hbm [shape: f32[1,128], index: 2, kind: input, shape index: {}]   ;;  %s4993_s3 = inlined_call_operand.hbm [shape: bf16[128,384], index: 3, kind: input, shape index: {}]   ;;  %s4994_s4 = inlined_call_operand.vmem [shape: f32[1,384], index: 4, kind: input, shape index: {}]   ;;  %s4995_s5 = inlined_call_operand.hbm [shape: bf16[128,128], index: 5, kind: input, shape index: {}]   ;;  %s4996_s6 = inlined_call_operand.vmem [shape: f32[1,128], index: 6, kind: input, shape index: {}]   ;;  %s4997_s7 = inlined_call_operand.vmem [shape: f32[1,128], index: 7, kind: input, shape index: {}]   ;;  %s4998_s8 = inlined_call_operand.vmem [shape: f32[1,128], index: 8, kind: input, shape index: {}]   ;;  %s4999_s9 = inlined_call_operand.hbm [shape: bf16[128,512], index: 9, kind: input, shape index: {}]   ;;  %s5000_s10 = inlined_call_operand.vmem [shape: f32[1,512], index: 10, kind: input, shape index: {}]   ;;  %s5001_s11 = inlined_call_operand.hbm [shape: bf16[512,128], index: 11, kind: input, shape index: {}]   ;;  %s5002_s12 = inlined_call_operand.vmem [shape: f32[1,128], index: 12, kind: input, shape index: {}]   ;;  %s5003_s13 = inlined_call_operand.hbm [shape: f32[4,16,128], index: 13, kind: output, shape index: {}]  }
   0x1   :  { %5008 = sst [smem:[#allocation21_spill]] %s4991_s1 }
   0x2   :  { %5009 = sst [smem:[#allocation22_spill]] %s4993_s3 }
   0x3   :  { %5010 = sst [smem:[#allocation23_spill]] %s4997_s7 }
   0x4   :  { %5011 = sst [smem:[#allocation24_spill]] %s4998_s8 }
   0x5   :  { %5012 = sst [smem:[#allocation25_spill]] %s5000_s10 }
   0x6   :  { %5013 = sst [smem:[#allocation26_spill]] %s5002_s12 }
   0x7   :  { %5014 = sst [smem:[#allocation27_spill]] %s5003_s13 }
   0x8   :  { %18 = vsyncpa [#allocation4], 0 }
   0x9   :  { %20 = vsyncpa [#allocation4 + $0x1], 0 }
   0xa   :  { %21 = vsyncpa [#allocation7], 0 }
   0xb   :  { %22 = vsyncpa [#allocation10], 0 }
   0xc   :  { %23 = vsyncpa [#allocation13], 0 }
   0xd   :  { %24 = vsyncpa [#allocation5], 0 }
   0xe   :  { %26 = vsyncpa [#allocation5 + $0x1], 0  ;;  %s4258_s25 = smov 0   ;;  %s4260_s26 = smov 0  }
   0xf   :  { %s4262_s27 = smov 0   ;;  %s4264_s28 = smov 0  }
  0x10 LB: > { %s4164_s29 = smov [#allocation6]   ;;  %s4279_s14 = sadd.s32 4294967295, %s4162_s28   ;;  %s4162_s28 = sphi %s4264_s28, %s5044_s28   ;;  %s4158_s27 = sphi %s4262_s27, %s5043_s27   ;;  %s4154_s26 = sphi %s4260_s26, %s5042_s26   ;;  %s4150_s25 = sphi %s4258_s25, %s5041_s25  }
  0x11   : > { %s354_s30 = sshll.u32 %s4164_s29, 4  ;;  %p3086_p0 = scmp.ge.s32.totalorder %s4162_s28, 1  ;;  %s4284_s30 = int_to_ptr.vmem [resolvable:$true] %s354_s30 }
  0x12   : > { %p5005_p1 = scmp.eq.s32.totalorder %s4279_s14, 0  ;;  %p341_p2 = scmp.lt.s32.totalorder %s4162_s28, 3 }
  0x13   : > { %s4165_s16 = smov [#allocation9]   ;;  %s4166_s19 = smov [#allocation12]  }
  0x14   : > { %p4286_p3 = pnand %p3086_p0, %p341_p2  ;;  %s375_s17 = sshll.u32 %s4165_s16, 4  ;;  %s4293_s17 = int_to_ptr.vmem [resolvable:$true] %s375_s17 }
  0x15   : > { %s413_s20 = sshll.u32 %s4166_s19, 4  ;;  %s5017_s1 = sld [smem:[#allocation21_spill]]  ;;  %s4301_s20 = int_to_ptr.vmem [resolvable:$true] %s413_s20 }
  0x16   : > { %s5015_s15 = scalar_select %p4286_p3, 1, 0 }
  0x17   : > { %p3523_p5 = pneg %p4286_p3 }
  0x19   : > { %p4297_p6 = pnand %p3523_p5, %p5005_p1 }
  0x1b   : > { %s3886_s23 = scalar_lea.hbm %s5017_s1, 16  ;;  %p4311_p8 = pneg %p4297_p6 }
  0x1c   : > { %p3887_p7 = scmp.ne.s32.totalorder %s5017_s1, %s3886_s23  ;;  %p3893_p11 = scmp.lt.u32.totalorder %s3886_s23, %s5017_s1 }
  0x1e   : > { %p3889_p9 = pnand %p4311_p8, %p3887_p7 }
  0x20   : > { %p3890_p10 = pneg %p3889_p9 }
  0x22   : > { %p3895_p12 = pnand %p3893_p11, %p3890_p10 }
  0x24   : > { %3898 = shalt.err (!%p3895_p12)
}
  0x25   : > { %s3899_s21 = scalar_lea.vmem %s4284_s30, 16  ;;  %s3906_s22 = scalar_lea.vmem %s4284_s30, 32 }
  0x26   : > { %p3900_p13 = scmp.ne.s32.totalorder %s4284_s30, %s3899_s21  ;;  %p3907_p5 = scmp.lt.s32.totalorder %s4284_s30, %s4284_s30 }
  0x27   : > { %p3908_p7 = scmp.lt.s32.totalorder %s3906_s22, %s3899_s21 }
  0x28   : > { %p3902_p0 = pnand %p3900_p13, %p4311_p8 }
  0x29   : > { %p3909_p9 = por %p3908_p7, %p3907_p5 }
  0x2a   : > { %p3903_p2 = pneg %p3902_p0 }
  0x2c   : > { %p3910_p4 = pnand %p3909_p9, %p3903_p2 }
  0x2e   : > { %3913 = shalt.err (!%p3910_p4)
}
  0x2f   : > { %3526 = dma.hbm_to_vmem [thread:$0]  (!%p4297_p6), %s5017_s1, 16, %s4284_s30, [#allocation7]  }
  0x30   : > { %s5019_s3 = sld [smem:[#allocation22_spill]] }
  0x36   : > { %s3914_s19 = scalar_lea.hbm %s5019_s3, 3072 }
  0x37   : > { %p3915_p10 = scmp.ne.s32.totalorder %s5019_s3, %s3914_s19  ;;  %p3921_p4 = scmp.lt.u32.totalorder %s3914_s19, %s5019_s3 }
  0x39   : > { %p3917_p11 = pnand %p3915_p10, %p4311_p8 }
  0x3b   : > { %p3918_p12 = pneg %p3917_p11 }
  0x3d   : > { %p3923_p13 = pnand %p3921_p4, %p3918_p12 }
  0x3f   : > { %3926 = shalt.err (!%p3923_p13)
}
  0x40   : > { %s3927_s30 = scalar_lea.vmem %s4293_s17, 3072  ;;  %p3935_p7 = scmp.lt.s32.totalorder %s4293_s17, %s4293_s17 }
  0x41   : > { %p3928_p0 = scmp.ne.s32.totalorder %s4293_s17, %s3927_s30  ;;  %p3936_p9 = scmp.lt.s32.totalorder %s3927_s30, %s3927_s30 }
  0x43   : > { %p3930_p2 = pnand %p3928_p0, %p4311_p8  ;;  %p3937_p10 = por %p3936_p9, %p3935_p7 }
  0x45   : > { %p3931_p5 = pneg %p3930_p2 }
  0x47   : > { %p3938_p11 = pnand %p3937_p10, %p3931_p5 }
  0x49   : > { %3941 = shalt.err (!%p3938_p11)
}
  0x4a   : > { %s4167_s10 = smov 192   ;;  %s4168_s12 = smov 12  }
  0x4b   : > { %3532 = dma.hbm_to_vmem [thread:$0]  (!%p4297_p6), %s5019_s3, 3072, %s4293_s17, [#allocation10], %s4167_s10, %s4167_s10, %s4168_s12  }
  0x4c   : > { %s3942_s19 = scalar_lea.hbm %s4999_s9, 4096 }
  0x4d   : > { %p3943_p12 = scmp.ne.s32.totalorder %s4999_s9, %s3942_s19  ;;  %p3949_p0 = scmp.lt.u32.totalorder %s3942_s19, %s4999_s9 }
  0x4f   : > { %p3945_p4 = pnand %p3943_p12, %p4311_p8 }
  0x51   : > { %p3946_p13 = pneg %p3945_p4 }
  0x53   : > { %p3951_p2 = pnand %p3949_p0, %p3946_p13 }
  0x55   : > { %3954 = shalt.err (!%p3951_p2)
}
  0x56   : > { %s3955_s17 = scalar_lea.vmem %s4301_s20, 4096  ;;  %p3963_p10 = scmp.lt.s32.totalorder %s4301_s20, %s4301_s20 }
  0x57   : > { %p3956_p5 = scmp.ne.s32.totalorder %s4301_s20, %s3955_s17  ;;  %p3964_p11 = scmp.lt.s32.totalorder %s3955_s17, %s3955_s17 }
  0x59   : > { %p3958_p7 = pnand %p3956_p5, %p4311_p8  ;;  %p3965_p12 = por %p3964_p11, %p3963_p10 }
  0x5b   : > { %p3959_p9 = pneg %p3958_p7 }
  0x5d   : > { %p3966_p4 = pnand %p3965_p12, %p3959_p9 }
  0x5f   : > { %3969 = shalt.err (!%p3966_p4)
}
  0x60   : > { %s4169_s10 = smov 256   ;;  %s4170_s1 = smov 16  }
  0x61   : > { %3538 = dma.hbm_to_vmem [thread:$0]  (!%p4297_p6), %s4999_s9, 4096, %s4301_s20, [#allocation13], %s4169_s10, %s4169_s10, %s4170_s1  }
  0x62   : > { %s4171_s23 = smov [#allocation8]   ;;  %s4172_s29 = smov [#allocation11]  }
  0x63   : > { %s365_s24 = sshll.u32 %s4171_s23, 4  ;;  %s391_s19 = sshll.u32 %s4172_s29, 4  ;;  %s366_s24 = int_to_ptr.vmem [resolvable:$true] %s365_s24  ;;  %s392_s19 = int_to_ptr.vmem [resolvable:$true] %s391_s19 }
  0x64   : > { %s3970_s30 = scalar_lea.hbm %s4992_s2, 16 }
  0x65   : > { %p3971_p13 = scmp.ne.s32.totalorder %s4992_s2, %s3970_s30  ;;  %p3977_p5 = scmp.lt.u32.totalorder %s3970_s30, %s4992_s2 }
  0x67   : > { %p3973_p0 = pnand %p3971_p13, %p4311_p8 }
  0x69   : > { %p3974_p2 = pneg %p3973_p0 }
  0x6b   : > { %p3979_p7 = pnand %p3977_p5, %p3974_p2 }
  0x6d   : > { %3982 = shalt.err (!%p3979_p7)
}
  0x6e   : > { %s3983_s20 = scalar_lea.vmem %s366_s24, 16  ;;  %s3990_s10 = scalar_lea.vmem %s366_s24, 32 }
  0x6f   : > { %p3984_p9 = scmp.ne.s32.totalorder %s366_s24, %s3983_s20  ;;  %p3991_p12 = scmp.lt.s32.totalorder %s366_s24, %s366_s24 }
  0x70   : > { %p3992_p4 = scmp.lt.s32.totalorder %s3990_s10, %s3983_s20 }
  0x71   : > { %p3986_p10 = pnand %p3984_p9, %p4311_p8 }
  0x72   : > { %p3993_p1 = por %p3992_p4, %p3991_p12 }
  0x73   : > { %p3987_p11 = pneg %p3986_p10 }
  0x75   : > { %p3994_p3 = pnand %p3993_p1, %p3987_p11 }
  0x77   : > { %3997 = shalt.err (!%p3994_p3)
}
  0x78   : > { %3529 = dma.hbm_to_vmem [thread:$0]  (!%p4297_p6), %s4992_s2, 16, %s366_s24, [#allocation7]  }
  0x79   : > { %s3998_s12 = scalar_lea.hbm %s4995_s5, 1024 }
  0x7a   : > { %p3999_p13 = scmp.ne.s32.totalorder %s4995_s5, %s3998_s12  ;;  %p4005_p3 = scmp.lt.u32.totalorder %s3998_s12, %s4995_s5 }
  0x7c   : > { %p4001_p0 = pnand %p3999_p13, %p4311_p8 }
  0x7e   : > { %p4002_p1 = pneg %p4001_p0 }
  0x80   : > { %p4007_p2 = pnand %p4005_p3, %p4002_p1 }
  0x82   : > { %4010 = shalt.err (!%p4007_p2)
}
  0x83   : > { %s4011_s22 = scalar_lea.vmem %s392_s19, 1024  ;;  %p4019_p10 = scmp.lt.s32.totalorder %s392_s19, %s392_s19 }
  0x84   : > { %p4012_p5 = scmp.ne.s32.totalorder %s392_s19, %s4011_s22  ;;  %p4020_p11 = scmp.lt.s32.totalorder %s4011_s22, %s4011_s22 }
  0x86   : > { %p4014_p7 = pnand %p4012_p5, %p4311_p8  ;;  %p4021_p12 = por %p4020_p11, %p4019_p10 }
  0x88   : > { %p4015_p9 = pneg %p4014_p7 }
  0x8a   : > { %p4022_p4 = pnand %p4021_p12, %p4015_p9 }
  0x8c   : > { %4025 = shalt.err (!%p4022_p4)
}
  0x8d   : > { %s4173_s24 = smov 64   ;;  %s4174_s30 = smov 4  }
  0x8e   : > { %3535 = dma.hbm_to_vmem [thread:$0]  (!%p4297_p6), %s4995_s5, 1024, %s392_s19, [#allocation10], %s4173_s24, %s4173_s24, %s4174_s30  }
  0x8f   : > { %s4175_s10 = smov [#allocation14]   ;;  %s4026_s8 = scalar_lea.hbm %s5001_s11, 4096 }
  0x90   : > { %s429_s3 = sshll.u32 %s4175_s10, 4  ;;  %p4027_p13 = scmp.ne.s32.totalorder %s5001_s11, %s4026_s8  ;;  %s430_s3 = int_to_ptr.vmem [resolvable:$true] %s429_s3 }
  0x91   : > { %p4033_p3 = scmp.lt.u32.totalorder %s4026_s8, %s5001_s11 }
  0x92   : > { %p4029_p0 = pnand %p4027_p13, %p4311_p8 }
  0x94   : > { %p4030_p1 = pneg %p4029_p0 }
  0x96   : > { %p4035_p2 = pnand %p4033_p3, %p4030_p1 }
  0x98   : > { %4038 = shalt.err (!%p4035_p2)
}
  0x99   : > { %s4039_s19 = scalar_lea.vmem %s430_s3, 4096  ;;  %p4047_p10 = scmp.lt.s32.totalorder %s430_s3, %s430_s3 }
  0x9a   : > { %p4040_p5 = scmp.ne.s32.totalorder %s430_s3, %s4039_s19  ;;  %p4048_p11 = scmp.lt.s32.totalorder %s4039_s19, %s4039_s19 }
  0x9c   : > { %p4042_p7 = pnand %p4040_p5, %p4311_p8  ;;  %p4049_p12 = por %p4048_p11, %p4047_p10 }
  0x9e   : > { %p4043_p9 = pneg %p4042_p7 }
  0xa0   : > { %p4050_p4 = pnand %p4049_p12, %p4043_p9 }
  0xa2   : > { %4053 = shalt.err (!%p4050_p4)
}
  0xa3   : > { %3541 = dma.hbm_to_vmem [thread:$0]  (!%p4297_p6), %s5001_s11, 4096, %s430_s3, [#allocation13], %s4173_s24, %s4173_s24, %s4174_s30  }
  0xa4   : > { %s3085_s16 = sadd.s32 4294967294, %s4162_s28   ;;  %s4435_s18 = sadd.s32 1, %s4162_s28  }
  0xa5   : > { %s36_s17 = ssub.s32 %s4162_s28, %s4435_s18  ;;  %s39_s20 = sadd.s32 1, %s4158_s27 }
  0xa6   : > { %p37_p8 = scmp.eq.s32.totalorder %s36_s17, 0  ;;  %p46_p13 = scmp.ne.s32.totalorder %s4158_s27, %s4154_s26 }
  0xa7   : > { %p47_p0 = scmp.eq.s32.totalorder %s4162_s28, 0  ;;  %p52_p1 = scmp.ne.s32.totalorder %s4154_s26, %s4150_s25 }
  0xa8   : > { %s4446_s10 = scalar_select %p37_p8, %s4158_s27, %s39_s20  }
  0xa9   : > { %p4448_p3 = por %p47_p0, %p46_p13  ;;  %p5021_p2 = scmp.eq.s32.totalorder %s4279_s14, 0 }
  0xaa   : > { %p328_p5 = scmp.eq.s32.totalorder %s4279_s14, 1  ;;  %p334_p7 = scmp.eq.s32.totalorder %s3085_s16, 1 }
  0xab   : > { %p4454_p6 = por %p5021_p2, %p52_p1  ;;  %p3556_p9 = scmp.lt.s32.totalorder %s4162_s28, 2 }
  0xac   : > { %s446_s30 = sand.u32 1, %s4158_s27   ;;  %p4461_p10 = por %p328_p5, %p46_p13 }
  0xad   : > { %p4465_p11 = por %p334_p7, %p52_p1  ;;  %s3094_s8 = sshll.u32 %s446_s30, 5 }
  0xae   : > { %s5023_s3 = scalar_select %p4461_p10, 1, 0 }
  0xaf   : > { %s5024_s7 = scalar_select %p4465_p11, 1, 0 }
  0xb0   : > { %s3248_s12 = sshll.u32 %s4162_s28, 9  ;;  %s450_s19 = scalar_lea.vmem [#allocation3], %s3094_s8 }
  0xb1   : > { %s4473_s29 = scalar_lea.hbm %s4990_s0, %s3248_s12  ;;  %s458_s21 = sshll.u32 %s450_s19, 4  ;;  %s4475_s21 = int_to_ptr.vmem [resolvable:$true] %s458_s21 }
  0xb2   : > { %p4479_p12 = pnand %p3556_p9, %p4448_p3  ;;  %s4483_s16 = scalar_lea.sflag [#allocation4], %s446_s30 }
  0xb3   : > { %s4054_s17 = scalar_lea.hbm %s4473_s29, 512  ;;  %s4059_s1 = scalar_lea.hbm %s4990_s0, 1024 }
  0xb4   : > { %p4055_p4 = scmp.ne.s32.totalorder %s4473_s29, %s4054_s17  ;;  %p4056_p8 = pneg %p4479_p12 }
  0xb5   : > { %p4060_p1 = scmp.lt.u32.totalorder %s4473_s29, %s4990_s0  ;;  %p4061_p3 = scmp.lt.u32.totalorder %s4059_s1, %s4054_s17 }
  0xb6   : > { %p4057_p13 = pnand %p4056_p8, %p4055_p4  ;;  %p4063_p5 = scmp.lt.u32.totalorder %s4054_s17, %s4473_s29 }
  0xb7   : > { %p4062_p2 = por %p4061_p3, %p4060_p1 }
  0xb8   : > { %p4058_p0 = pneg %p4057_p13 }
  0xb9   : > { %p4064_p7 = por %p4063_p5, %p4062_p2 }
  0xbb   : > { %p4065_p9 = pnand %p4064_p7, %p4058_p0 }
  0xbd   : > { %4068 = shalt.err (!%p4065_p9)
}
  0xbe   : > { %s4069_s30 = scalar_lea.vmem %s4475_s21, 512  ;;  %s4176_s23 = smov [#allocation3]  }
  0xbf   : > { %p4070_p4 = scmp.ne.s32.totalorder %s4475_s21, %s4069_s30  ;;  %s4074_s19 = sshll.u32 %s4176_s23, 4  ;;  %s4075_s19 = int_to_ptr.vmem [resolvable:$false] %s4074_s19 }
  0xc0   : > { %s4076_s20 = scalar_lea.vmem %s4075_s19, 1024  ;;  %p4077_p10 = scmp.lt.s32.totalorder %s4475_s21, %s4075_s19 }
  0xc1   : > { %p4072_p13 = pnand %p4070_p4, %p4056_p8  ;;  %p4078_p1 = scmp.lt.s32.totalorder %s4076_s20, %s4069_s30 }
  0xc3   : > { %p4073_p11 = pneg %p4072_p13  ;;  %p4079_p3 = por %p4078_p1, %p4077_p10 }
  0xc5   : > { %p4080_p2 = pnand %p4079_p3, %p4073_p11 }
  0xc7   : > { %4083 = shalt.err (!%p4080_p2)
}
  0xc8   : > { %s4177_s17 = smov 128   ;;  %s4178_s8 = smov 8  }
  0xc9   : > { %3545 = dma.hbm_to_vmem [thread:$0]  (!%p4479_p12), %s4473_s29, 512, %s4475_s21, %s4483_s16, %s4177_s17, %s4177_s17, %s4178_s8  }
  0xca   : > { %p5026_p8 = scmp.ne.s32.totalorder %s5015_s15, 0 }
  0xcb   : > { %s4514_s1 = sand.u32 (!%p5026_p8), 1, %s4154_s26  }
  0xcc   : > { %470 = sbr.rel (%p5026_p8) target bundleno = 4408 (0x1138), region = 72  ;;  %s3099_s12 = sshll.u32 (!%p5026_p8), %s4514_s1, 5 }
  0xcd   : > { %s473_s13 = scalar_lea.sflag (!%p5026_p8), [#allocation4], %s4514_s1  ;;  %s4520_s30 = scalar_lea.vmem (!%p5026_p8), [#allocation3], %s3099_s12 }
  0xd3   : > { %4129 = dma.done.wait (%p4454_p6), %s473_s13, 512  }
  0xd4   : > { %4131 = vsyncadd (%p4454_p6), %s473_s13, 4294966784  ;;  %p5027_p10 = scmp.eq.s32.totalorder %s4279_s14, 0 }
  0xd6   : > { %4133 = dma.done.wait (%p5027_p10), [#allocation7], 32   ;;  %p5028_p11 = pmov %p5027_p10 }
  0xd7   : > { %p5029_p12 = pmov %p5027_p10 }
  0xd8   : > { %4135 = vsyncadd (%p5028_p11), [#allocation7], 4294967264 }
  0xd9   : > { %4137 = dma.done.wait (%p5029_p12), [#allocation10], 4096   ;;  %p5030_p0 = pmov %p5027_p10 }
  0xdb   : > { %4139 = vsyncadd (%p5030_p0), [#allocation10], 4294963200  ;;  %p5031_p5 = pmov %p5030_p0 }
  0xdc   : > { %p5032_p7 = pmov %p5030_p0 }
  0xdd   : > { %4141 = dma.done.wait (%p5031_p5), [#allocation13], 8192  }
  0xde   : > { %4143 = vsyncadd (%p5032_p7), [#allocation13], 4294959104  ;;  %v546_v0 = vld [vmem:[%s4520_s30] sm:$0xff]  ;;  %v548_v1 = vld [vmem:[%s4520_s30 + $0x10] sm:$0xff]  ;;  %v4179_v39 = vmov 0   ;;  %vm4181_vm0 = vmmov 0  }
  0xdf   : > { %v547_v2 = vld [vmem:[%s4520_s30 + $0x8] sm:$0xff]  ;;  %552 = vadd.xlane.f32.xlu0 %v546_v0  ;;  %556 = vadd.xlane.f32.xlu1 %v548_v1  ;;  %v549_v3 = vld [vmem:[%s4520_s30 + $0x18] sm:$0xff]  ;;  %v3620_v5 = vld [vmem:[#allocation9] ss:$12 sps:$4 sm:$0xff]   ;;  %vm916_vm1 = vcmask 261120   ;;  %vm1011_vm7 = vcmask 130048  }
  0xe0   : > { %v3618_v4 = vld [vmem:[#allocation9 + $0x4] ss:$12 sps:$4 sm:$0xff]   ;;  %v3621_v6 = vld [vmem:[#allocation9 + $0x1c] ss:$12 sps:$4 sm:$0xff]   ;;  %v3625_v25 = vld [vmem:[#allocation9 + $0x34] ss:$12 sps:$4 sm:$0xff]   ;;  %828 = vmatprep.mubr.bf16.mxu0 %v4179_v39 }
  0xe1   : > { %v3623_v7 = vld [vmem:[#allocation9 + $0x8] ss:$12 sps:$4 sm:$0xff]   ;;  %796 = vmatprep.subr.bf16.mxu0 %v3618_v4  ;;  %v3624_v24 = vld [vmem:[#allocation9 + $0x18] ss:$12 sps:$4 sm:$0xff]   ;;  %v3627_v26 = vld [vmem:[#allocation9 + $0x20] ss:$12 sps:$4 sm:$0xff]  }
  0xe2   : > { %797 = vmatpush1.bf16.msra.mxu0 %v3620_v5  ;;  %3359 = vmatprep.subr.bf16.mxu1 %v3623_v7  ;;  %v3628_v27 = vld [vmem:[#allocation9 + $0x30] ss:$12 sps:$4 sm:$0xff]   ;;  %v3629_v28 = vld [vmem:[#allocation9 + $0x4c] ss:$12 sps:$4 sm:$0xff]   ;;  %v3632_v30 = vld [vmem:[#allocation9 + $0x48] ss:$12 sps:$4 sm:$0xff]  }
  0xe3   : > { %554 = vadd.xlane.f32.xlu0 %v547_v2  ;;  %558 = vadd.xlane.f32.xlu1 %v549_v3  ;;  %v3631_v29 = vld [vmem:[#allocation9 + $0x38] ss:$12 sps:$4 sm:$0xff]   ;;  %v3635_v32 = vld [vmem:[#allocation9 + $0x50] ss:$12 sps:$4 sm:$0xff]   ;;  %v3636_v33 = vld [vmem:[#allocation9 + $0x60] ss:$12 sps:$4 sm:$0xff]  }
  0xe4   : > { %798 = vmatprep.subr.bf16.mxu0 %v3621_v6  ;;  %3360 = vmatpush3.bf16.msra.mxu1 %v3623_v7  ;;  %v3633_v31 = vld [vmem:[#allocation9 + $0x64] ss:$12 sps:$4 sm:$0xff]   ;;  %v3637_v34 = vld [vmem:[#allocation9 + $0x7c] ss:$12 sps:$4 sm:$0xff]   ;;  %v3641_v37 = vld [vmem:[#allocation9 + $0x94] ss:$12 sps:$4 sm:$0xff]  }
  0xe5   : > { %3361 = vmatprep.subr.bf16.mxu1 %v3627_v26  ;;  %v3639_v35 = vld [vmem:[#allocation9 + $0x68] ss:$12 sps:$4 sm:$0xff]   ;;  %v3640_v36 = vld [vmem:[#allocation9 + $0x78] ss:$12 sps:$4 sm:$0xff]   ;;  %v3643_v38 = vld [vmem:[#allocation9 + $0x80] ss:$12 sps:$4 sm:$0xff]  }
  0xe6   : > { %799 = vmatpush1.bf16.msra.mxu0 %v3624_v24  ;;  %v3644_v40 = vld [vmem:[#allocation9 + $0x90] ss:$12 sps:$4 sm:$0xff]   ;;  %v3645_v41 = vld [vmem:[#allocation9 + $0xac] ss:$12 sps:$4 sm:$0xff]   ;;  %v3648_v43 = vld [vmem:[#allocation9 + $0xa8] ss:$12 sps:$4 sm:$0xff]  }
  0xe7   : > { %800 = vmatprep.subr.bf16.mxu0 %v3625_v25  ;;  %v3647_v42 = vld [vmem:[#allocation9 + $0x98] ss:$12 sps:$4 sm:$0xff]   ;;  %v3649_v44 = vld [vmem:[#allocation9 + $0xb0] ss:$12 sps:$4 sm:$0xff]   ;;  %s4182_s29 = smov 96   ;;  %s4183_s21 = smov 64  }
  0xe8   : > { %3362 = vmatpush3.bf16.msra.mxu1 %v3627_v26  ;;  %v3107_v59 = vld [vmem:[#allocation6] ss:$0 sm:$0xff]  ;;  %s4184_s22 = smov 32   ;;  %vm1408_vm8 = vcmask 523520   ;;  %vm1663_vm9 = vcmask 785920   ;;  %vm1918_vm10 = vcmask 1048320  }
  0xe9   : > { %3363 = vmatprep.subr.bf16.mxu1 %v3631_v29  ;;  %s5033_s17 = sld [smem:[#allocation23_spill]]  ;;  %s5036_s16 = sld [smem:[#allocation26_spill]] }
  0xea   : > { %801 = vmatpush1.bf16.msra.mxu0 %v3628_v27  ;;  %s542_s23 = scalar_lea.vmem [#allocation15], %s3099_s12  ;;  %s3250_s19 = sshll.u32 %s4279_s14, 9 }
  0xeb   : > { %802 = vmatprep.subr.bf16.mxu0 %v3629_v28  ;;  %s2955_s12 = sshll.u32 %s542_s23, 4  ;;  %s5037_s8 = sld [smem:[#allocation27_spill]]  ;;  %s4939_s12 = int_to_ptr.vmem [resolvable:$true] %s2955_s12 }
  0xec   : > { %3364 = vmatpush3.bf16.msra.mxu1 %v3631_v29  ;;  %s4084_s15 = scalar_lea.vmem %s4939_s12, 512  ;;  %p5038_p9 = scmp.ne.s32.totalorder %s5023_s3, 0 }
  0xed   : > { %3365 = vmatprep.subr.bf16.mxu1 %v3635_v32  ;;  %p4085_p6 = scmp.ne.s32.totalorder %s4939_s12, %s4084_s15  ;;  %s4185_s14 = smov [#allocation15]  }
  0xee   : > { %803 = vmatpush1.bf16.msra.mxu0 %v3632_v30  ;;  %s4088_s24 = sshll.u32 %s4185_s14, 4  ;;  %s4089_s24 = int_to_ptr.vmem [resolvable:$false] %s4088_s24 }
  0xef   : > { %804 = vmatprep.subr.bf16.mxu0 %v3633_v31  ;;  %p4086_p4 = pnand %p4085_p6, %p5038_p9  ;;  %p4091_p1 = scmp.lt.s32.totalorder %s4939_s12, %s4089_s24 }
  0xf0   : > { %3366 = vmatpush3.bf16.msra.mxu1 %v3635_v32 }
  0xf1   : > { %3367 = vmatprep.subr.bf16.mxu1 %v3639_v35  ;;  %s4945_s13 = scalar_lea.hbm %s5037_s8, %s3250_s19  ;;  %p4087_p13 = pneg %p4086_p4 }
  0xf2   : > { %805 = vmatpush1.bf16.msra.mxu0 %v3636_v33 }
  0xf3   : > { %806 = vmatprep.subr.bf16.mxu0 %v3637_v34 }
  0xf4   : > { %3368 = vmatpush3.bf16.msra.mxu1 %v3639_v35 }
  0xf5   : > { %3369 = vmatprep.subr.bf16.mxu1 %v3643_v38 }
  0xf6   : > { %807 = vmatpush1.bf16.msra.mxu0 %v3640_v36 }
  0xf7   : > { %808 = vmatprep.subr.bf16.mxu0 %v3641_v37 }
  0xf8   : > { %3370 = vmatpush3.bf16.msra.mxu1 %v3643_v38 }
  0xf9   : > { %3371 = vmatprep.subr.bf16.mxu1 %v3647_v42 }
  0xfa   : > { %809 = vmatpush1.bf16.msra.mxu0 %v3644_v40 }
  0xfb   : > { %810 = vmatprep.subr.bf16.mxu0 %v3645_v41 }
  0xfc   : > { %3372 = vmatpush3.bf16.msra.mxu1 %v3647_v42 }
  0xfd   : > { %3373 = vmatprep.subr.bf16.mxu1 %v3649_v44 }
  0xfe   : > { %811 = vmatpush1.bf16.msra.mxu0 %v3648_v43 }
 0x100   : > { %3374 = vmatpush3.bf16.msra.mxu1 %v3649_v44 }
 0x16c   : > { %v553_v8 = vpop.xlane.xlu0 %552  ;;  %v557_v9 = vpop.xlane.xlu1 %556 }
 0x16d   : > { %v561_v10 = vmul.f32 0.0078125, %v553_v8  ;;  %v563_v11 = vmul.f32 0.0078125, %v557_v9 }
 0x16f   : > { %v4542_v12 = vsub.f32 %v546_v0, %v561_v10  ;;  %v4544_v13 = vsub.f32 %v548_v1, %v563_v11  ;;  %v3108_v0 = vld [vmem:[#allocation8] ss:$0 sm:$0xff] }
 0x170   : > { %v555_v14 = vpop.xlane.xlu0 %554  ;;  %v559_v15 = vpop.xlane.xlu1 %558 }
 0x171   : > { %v562_v16 = vmul.f32 0.0078125, %v555_v14  ;;  %v569_v17 = vmul.f32 %v4542_v12, %v4542_v12  ;;  %v564_v18 = vmul.f32 0.0078125, %v559_v15  ;;  %v571_v21 = vmul.f32 %v4544_v13, %v4544_v13 }
 0x172   : > { %v4180_v14 = vmov 0.0  }
 0x173   : > { %v4548_v19 = vsub.f32 %v547_v2, %v562_v16  ;;  %573 = vadd.xlane.f32.xlu0 %v569_v17  ;;  %v4550_v20 = vsub.f32 %v549_v3, %v564_v18  ;;  %3379 = vmatprep.subr.bf16.mxu0 %v4180_v14  ;;  %v651_v17 = vld [vmem:[%s4994_s4] sm:$0x7] }
 0x174   : > { %3391 = vmatprep.subr.bf16.mxu1 %v4180_v14 }
 0x175   : > { %v570_v22 = vmul.f32 %v4548_v19, %v4548_v19  ;;  %v572_v23 = vmul.f32 %v4550_v20, %v4550_v20 }
 0x177   : > { %577 = vadd.xlane.f32.xlu0 %v571_v21  ;;  %575 = vadd.xlane.f32.xlu1 %v570_v22 }
 0x17b   : > { %579 = vadd.xlane.f32.xlu1 %v572_v23 }
 0x200   : > { %v574_v45 = vpop.xlane.xlu0 %573 }
 0x201   : > { %v581_v46 = vmul.f32 0.0078125, %v574_v45 }
 0x203   : > { %v585_v47 = vadd.f32 1e-05, %v581_v46 }
 0x204   : > { %v576_v48 = vpop.xlane.xlu1 %575  ;;  %v578_v49 = vpop.xlane.xlu0 %577 }
 0x205   : > { %3738 = vrsqrt.f32 %v585_v47  ;;  %v582_v50 = vmul.f32 0.0078125, %v576_v48  ;;  %v583_v51 = vmul.f32 0.0078125, %v578_v49 }
 0x207   : > { %v586_v52 = vadd.f32 1e-05, %v582_v50  ;;  %v587_v53 = vadd.f32 1e-05, %v583_v51 }
 0x208   : > { %v580_v54 = vpop.xlane.xlu1 %579 }
 0x209   : > { %3740 = vrsqrt.f32 %v586_v52  ;;  %v584_v55 = vmul.f32 0.0078125, %v580_v54 }
 0x20a   : > { %3742 = vrsqrt.f32 %v587_v53 }
 0x20b   : > { %v588_v56 = vadd.f32 1e-05, %v584_v55 }
 0x20d   : > { %3744 = vrsqrt.f32 %v588_v56 }
 0x20f   : > { %v3739_v57 = vpop.eup %3738 }
 0x210   : > { %v593_v58 = vmul.f32 %v3739_v57, %v4542_v12 }
 0x212   : > { %v603_v63 = vmul.f32 %v3107_v59, %v593_v58 }
 0x213   : > { %v3741_v60 = vpop.eup %3740 }
 0x214   : > { %v3743_v61 = vpop.eup %3742  ;;  %v594_v62 = vmul.f32 %v3741_v60, %v4548_v19  ;;  %v613_v4 = vadd.f32 %v3108_v0, %v603_v63 }
 0x215   : > { %v595_v1 = vmul.f32 %v3743_v61, %v4544_v13  ;;  %v653_v13 = vlaneseq }
 0x216   : > { %v604_v2 = vmul.f32 %v3107_v59, %v594_v62 }
 0x217   : > { %v3745_v3 = vpop.eup %3744  ;;  %v605_v7 = vmul.f32 %v3107_v59, %v595_v1  ;;  %v4570_v15 = vshrl.u32 %v653_v13, 7  ;;  %v908_v56 = vand.u32 127, %v653_v13 }
 0x218   : > { %v614_v5 = vadd.f32 %v3108_v0, %v604_v2  ;;  %v596_v6 = vmul.f32 %v3745_v3, %v4550_v20 }
 0x219   : > { %v615_v10 = vadd.f32 %v3108_v0, %v605_v7  ;;  %v655_v16 = vsub.s32 0, %v4570_v15  ;;  %v659_v18 = vsub.s32 1, %v4570_v15  ;;  %v663_v20 = vsub.s32 2, %v4570_v15 }
 0x21a   : > { %v617_v8 = vpack.c.bf16 %v614_v5, %v613_v4  ;;  %v606_v9 = vmul.f32 %v3107_v59, %v596_v6  ;;  %v906_v57 = vadd.s32 8, %v4570_v15  ;;  %vm909_vm2 = vcmp.ge.s32.totalorder %v908_v56, 16 }
 0x21b   : > { %v656_v19 = vrot.slane %v651_v17, %v655_v16  ;;  %v660_v22 = vrot.slane %v651_v17, %v659_v18  ;;  %v664_v28 = vrot.slane %v651_v17, %v663_v20  ;;  %vm910_vm3 = vcmp.gt.s32.totalorder %v908_v56, %v4570_v15 }
 0x21c   : > { %829 = vmatmul.mubr.bf16.vlgmr.msra.gmra.mrb[0].mxu0 %v617_v8  ;;  %3375 = vmatprep.mubr.bf16.mxu1 %v617_v8  ;;  %v616_v11 = vadd.f32 %v3108_v0, %v606_v9  ;;  %vm911_vm4 = vcmp.gt.s32.totalorder %v908_v56, %v906_v57  ;;  %vm912_vm5 = vmor %vm909_vm2, %vm910_vm3 }
 0x21d   : > { %838 = vmatprep.mubr.bf16.mxu0 %v4179_v39  ;;  %vm913_vm6 = vmor %vm909_vm2, %vm911_vm4  ;;  %v4617_v58 = vsel %vm912_vm5, -1e+30, %v4180_v14 }
 0x21e   : > { %v618_v12 = vpack.c.bf16 %v616_v11, %v615_v10  ;;  %v4620_v60 = vsel %vm913_vm6, -1e+30, %v4180_v14 }
 0x220   : > { %3376 = vmatmul.mubr.bf16.vlgmr.msra.gmra.mrb[0].mxu1 %v618_v12 }
 0x221   : > { %3393 = vmatprep.mubr.msk.bf16.mxu1 %vm4181_vm0, %v4180_v14 }
 0x224   : > { %839 = vmatmul.mubr.bf16.gmra.mrb[4].mxu0 %v618_v12 }
 0x225   : > { %3381 = vmatprep.mubr.msk.bf16.mxu0 %vm4181_vm0, %v4180_v14 }
 0x2ef   : > { %v830_v21 = vpop.f32.mrb[0].mxu0 }
 0x2f0   : > { %v832_v23 = vpop.f32.mrb[1].mxu0  ;;  %v831_v25 = vadd.f32 %v830_v21, %v656_v19 }
 0x2f1   : > { %v834_v24 = vpop.f32.mrb[2].mxu0  ;;  %v833_v29 = vadd.f32 %v832_v23, %v660_v22 }
 0x2f2   : > { %v835_v26 = vadd.f32 %v834_v24, %v656_v19  ;;  %v836_v27 = vpop.f32.mrb[3].mxu0 }
 0x2f3   : > { %v837_v30 = vadd.f32 %v836_v27, %v660_v22  ;;  %v3377_v31 = vpop.f32.mrb[0].mxu1 }
 0x2f4   : > { %v4584_v32 = vpack.c.bf16 %v835_v26, %v831_v25  ;;  %v883_v33 = vpop.f32.mrb[1].mxu1  ;;  %v892_v36 = vadd.f32 %v3377_v31, %v664_v28 }
 0x2f5   : > { %v4586_v34 = vpack.c.bf16 %v837_v30, %v833_v29  ;;  %v3378_v35 = vpop.f32.mrb[2].mxu1  ;;  %v884_v40 = vadd.f32 %v883_v33, %v664_v28 }
 0x2f6   : > { %v895_v37 = vadd.f32 %v3378_v35, %v664_v28  ;;  %v886_v38 = vpop.f32.mrb[3].mxu1 }
 0x2f7   : > { %v887_v41 = vadd.f32 %v886_v38, %v664_v28  ;;  %v840_v42 = vpop.f32.mrb[4].mxu0  ;;  %v921_v43 = vsel %vm916_vm1, %v4586_v34, 0 }
 0x2f8   : > { %v4590_v44 = vpack.c.bf16 %v895_v37, %v892_v36  ;;  %v842_v45 = vpop.f32.mrb[5].mxu0  ;;  %3380 = vmatpush3.bf16.xpose.msra.mxu0 %v921_v43  ;;  %v841_v48 = vadd.f32 %v840_v42, %v656_v19 }
 0x2f9   : > { %v4592_v46 = vpack.c.bf16 %v887_v41, %v884_v40  ;;  %v844_v47 = vpop.f32.mrb[6].mxu0  ;;  %3385 = vmatprep.subr.bf16.mxu0 %v4180_v14  ;;  %v843_v51 = vadd.f32 %v842_v45, %v660_v22 }
 0x2fa   : > { %v845_v49 = vadd.f32 %v844_v47, %v656_v19  ;;  %v846_v50 = vpop.f32.mrb[7].mxu0 }
 0x2fb   : > { %v847_v52 = vadd.f32 %v846_v50, %v660_v22  ;;  %3392 = vmatpush3.bf16.msra.mxu1 %v4592_v46 }
 0x2fc   : > { %v4596_v53 = vpack.c.bf16 %v845_v49, %v841_v48  ;;  %3403 = vmatprep.subr.bf16.mxu1 %v4180_v14 }
 0x2fd   : > { %v4599_v54 = vpack.c.bf16 %v847_v52, %v843_v51 }
 0x2ff   : > { %3382 = vmatmul.mubr.msk.bf16.vlgmr.msra.gmra.mrb[8].mxu0 %vm916_vm1, %v4584_v32  ;;  %v968_v55 = vsel %vm916_vm1, %v4599_v54, 0 }
 0x300   : > { %3386 = vmatpush3.bf16.xpose.msra.mxu0 %v968_v55  ;;  %3387 = vmatprep.mubr.msk.bf16.mxu0 %vm4181_vm0, %v4180_v14 }
 0x301   : > { %3397 = vmatprep.subr.bf16.mxu0 %v4180_v14 }
 0x307   : > { %3388 = vmatmul.mubr.msk.bf16.vlgmr.msra.gmra.mrb[12].mxu0 %vm916_vm1, %v4596_v53 }
 0x308   : > { %3398 = vmatpush3.bf16.msra.mxu0 %v4590_v44  ;;  %3399 = vmatprep.mubr.msk.bf16.mxu0 %vm4181_vm0, %v4180_v14 }
 0x309   : > { %3409 = vmatprep.subr.bf16.mxu0 %v4180_v14 }
 0x3d2   : > { %v957_v59 = vpop.f32.mrb[8].mxu0 }
 0x3d3   : > { %v958_v61 = vadd.f32 %v957_v59, %v4617_v58  ;;  %v3383_v62 = vpop.f32.mrb[9].mxu0 }
 0x3d4   : > { %v960_v63 = vpop.f32.mrb[10].mxu0 }
 0x3d5   : > { %v961_v0 = vadd.f32 %v960_v63, %v4620_v60  ;;  %v3384_v1 = vpop.f32.mrb[11].mxu0  ;;  %v1012_v2 = vsel %vm1011_vm7, %v958_v61, -inf }
 0x3d6   : > { %1013 = vmax.xlane.f32.xlu0 %v1012_v2 }
 0x3d7   : > { %v1015_v3 = vsel %vm1011_vm7, %v961_v0, -inf }
 0x3d8   : > { %1016 = vmax.xlane.f32.xlu1 %v1015_v3 }
 0x3da   : > { %v1004_v4 = vpop.f32.mrb[12].mxu0 }
 0x3db   : > { %v1005_v5 = vadd.f32 %v1004_v4, %v4617_v58  ;;  %v3389_v6 = vpop.f32.mrb[13].mxu0 }
 0x3dc   : > { %v1007_v7 = vpop.f32.mrb[14].mxu0 }
 0x3dd   : > { %v1008_v8 = vadd.f32 %v1007_v7, %v4620_v60  ;;  %v3390_v9 = vpop.f32.mrb[15].mxu0  ;;  %v1018_v10 = vsel %vm1011_vm7, %v1005_v5, -inf }
 0x3de   : > { %1019 = vmax.xlane.f32.xlu0 %v1018_v10 }
 0x3df   : > { %v1021_v11 = vsel %vm1011_vm7, %v1008_v8, -inf }
 0x3e0   : > { %1022 = vmax.xlane.f32.xlu1 %v1021_v11 }
 0x463   : > { %v1014_v12 = vpop.xlane.xlu0 %1013 }
 0x464   : > { %v1024_v13 = vsub.f32 %v958_v61, %v1014_v12 }
 0x465   : > { %v1017_v17 = vpop.xlane.xlu1 %1016 }
 0x466   : > { %v1028_v19 = vmul.f32 1.442695, %v1024_v13  ;;  %v1025_v21 = vsub.f32 %v961_v0, %v1017_v17 }
 0x468   : > { %3746 = vpow2.f32 %v1028_v19  ;;  %v1030_v22 = vmul.f32 1.442695, %v1025_v21 }
 0x46a   : > { %3748 = vpow2.f32 %v1030_v22 }
 0x46b   : > { %v1020_v23 = vpop.xlane.xlu0 %1019 }
 0x46c   : > { %v1026_v24 = vsub.f32 %v1005_v5, %v1020_v23 }
 0x46d   : > { %v1023_v33 = vpop.xlane.xlu1 %1022 }
 0x46e   : > { %v1032_v25 = vmul.f32 1.442695, %v1026_v24  ;;  %v1027_v35 = vsub.f32 %v1008_v8, %v1023_v33 }
 0x470   : > { %3750 = vpow2.f32 %v1032_v25  ;;  %v1034_v36 = vmul.f32 1.442695, %v1027_v35 }
 0x472   : > { %v3747_v26 = vpop.eup %3746  ;;  %3752 = vpow2.f32 %v1034_v36 }
 0x473   : > { %v1036_v27 = vsel %vm1011_vm7, %v3747_v26, 0.0 }
 0x474   : > { %v3749_v28 = vpop.eup %3748  ;;  %1037 = vadd.xlane.f32.xlu0 %v1036_v27 }
 0x475   : > { %v1039_v29 = vsel %vm1011_vm7, %v3749_v28, 0.0 }
 0x476   : > { %1040 = vadd.xlane.f32.xlu1 %v1039_v29 }
 0x47a   : > { %v3751_v30 = vpop.eup %3750 }
 0x47b   : > { %v1042_v31 = vsel %vm1011_vm7, %v3751_v30, 0.0 }
 0x47c   : > { %1043 = vadd.xlane.f32.xlu0 %v1042_v31  ;;  %v3753_v37 = vpop.eup %3752 }
 0x47d   : > { %v1045_v38 = vsel %vm1011_vm7, %v3753_v37, 0.0 }
 0x487   : > { %1207 = vrot.lane.b32.xlu1 %v4599_v54, %s4182_s29 }
 0x492   : > { %1154 = vrot.lane.b32.xlu0 %v4586_v34, %s4182_s29 }
 0x4ab   : > { %1046 = vadd.xlane.f32.xlu1 %v1045_v38 }
 0x4bc   : > { %1151 = vrot.lane.b32.xlu1 %v4584_v32, %s4182_s29 }
 0x4c0   : > { %1204 = vrot.lane.b32.xlu1 %v4596_v53, %s4182_s29 }
 0x501   : > { %v1038_v40 = vpop.xlane.xlu0 %1037 }
 0x502   : > { %3754 = vrcp.f32 %v1038_v40 }
 0x503   : > { %v1041_v41 = vpop.xlane.xlu1 %1040 }
 0x504   : > { %3756 = vrcp.f32 %v1041_v41 }
 0x507   : > { %v1208_v52 = vpop.permute.xlu1 %1207 }
 0x508   : > { %v1213_v0 = vsel %vm916_vm1, %v1208_v52, 0 }
 0x509   : > { %v1044_v42 = vpop.xlane.xlu0 %1043 }
 0x50a   : > { %3758 = vrcp.f32 %v1044_v42 }
 0x50c   : > { %v3755_v43 = vpop.eup %3754 }
 0x50d   : > { %v1052_v47 = vmul.f32 %v3755_v43, %v3747_v26  ;;  %v1155_v49 = vpop.permute.xlu0 %1154 }
 0x50e   : > { %v3757_v45 = vpop.eup %3756  ;;  %v1160_v51 = vsel %vm916_vm1, %v1155_v49, 0 }
 0x50f   : > { %v1053_v48 = vmul.f32 %v3757_v45, %v3749_v28 }
 0x511   : > { %v1056_v50 = vpack.c.bf16 %v1053_v48, %v1052_v47 }
 0x513   : > { %3394 = vmatmul.mubr.msk.bf16.vlgmr.msra.gmra.mrb[4].mxu1 %vm1011_vm7, %v1056_v50 }
 0x514   : > { %3404 = vmatpush3.bf16.xpose.msra.mxu1 %v1160_v51  ;;  %3405 = vmatprep.mubr.msk.bf16.mxu1 %vm4181_vm0, %v4180_v14  ;;  %v3759_v57 = vpop.eup %3758 }
 0x515   : > { %3415 = vmatprep.subr.bf16.mxu1 %v4180_v14  ;;  %v1054_v61 = vmul.f32 %v3759_v57, %v3751_v30 }
 0x538   : > { %v1047_v55 = vpop.xlane.xlu1 %1046 }
 0x539   : > { %3760 = vrcp.f32 %v1047_v55 }
 0x53c   : > { %v1152_v56 = vpop.permute.xlu1 %1151 }
 0x53d   : > { %3406 = vmatmul.mubr.msk.bf16.vlgmr.msra.gmra.mrb[8].mxu1 %vm916_vm1, %v1152_v56 }
 0x53e   : > { %3417 = vmatprep.mubr.msk.bf16.mxu1 %vm4181_vm0, %v4180_v14 }
 0x540   : > { %v1205_v1 = vpop.permute.xlu1 %1204 }
 0x543   : > { %v3761_v59 = vpop.eup %3760 }
 0x544   : > { %v1055_v62 = vmul.f32 %v3761_v59, %v3753_v37 }
 0x546   : > { %v1057_v63 = vpack.c.bf16 %v1055_v62, %v1054_v61 }
 0x548   : > { %3400 = vmatmul.mubr.msk.bf16.vlgmr.msra.gmra.mrb[16].mxu0 %vm1011_vm7, %v1057_v63 }
 0x549   : > { %3410 = vmatpush3.bf16.xpose.msra.mxu0 %v1213_v0  ;;  %3411 = vmatprep.mubr.msk.bf16.mxu0 %vm4181_vm0, %v4180_v14 }
 0x54a   : > { %3421 = vmatprep.subr.bf16.mxu0 %v4180_v14 }
 0x550   : > { %3412 = vmatmul.mubr.msk.bf16.vlgmr.msra.gmra.mrb[20].mxu0 %vm916_vm1, %v1205_v1 }
 0x551   : > { %3423 = vmatprep.mubr.msk.bf16.mxu0 %vm4181_vm0, %v4180_v14 }
 0x5e6   : > { %v1095_v2 = vpop.f32.mrb[4].mxu1 }
 0x5e7   : > { %v3395_v3 = vpop.f32.mrb[5].mxu1 }
 0x5e8   : > { %v1098_v4 = vpop.f32.mrb[6].mxu1 }
 0x5e9   : > { %v1146_v5 = vpack.c.bf16 %v1098_v4, %v1095_v2  ;;  %v3396_v6 = vpop.f32.mrb[7].mxu1 }
 0x5eb   : > { %1148 = vst.msk [vmem:[#allocation2] sm:$0xff] %vm916_vm1, %v1146_v5 }
 0x610   : > { %v1196_v7 = vpop.f32.mrb[8].mxu1 }
 0x611   : > { %v1197_v8 = vadd.f32 %v1196_v7, %v4617_v58  ;;  %v3407_v9 = vpop.f32.mrb[9].mxu1 }
 0x612   : > { %v1199_v10 = vpop.f32.mrb[10].mxu1 }
 0x613   : > { %v1200_v11 = vadd.f32 %v1199_v10, %v4620_v60  ;;  %v3408_v12 = vpop.f32.mrb[11].mxu1  ;;  %v1256_v13 = vsel %vm1011_vm7, %v1197_v8, -inf }
 0x614   : > { %1257 = vmax.xlane.f32.xlu0 %v1256_v13 }
 0x615   : > { %v1259_v17 = vsel %vm1011_vm7, %v1200_v11, -inf }
 0x616   : > { %1260 = vmax.xlane.f32.xlu1 %v1259_v17 }
 0x61b   : > { %v1139_v19 = vpop.f32.mrb[16].mxu0 }
 0x61c   : > { %v3401_v21 = vpop.f32.mrb[17].mxu0 }
 0x61d   : > { %v1142_v22 = vpop.f32.mrb[18].mxu0 }
 0x61e   : > { %v1147_v23 = vpack.c.bf16 %v1142_v22, %v1139_v19  ;;  %v3402_v24 = vpop.f32.mrb[19].mxu0 }
 0x620   : > { %1149 = vst.msk [vmem:[#allocation2 + $0x8] sm:$0xff] %vm916_vm1, %v1147_v23 }
 0x623   : > { %v1249_v25 = vpop.f32.mrb[20].mxu0 }
 0x624   : > { %v1250_v26 = vadd.f32 %v1249_v25, %v4617_v58  ;;  %v3413_v27 = vpop.f32.mrb[21].mxu0 }
 0x625   : > { %v1252_v28 = vpop.f32.mrb[22].mxu0 }
 0x626   : > { %v1253_v29 = vadd.f32 %v1252_v28, %v4620_v60  ;;  %v3414_v30 = vpop.f32.mrb[23].mxu0  ;;  %v1262_v31 = vsel %vm1011_vm7, %v1250_v26, -inf }
 0x627   : > { %1263 = vmax.xlane.f32.xlu0 %v1262_v31 }
 0x628   : > { %v1265_v33 = vsel %vm1011_vm7, %v1253_v29, -inf }
 0x62b   : > { %1266 = vmax.xlane.f32.xlu0 %v1265_v33 }
 0x6a1   : > { %v1258_v35 = vpop.xlane.xlu0 %1257 }
 0x6a2   : > { %v1268_v36 = vsub.f32 %v1197_v8, %v1258_v35 }
 0x6a3   : > { %v1261_v37 = vpop.xlane.xlu1 %1260 }
 0x6a4   : > { %v1272_v38 = vmul.f32 1.442695, %v1268_v36  ;;  %v1269_v40 = vsub.f32 %v1200_v11, %v1261_v37 }
 0x6a6   : > { %3762 = vpow2.f32 %v1272_v38  ;;  %v1274_v41 = vmul.f32 1.442695, %v1269_v40 }
 0x6a8   : > { %3764 = vpow2.f32 %v1274_v41 }
 0x6b0   : > { %v3763_v42 = vpop.eup %3762 }
 0x6b1   : > { %v1280_v43 = vsel %vm1011_vm7, %v3763_v42, 0.0 }
 0x6b2   : > { %v3765_v45 = vpop.eup %3764  ;;  %1281 = vadd.xlane.f32.xlu0 %v1280_v43 }
 0x6b3   : > { %v1283_v47 = vsel %vm1011_vm7, %v3765_v45, 0.0 }
 0x6b4   : > { %1284 = vadd.xlane.f32.xlu1 %v1283_v47  ;;  %v1264_v48 = vpop.xlane.xlu0 %1263 }
 0x6b5   : > { %v1270_v49 = vsub.f32 %v1250_v26, %v1264_v48 }
 0x6b7   : > { %v1276_v50 = vmul.f32 1.442695, %v1270_v49 }
 0x6b8   : > { %v1267_v55 = vpop.xlane.xlu0 %1266 }
 0x6b9   : > { %3766 = vpow2.f32 %v1276_v50  ;;  %v1271_v56 = vsub.f32 %v1253_v29, %v1267_v55 }
 0x6bb   : > { %v1278_v57 = vmul.f32 1.442695, %v1271_v56 }
 0x6bd   : > { %3768 = vpow2.f32 %v1278_v57 }
 0x6c3   : > { %v3767_v51 = vpop.eup %3766 }
 0x6c4   : > { %v1286_v52 = vsel %vm1011_vm7, %v3767_v51, 0.0 }
 0x6c5   : > { %1351 = vrot.lane.b32.xlu1 %v4590_v44, %s4182_s29  ;;  %1287 = vadd.xlane.f32.xlu0 %v1286_v52 }
 0x6c7   : > { %v3769_v59 = vpop.eup %3768 }
 0x6c8   : > { %v1289_v61 = vsel %vm1011_vm7, %v3769_v59, 0.0 }
 0x6c9   : > { %1413 = vrot.lane.b32.xlu1 %v4586_v34, %s4183_s21 }
 0x6db   : > { %1303 = vrot.lane.b32.xlu0 %v4592_v46, %s4182_s29 }
 0x6df   : > { %1411 = vrot.lane.b32.xlu0 %v4584_v32, %s4183_s21 }
 0x6ed   : > { %1290 = vadd.xlane.f32.xlu1 %v1289_v61 }
 0x6fe   : > { %1464 = vrot.lane.b32.xlu1 %v4599_v54, %s4183_s21 }
 0x702   : > { %1462 = vrot.lane.b32.xlu1 %v4596_v53, %s4183_s21 }
 0x73f   : > { %v1282_v0 = vpop.xlane.xlu0 %1281 }
 0x741   : > { %v1285_v62 = vpop.xlane.xlu1 %1284 }
 0x742   : > { %3770 = vrcp.f32 %v1285_v62 }
 0x743   : > { %3772 = vrcp.f32 %v1282_v0 }
 0x745   : > { %v1352_v63 = vpop.permute.xlu1 %1351 }
 0x746   : > { %3422 = vmatpush3.bf16.msra.mxu0 %v1352_v63 }
 0x747   : > { %3433 = vmatprep.subr.bf16.mxu0 %v4180_v14 }
 0x749   : > { %v1414_v8 = vpop.permute.xlu1 %1413 }
 0x74a   : > { %v1419_v9 = vsel %vm916_vm1, %v1414_v8, 0 }
 0x74c   : > { %v3771_v1 = vpop.eup %3770 }
 0x74d   : > { %v3773_v3 = vpop.eup %3772  ;;  %v1297_v4 = vmul.f32 %v3771_v1, %v3765_v45 }
 0x74e   : > { %v1296_v5 = vmul.f32 %v3773_v3, %v3763_v42 }
 0x750   : > { %v1300_v7 = vpack.c.bf16 %v1297_v4, %v1296_v5 }
 0x752   : > { %v1288_v2 = vpop.xlane.xlu0 %1287 }
 0x753   : > { %3774 = vrcp.f32 %v1288_v2 }
 0x756   : > { %v1304_v6 = vpop.permute.xlu0 %1303 }
 0x757   : > { %3416 = vmatpush3.bf16.msra.mxu1 %v1304_v6 }
 0x758   : > { %3427 = vmatprep.subr.bf16.mxu1 %v4180_v14 }
 0x75a   : > { %3418 = vmatmul.mubr.msk.bf16.vlgmr.msra.gmra.mrb[12].mxu1 %vm1011_vm7, %v1300_v7  ;;  %v1412_v10 = vpop.permute.xlu0 %1411 }
 0x75b   : > { %3429 = vmatprep.mubr.msk.bf16.mxu1 %vm4181_vm0, %v4180_v14 }
 0x75d   : > { %v3775_v12 = vpop.eup %3774 }
 0x75e   : > { %v1298_v17 = vmul.f32 %v3775_v12, %v3767_v51 }
 0x760   : > { %3428 = vmatpush3.bf16.xpose.msra.mxu1 %v1419_v9 }
 0x761   : > { %3439 = vmatprep.subr.bf16.mxu1 %v4180_v14 }
 0x767   : > { %3430 = vmatmul.mubr.msk.bf16.vlgmr.msra.gmra.mrb[16].mxu1 %vm916_vm1, %v1412_v10 }
 0x768   : > { %3441 = vmatprep.mubr.msk.bf16.mxu1 %vm4181_vm0, %v4180_v14 }
 0x77a   : > { %v1291_v11 = vpop.xlane.xlu1 %1290 }
 0x77b   : > { %3776 = vrcp.f32 %v1291_v11 }
 0x77e   : > { %v1465_v21 = vpop.permute.xlu1 %1464 }
 0x77f   : > { %v1470_v23 = vsel %vm916_vm1, %v1465_v21, 0 }
 0x782   : > { %v1463_v24 = vpop.permute.xlu1 %1462 }
 0x785   : > { %v3777_v13 = vpop.eup %3776 }
 0x786   : > { %v1299_v19 = vmul.f32 %v3777_v13, %v3769_v59 }
 0x788   : > { %v1301_v22 = vpack.c.bf16 %v1299_v19, %v1298_v17 }
 0x78a   : > { %3424 = vmatmul.mubr.msk.bf16.vlgmr.msra.gmra.mrb[24].mxu0 %vm1011_vm7, %v1301_v22 }
 0x78b   : > { %3434 = vmatpush3.bf16.xpose.msra.mxu0 %v1470_v23  ;;  %3435 = vmatprep.mubr.msk.bf16.mxu0 %vm4181_vm0, %v4180_v14 }
 0x78c   : > { %3445 = vmatprep.subr.bf16.mxu0 %v4180_v14 }
 0x792   : > { %3436 = vmatmul.mubr.msk.bf16.vlgmr.msra.gmra.mrb[28].mxu0 %vm916_vm1, %v1463_v24 }
 0x793   : > { %3447 = vmatprep.mubr.msk.bf16.mxu0 %vm4181_vm0, %v4180_v14 }
 0x82d   : > { %v4702_v25 = vpop.f32.mrb[12].mxu1 }
 0x82e   : > { %v3419_v26 = vpop.f32.mrb[13].mxu1 }
 0x82f   : > { %v4704_v27 = vpop.f32.mrb[14].mxu1 }
 0x830   : > { %v1398_v28 = vpack.c.bf16 %v4704_v27, %v4702_v25  ;;  %v3420_v29 = vpop.f32.mrb[15].mxu1 }
 0x83a   : > { %v1455_v30 = vpop.f32.mrb[16].mxu1 }
 0x83b   : > { %v1456_v31 = vadd.f32 %v1455_v30, %v4617_v58  ;;  %v3431_v33 = vpop.f32.mrb[17].mxu1 }
 0x83c   : > { %v1458_v35 = vpop.f32.mrb[18].mxu1 }
 0x83d   : > { %v1459_v36 = vadd.f32 %v1458_v35, %v4620_v60  ;;  %v3432_v37 = vpop.f32.mrb[19].mxu1  ;;  %v1513_v38 = vsel %vm1011_vm7, %v1456_v31, -inf }
 0x83e   : > { %1514 = vmax.xlane.f32.xlu0 %v1513_v38 }
 0x83f   : > { %v1516_v40 = vsel %vm1011_vm7, %v1459_v36, -inf }
 0x840   : > { %1517 = vmax.xlane.f32.xlu1 %v1516_v40 }
 0x85d   : > { %v4712_v41 = vpop.f32.mrb[24].mxu0 }
 0x85e   : > { %v3425_v42 = vpop.f32.mrb[25].mxu0 }
 0x85f   : > { %v4714_v43 = vpop.f32.mrb[26].mxu0 }
 0x860   : > { %v1399_v45 = vpack.c.bf16 %v4714_v43, %v4712_v41  ;;  %v3426_v47 = vpop.f32.mrb[27].mxu0 }
 0x865   : > { %v1506_v48 = vpop.f32.mrb[28].mxu0 }
 0x866   : > { %v1507_v49 = vadd.f32 %v1506_v48, %v4617_v58  ;;  %v3437_v50 = vpop.f32.mrb[29].mxu0 }
 0x867   : > { %v1509_v51 = vpop.f32.mrb[30].mxu0 }
 0x868   : > { %v1510_v52 = vadd.f32 %v1509_v51, %v4620_v60  ;;  %v3438_v55 = vpop.f32.mrb[31].mxu0  ;;  %v1519_v56 = vsel %vm1011_vm7, %v1507_v49, -inf }
 0x869   : > { %1520 = vmax.xlane.f32.xlu0 %v1519_v56 }
 0x86a   : > { %v1522_v57 = vsel %vm1011_vm7, %v1510_v52, -inf }
 0x86d   : > { %1523 = vmax.xlane.f32.xlu0 %v1522_v57 }
 0x8cb   : > { %v1515_v59 = vpop.xlane.xlu0 %1514 }
 0x8cc   : > { %v1525_v61 = vsub.f32 %v1456_v31, %v1515_v59 }
 0x8cd   : > { %v1518_v62 = vpop.xlane.xlu1 %1517 }
 0x8ce   : > { %v1529_v63 = vmul.f32 1.442695, %v1525_v61  ;;  %v1526_v0 = vsub.f32 %v1459_v36, %v1518_v62 }
 0x8d0   : > { %3778 = vpow2.f32 %v1529_v63  ;;  %v1531_v1 = vmul.f32 1.442695, %v1526_v0 }
 0x8d2   : > { %3780 = vpow2.f32 %v1531_v1 }
 0x8da   : > { %v3779_v2 = vpop.eup %3778 }
 0x8db   : > { %v1537_v3 = vsel %vm1011_vm7, %v3779_v2, 0.0 }
 0x8dc   : > { %v3781_v4 = vpop.eup %3780  ;;  %1538 = vadd.xlane.f32.xlu0 %v1537_v3 }
 0x8dd   : > { %v1540_v5 = vsel %vm1011_vm7, %v3781_v4, 0.0 }
 0x8de   : > { %1541 = vadd.xlane.f32.xlu1 %v1540_v5 }
 0x8ef   : > { %1606 = vrot.lane.b32.xlu1 %v4590_v44, %s4183_s21 }
 0x8f3   : > { %1668 = vrot.lane.b32.xlu1 %v4586_v34, %s4184_s22 }
 0x8f6   : > { %v1521_v6 = vpop.xlane.xlu0 %1520 }
 0x8f7   : > { %v1527_v7 = vsub.f32 %v1507_v49, %v1521_v6 }
 0x8f9   : > { %v1533_v8 = vmul.f32 1.442695, %v1527_v7 }
 0x8fa   : > { %v1524_v9 = vpop.xlane.xlu0 %1523 }
 0x8fb   : > { %3782 = vpow2.f32 %v1533_v8  ;;  %v1528_v10 = vsub.f32 %v1510_v52, %v1524_v9 }
 0x8fd   : > { %v1535_v12 = vmul.f32 1.442695, %v1528_v10 }
 0x8ff   : > { %3784 = vpow2.f32 %v1535_v12 }
 0x905   : > { %v3783_v11 = vpop.eup %3782 }
 0x906   : > { %v1543_v13 = vsel %vm1011_vm7, %v3783_v11, 0.0 }
 0x907   : > { %1544 = vadd.xlane.f32.xlu0 %v1543_v13 }
 0x909   : > { %v3785_v17 = vpop.eup %3784 }
 0x90a   : > { %v1546_v19 = vsel %vm1011_vm7, %v3785_v17, 0.0 }
 0x917   : > { %1547 = vadd.xlane.f32.xlu1 %v1546_v19 }
 0x91d   : > { %1559 = vrot.lane.b32.xlu0 %v4592_v46, %s4183_s21 }
 0x921   : > { %1666 = vrot.lane.b32.xlu0 %v4584_v32, %s4184_s22 }
 0x928   : > { %1719 = vrot.lane.b32.xlu1 %v4599_v54, %s4184_s22 }
 0x92c   : > { %1717 = vrot.lane.b32.xlu1 %v4596_v53, %s4184_s22 }
 0x969   : > { %v1539_v22 = vpop.xlane.xlu0 %1538 }
 0x96b   : > { %v1542_v34 = vpop.xlane.xlu1 %1541 }
 0x96c   : > { %3786 = vrcp.f32 %v1542_v34 }
 0x96d   : > { %3788 = vrcp.f32 %v1539_v22 }
 0x96f   : > { %v1607_v21 = vpop.permute.xlu1 %1606 }
 0x970   : > { %3446 = vmatpush3.bf16.msra.mxu0 %v1607_v21 }
 0x971   : > { %3457 = vmatprep.subr.bf16.mxu0 %v4180_v14 }
 0x973   : > { %v1669_v53 = vpop.permute.xlu1 %1668 }
 0x974   : > { %v1674_v54 = vsel %vm916_vm1, %v1669_v53, 0 }
 0x976   : > { %v3787_v23 = vpop.eup %3786 }
 0x977   : > { %v3789_v26 = vpop.eup %3788  ;;  %v1554_v29 = vmul.f32 %v3787_v23, %v3781_v4 }
 0x978   : > { %v1553_v30 = vmul.f32 %v3789_v26, %v3779_v2 }
 0x97a   : > { %v1557_v31 = vpack.c.bf16 %v1554_v29, %v1553_v30 }
 0x994   : > { %v1545_v24 = vpop.xlane.xlu0 %1544 }
 0x995   : > { %3790 = vrcp.f32 %v1545_v24 }
 0x998   : > { %v1560_v32 = vpop.permute.xlu0 %1559 }
 0x999   : > { %3440 = vmatpush3.bf16.msra.mxu1 %v1560_v32 }
 0x99a   : > { %3451 = vmatprep.subr.bf16.mxu1 %v4180_v14 }
 0x99c   : > { %3442 = vmatmul.mubr.msk.bf16.vlgmr.msra.gmra.mrb[20].mxu1 %vm1011_vm7, %v1557_v31  ;;  %v1667_v35 = vpop.permute.xlu0 %1666 }
 0x99d   : > { %3453 = vmatprep.mubr.msk.bf16.mxu1 %vm4181_vm0, %v4180_v14 }
 0x99f   : > { %v3791_v36 = vpop.eup %3790 }
 0x9a0   : > { %v1555_v38 = vmul.f32 %v3791_v36, %v3783_v11 }
 0x9a2   : > { %3452 = vmatpush3.bf16.xpose.msra.mxu1 %v1674_v54 }
 0x9a3   : > { %3463 = vmatprep.subr.bf16.mxu1 %v4180_v14 }
 0x9a4   : > { %v1548_v33 = vpop.xlane.xlu1 %1547 }
 0x9a5   : > { %3792 = vrcp.f32 %v1548_v33 }
 0x9a8   : > { %v1720_v42 = vpop.permute.xlu1 %1719 }
 0x9a9   : > { %3454 = vmatmul.mubr.msk.bf16.vlgmr.msra.gmra.mrb[24].mxu1 %vm916_vm1, %v1667_v35  ;;  %v1725_v48 = vsel %vm916_vm1, %v1720_v42, 0 }
 0x9aa   : > { %3465 = vmatprep.mubr.msk.bf16.mxu1 %vm4181_vm0, %v4180_v14 }
 0x9ac   : > { %v1718_v49 = vpop.permute.xlu1 %1717 }
 0x9af   : > { %v3793_v37 = vpop.eup %3792 }
 0x9b0   : > { %v1556_v40 = vmul.f32 %v3793_v37, %v3785_v17 }
 0x9b2   : > { %v1558_v47 = vpack.c.bf16 %v1556_v40, %v1555_v38 }
 0x9b4   : > { %3448 = vmatmul.mubr.msk.bf16.vlgmr.msra.gmra.mrb[32].mxu0 %vm1011_vm7, %v1558_v47 }
 0x9b5   : > { %3458 = vmatpush3.bf16.xpose.msra.mxu0 %v1725_v48  ;;  %3459 = vmatprep.mubr.msk.bf16.mxu0 %vm4181_vm0, %v4180_v14 }
 0x9b6   : > { %3469 = vmatprep.subr.bf16.mxu0 %v4180_v14 }
 0x9bc   : > { %3460 = vmatmul.mubr.msk.bf16.vlgmr.msra.gmra.mrb[36].mxu0 %vm916_vm1, %v1718_v49 }
 0x9bd   : > { %3471 = vmatprep.mubr.msk.bf16.mxu0 %vm4181_vm0, %v4180_v14 }
 0xa6f   : > { %v1599_v50 = vpop.f32.mrb[20].mxu1 }
 0xa70   : > { %v3443_v51 = vpop.f32.mrb[21].mxu1 }
 0xa71   : > { %v1602_v52 = vpop.f32.mrb[22].mxu1 }
 0xa72   : > { %v1653_v55 = vpack.c.bf16 %v1602_v52, %v1599_v50  ;;  %v3444_v56 = vpop.f32.mrb[23].mxu1 }
 0xa7c   : > { %v1710_v57 = vpop.f32.mrb[24].mxu1 }
 0xa7d   : > { %v1711_v59 = vadd.f32 %v1710_v57, %v4617_v58  ;;  %v3455_v61 = vpop.f32.mrb[25].mxu1 }
 0xa7e   : > { %v1713_v62 = vpop.f32.mrb[26].mxu1  ;;  %v3650_v61 = vld [vmem:[#allocation11] sm:$0xff]  }
 0xa7f   : > { %v1714_v63 = vadd.f32 %v1713_v62, %v4620_v60  ;;  %v3456_v0 = vpop.f32.mrb[27].mxu1  ;;  %v1768_v1 = vsel %vm1011_vm7, %v1711_v59, -inf  ;;  %v3651_v62 = vld [vmem:[#allocation11 + $0x8] sm:$0xff]  }
 0xa80   : > { %1769 = vmax.xlane.f32.xlu0 %v1768_v1  ;;  %v3653_v0 = vld [vmem:[#allocation11 + $0x18] sm:$0xff]   ;;  %v3654_v1 = vld [vmem:[#allocation11 + $0x20] sm:$0xff]  }
 0xa81   : > { %v1771_v2 = vsel %vm1011_vm7, %v1714_v63, -inf }
 0xa82   : > { %1772 = vmax.xlane.f32.xlu1 %v1771_v2  ;;  %v3655_v2 = vld [vmem:[#allocation11 + $0x28] sm:$0xff]  }
 0xa87   : > { %v1646_v14 = vpop.f32.mrb[32].mxu0 }
 0xa88   : > { %v3449_v3 = vpop.f32.mrb[33].mxu0 }
 0xa89   : > { %v1649_v4 = vpop.f32.mrb[34].mxu0 }
 0xa8a   : > { %v1654_v5 = vpack.c.bf16 %v1649_v4, %v1646_v14  ;;  %v3450_v6 = vpop.f32.mrb[35].mxu0 }
 0xa8f   : > { %v1761_v7 = vpop.f32.mrb[36].mxu0 }
 0xa90   : > { %v1762_v8 = vadd.f32 %v1761_v7, %v4617_v58  ;;  %v3461_v9 = vpop.f32.mrb[37].mxu0  ;;  %v3656_v7 = vld [vmem:[#allocation11 + $0x30] sm:$0xff]  }
 0xa91   : > { %v1764_v10 = vpop.f32.mrb[38].mxu0 }
 0xa92   : > { %v1765_v11 = vadd.f32 %v1764_v10, %v4620_v60  ;;  %v3462_v12 = vpop.f32.mrb[39].mxu0  ;;  %v1774_v13 = vsel %vm1011_vm7, %v1762_v8, -inf }
 0xa93   : > { %1775 = vmax.xlane.f32.xlu0 %v1774_v13 }
 0xa94   : > { %v1777_v17 = vsel %vm1011_vm7, %v1765_v11, -inf }
 0xa97   : > { %1778 = vmax.xlane.f32.xlu0 %v1777_v17 }
 0xb0d   : > { %v1770_v19 = vpop.xlane.xlu0 %1769 }
 0xb0e   : > { %v1780_v34 = vsub.f32 %v1711_v59, %v1770_v19 }
 0xb0f   : > { %v1773_v21 = vpop.xlane.xlu1 %1772 }
 0xb10   : > { %v1784_v22 = vmul.f32 1.442695, %v1780_v34  ;;  %v1781_v23 = vsub.f32 %v1714_v63, %v1773_v21  ;;  %v3652_v63 = vld [vmem:[#allocation11 + $0x10] sm:$0xff]  }
 0xb12   : > { %3794 = vpow2.f32 %v1784_v22  ;;  %v1786_v24 = vmul.f32 1.442695, %v1781_v23  ;;  %v3149_v22 = vld [vmem:[%s4996_s6] ss:$0 sm:$0xff] }
 0xb14   : > { %3796 = vpow2.f32 %v1786_v24 }
 0xb1c   : > { %v3795_v58 = vpop.eup %3794 }
 0xb1d   : > { %v1792_v26 = vsel %vm1011_vm7, %v3795_v58, 0.0 }
 0xb1e   : > { %v3797_v29 = vpop.eup %3796  ;;  %1793 = vadd.xlane.f32.xlu0 %v1792_v26 }
 0xb1f   : > { %v1795_v60 = vsel %vm1011_vm7, %v3797_v29, 0.0 }
 0xb20   : > { %1796 = vadd.xlane.f32.xlu1 %v1795_v60  ;;  %v1776_v30 = vpop.xlane.xlu0 %1775 }
 0xb21   : > { %v1782_v32 = vsub.f32 %v1762_v8, %v1776_v30  ;;  %v3657_v8 = vld [vmem:[#allocation11 + $0x38] sm:$0xff]  }
 0xb22   : > { %v3882_v30 = vld [vmem:[%s4520_s30] sm:$0xff] }
 0xb23   : > { %v1788_v31 = vmul.f32 1.442695, %v1782_v32 }
 0xb24   : > { %v1779_v53 = vpop.xlane.xlu0 %1778 }
 0xb25   : > { %3798 = vpow2.f32 %v1788_v31  ;;  %v1783_v54 = vsub.f32 %v1765_v11, %v1779_v53  ;;  %v3883_v53 = vld [vmem:[%s4520_s30 + $0x8] sm:$0xff] }
 0xb27   : > { %v1790_v33 = vmul.f32 1.442695, %v1783_v54 }
 0xb29   : > { %3800 = vpow2.f32 %v1790_v33  ;;  %v3884_v33 = vld [vmem:[%s4520_s30 + $0x10] sm:$0xff] }
 0xb2f   : > { %v3799_v35 = vpop.eup %3798 }
 0xb30   : > { %v1798_v36 = vsel %vm1011_vm7, %v3799_v35, 0.0 }
 0xb31   : > { %1799 = vadd.xlane.f32.xlu0 %v1798_v36 }
 0xb33   : > { %v3801_v37 = vpop.eup %3800 }
 0xb34   : > { %v1801_v38 = vsel %vm1011_vm7, %v3801_v37, 0.0 }
 0xb35   : > { %1802 = vadd.xlane.f32.xlu1 %v1801_v38 }
 0xb46   : > { %1861 = vrot.lane.b32.xlu1 %v4590_v44, %s4184_s22 }
 0xb47   : > { %1814 = vrot.lane.b32.xlu0 %v4592_v46, %s4184_s22 }
 0xb4a   : > { %1402 = vrot.lane.b32.xlu1 %v1398_v28, %s4184_s22 }
 0xb4b   : > { %1657 = vrot.lane.b32.xlu0 %v1653_v55, %s4183_s21 }
 0xb4e   : > { %1404 = vrot.lane.b32.xlu1 %v1399_v45, %s4184_s22 }
 0xb52   : > { %1659 = vrot.lane.b32.xlu1 %v1654_v5, %s4183_s21 }
 0xbab   : > { %v1794_v42 = vpop.xlane.xlu0 %1793 }
 0xbad   : > { %v1797_v40 = vpop.xlane.xlu1 %1796 }
 0xbae   : > { %3802 = vrcp.f32 %v1797_v40  ;;  %v3658_v40 = vld [vmem:[#allocation12] ss:$16 sps:$4 sm:$0xff]  }
 0xbaf   : > { %3804 = vrcp.f32 %v1794_v42  ;;  %v3660_v42 = vld [vmem:[#allocation12 + $0x4] ss:$16 sps:$4 sm:$0xff]  }
 0xbb8   : > { %v3803_v44 = vpop.eup %3802 }
 0xbb9   : > { %v3805_v47 = vpop.eup %3804  ;;  %v1809_v48 = vmul.f32 %v3803_v44, %v3797_v29  ;;  %v3661_v44 = vld [vmem:[#allocation12 + $0x8] ss:$16 sps:$4 sm:$0xff]  }
 0xbba   : > { %v1808_v25 = vmul.f32 %v3805_v47, %v3795_v58  ;;  %v3666_v47 = vld [vmem:[#allocation12 + $0x24] ss:$16 sps:$4 sm:$0xff]  }
 0xbbc   : > { %v1812_v49 = vpack.c.bf16 %v1809_v48, %v1808_v25  ;;  %v3669_v48 = vld [vmem:[#allocation12 + $0x2c] ss:$16 sps:$4 sm:$0xff]   ;;  %v3664_v25 = vld [vmem:[#allocation12 + $0x20] ss:$16 sps:$4 sm:$0xff]  }
 0xbbe   : > { %v1800_v46 = vpop.xlane.xlu0 %1799 }
 0xbbf   : > { %3806 = vrcp.f32 %v1800_v46  ;;  %v3663_v46 = vld [vmem:[#allocation12 + $0xc] ss:$16 sps:$4 sm:$0xff]  }
 0xbc2   : > { %v1803_v27 = vpop.xlane.xlu1 %1802  ;;  %v1815_v28 = vpop.permute.xlu0 %1814 }
 0xbc3   : > { %3808 = vrcp.f32 %v1803_v27  ;;  %3464 = vmatpush3.bf16.msra.mxu1 %v1815_v28  ;;  %v3667_v27 = vld [vmem:[#allocation12 + $0x28] ss:$16 sps:$4 sm:$0xff]  }
 0xbc4   : > { %3475 = vmatprep.subr.bf16.mxu1 %v3650_v61 }
 0xbc6   : > { %v1862_v50 = vpop.permute.xlu1 %1861  ;;  %3466 = vmatmul.mubr.msk.bf16.vlgmr.msra.gmra.mrb[28].mxu1 %vm1011_vm7, %v1812_v49  ;;  %v1658_v45 = vpop.permute.xlu0 %1657 }
 0xbc7   : > { %3470 = vmatpush3.bf16.msra.mxu0 %v1862_v50  ;;  %3476 = vmatpush3.bf16.msra.mxu1 %v3650_v61 }
 0xbc8   : > { %3477 = vmatprep.subr.bf16.mxu1 %v3651_v62  ;;  %2329 = vmatprep.subr.bf16.mxu0 %v3660_v42 }
 0xbc9   : > { %v3807_v43 = vpop.eup %3806 }
 0xbca   : > { %v1403_v41 = vpop.permute.xlu1 %1402  ;;  %v1810_v52 = vmul.f32 %v3807_v43, %v3799_v35 }
 0xbcb   : > { %1409 = vst.msk [vmem:[#allocation2] sm:$0xff] %vm1408_vm8, %v1403_v41  ;;  %3478 = vmatpush3.bf16.msra.mxu1 %v3651_v62 }
 0xbcc   : > { %1664 = vst.msk [vmem:[#allocation2] sm:$0xff] %vm1663_vm9, %v1658_v45  ;;  %3479 = vmatprep.subr.bf16.mxu1 %v3652_v63 }
 0xbcd   : > { %v3809_v51 = vpop.eup %3808 }
 0xbce   : > { %v1811_v55 = vmul.f32 %v3809_v51, %v3801_v37  ;;  %v1405_v56 = vpop.permute.xlu1 %1404  ;;  %v3885_v37 = vld [vmem:[%s4520_s30 + $0x18] sm:$0xff]  ;;  %s5034_s30 = sld [smem:[#allocation24_spill]] }
 0xbcf   : > { %1410 = vst.msk [vmem:[#allocation2 + $0x8] sm:$0xff] %vm1408_vm8, %v1405_v56  ;;  %3480 = vmatpush3.bf16.msra.mxu1 %v3652_v63 }
 0xbd0   : > { %v1813_v57 = vpack.c.bf16 %v1811_v55, %v1810_v52  ;;  %3481 = vmatprep.subr.bf16.mxu1 %v3653_v0 }
 0xbd2   : > { %v1660_v59 = vpop.permute.xlu1 %1659  ;;  %3472 = vmatmul.mubr.msk.bf16.vlgmr.msra.gmra.mrb[40].mxu0 %vm1011_vm7, %v1813_v57 }
 0xbd3   : > { %1665 = vst.msk [vmem:[#allocation2 + $0x8] sm:$0xff] %vm1663_vm9, %v1660_v59  ;;  %2361 = vmatprep.mubr.bf16.mxu0 %v4179_v39  ;;  %3482 = vmatpush3.bf16.msra.mxu1 %v3653_v0 }
 0xbd4   : > { %3483 = vmatprep.subr.bf16.mxu1 %v3654_v1  ;;  %2330 = vmatpush1.bf16.msra.mxu0 %v3658_v40 }
 0xbd5   : > { %2331 = vmatprep.subr.bf16.mxu0 %v3666_v47 }
 0xbd7   : > { %3484 = vmatpush3.bf16.msra.mxu1 %v3654_v1  ;;  %v3672_v1 = vld [vmem:[#allocation12 + $0x44] ss:$16 sps:$4 sm:$0xff]  }
 0xbd8   : > { %3485 = vmatprep.subr.bf16.mxu1 %v3655_v2  ;;  %2332 = vmatpush1.bf16.msra.mxu0 %v3664_v25  ;;  %v3158_v25 = vld [vmem:[%s5033_s17] ss:$0 sm:$0xff] }
 0xbd9   : > { %2333 = vmatprep.subr.bf16.mxu0 %v3672_v1 }
 0xbdb   : > { %3486 = vmatpush3.bf16.msra.mxu1 %v3655_v2  ;;  %v3675_v2 = vld [vmem:[#allocation12 + $0x4c] ss:$16 sps:$4 sm:$0xff]  }
 0xbdc   : > { %3487 = vmatprep.subr.bf16.mxu1 %v3656_v7 }
 0xbdf   : > { %3488 = vmatpush3.bf16.msra.mxu1 %v3656_v7  ;;  %v3679_v7 = vld [vmem:[#allocation12 + $0x68] ss:$16 sps:$4 sm:$0xff]  }
 0xbe0   : > { %3489 = vmatprep.subr.bf16.mxu1 %v3657_v8 }
 0xbe3   : > { %3490 = vmatpush3.bf16.msra.mxu1 %v3657_v8  ;;  %v3684_v8 = vld [vmem:[#allocation12 + $0x84] ss:$16 sps:$4 sm:$0xff]  }
 0xbe4   : > { %2382 = vmatprep.subr.bf16.mxu1 %v3663_v46 }
 0xc99   : > { %v1854_v14 = vpop.f32.mrb[28].mxu1 }
 0xc9a   : > { %v3467_v3 = vpop.f32.mrb[29].mxu1 }
 0xc9b   : > { %v1857_v4 = vpop.f32.mrb[30].mxu1  ;;  %v3673_v3 = vld [vmem:[#allocation12 + $0x48] ss:$16 sps:$4 sm:$0xff]  }
 0xc9c   : > { %v1908_v5 = vpack.c.bf16 %v1857_v4, %v1854_v14  ;;  %v3468_v6 = vpop.f32.mrb[31].mxu1  ;;  %v3670_v14 = vld [vmem:[#allocation12 + $0x40] ss:$16 sps:$4 sm:$0xff]   ;;  %v3678_v4 = vld [vmem:[#allocation12 + $0x64] ss:$16 sps:$4 sm:$0xff]  }
 0xc9d   : > { %2334 = vmatpush1.bf16.msra.mxu0 %v3670_v14  ;;  %v3676_v6 = vld [vmem:[#allocation12 + $0x60] ss:$16 sps:$4 sm:$0xff]  }
 0xc9e   : > { %1912 = vrot.lane.b32.xlu0 %v1908_v5, %s4182_s29  ;;  %v3681_v5 = vld [vmem:[#allocation12 + $0x6c] ss:$16 sps:$4 sm:$0xff]   ;;  %2335 = vmatprep.subr.bf16.mxu0 %v3678_v4  ;;  %v3707_v4 = vld [vmem:[#allocation14 + $0xc0] sm:$0xff]  }
 0xca1   : > { %2336 = vmatpush1.bf16.msra.mxu0 %v3676_v6  ;;  %v3711_v6 = vld [vmem:[#allocation14 + $0xc8] sm:$0xff]  }
 0xca2   : > { %2337 = vmatprep.subr.bf16.mxu0 %v3684_v8  ;;  %v3713_v8 = vld [vmem:[#allocation14 + $0x88] sm:$0xff]  }
 0xca5   : > { %v1901_v9 = vpop.f32.mrb[40].mxu0 }
 0xca6   : > { %v3473_v10 = vpop.f32.mrb[41].mxu0 }
 0xca7   : > { %v1904_v11 = vpop.f32.mrb[42].mxu0  ;;  %v3682_v10 = vld [vmem:[#allocation12 + $0x80] ss:$16 sps:$4 sm:$0xff]  }
 0xca8   : > { %v1909_v12 = vpack.c.bf16 %v1904_v11, %v1901_v9  ;;  %v3474_v13 = vpop.f32.mrb[43].mxu0  ;;  %v3687_v9 = vld [vmem:[#allocation12 + $0x8c] ss:$16 sps:$4 sm:$0xff]   ;;  %v3685_v11 = vld [vmem:[#allocation12 + $0x88] ss:$16 sps:$4 sm:$0xff]   ;;  %2338 = vmatpush1.bf16.msra.mxu0 %v3682_v10  ;;  %v3716_v10 = vld [vmem:[#allocation14 + $0x10] sm:$0xff]  }
 0xca9   : > { %v3693_v13 = vld [vmem:[#allocation12 + $0xac] ss:$16 sps:$4 sm:$0xff]  }
 0xcaa   : > { %1914 = vrot.lane.b32.xlu1 %v1909_v12, %s4182_s29  ;;  %v3690_v12 = vld [vmem:[#allocation12 + $0xa4] ss:$16 sps:$4 sm:$0xff]   ;;  %s5035_s29 = sld [smem:[#allocation25_spill]] }
 0xcab   : > { %2339 = vmatprep.subr.bf16.mxu0 %v3690_v12  ;;  %v3718_v12 = vld [vmem:[#allocation14 + $0x58] sm:$0xff]  }
 0xd10   : > { %v1913_v17 = vpop.permute.xlu0 %1912 }
 0xd11   : > { %1919 = vst.msk [vmem:[#allocation2] sm:$0xff] %vm1918_vm10, %v1913_v17  ;;  %v3688_v17 = vld [vmem:[#allocation12 + $0xa0] ss:$16 sps:$4 sm:$0xff]  }
 0xd12   : > { %2340 = vmatpush1.bf16.msra.mxu0 %v3688_v17  ;;  %v3720_v17 = vld [vmem:[#allocation14 + $0x18] sm:$0xff]  }
 0xd18   : > { %v1921_v19 = vld [vmem:[#allocation2] sm:$0xff] }
 0xd19   : > { %3491 = vmatprep.mubr.bf16.mxu1 %v1921_v19  ;;  %v3691_v19 = vld [vmem:[#allocation12 + $0xa8] ss:$16 sps:$4 sm:$0xff]  }
 0xd1c   : > { %v1915_v34 = vpop.permute.xlu1 %1914 }
 0xd1d   : > { %1920 = vst.msk [vmem:[#allocation2 + $0x8] sm:$0xff] %vm1918_vm10, %v1915_v34  ;;  %v3696_v34 = vld [vmem:[#allocation12 + $0xc4] ss:$16 sps:$4 sm:$0xff]  }
 0xd1e   : > { %2341 = vmatprep.subr.bf16.mxu0 %v3696_v34  ;;  %v3722_v34 = vld [vmem:[#allocation14 + $0x60] sm:$0xff]  }
 0xd24   : > { %v1922_v21 = vld [vmem:[#allocation2 + $0x8] sm:$0xff] }
 0xd25   : > { %3492 = vmatmul.mubr.bf16.vlgmr.msra.gmra.mrb[32].mxu1 %v1922_v21  ;;  %v3699_v21 = vld [vmem:[#allocation12 + $0xcc] ss:$16 sps:$4 sm:$0xff]  }
 0xd26   : > { %2414 = vmatprep.mubr.bf16.mxu1 %v4179_v39  ;;  %2383 = vmatpush1.bf16.msra.mxu1 %v3661_v44 }
 0xd27   : > { %2384 = vmatprep.subr.bf16.mxu1 %v3669_v48 }
 0xd2a   : > { %2385 = vmatpush1.bf16.msra.mxu1 %v3667_v27 }
 0xd2b   : > { %2386 = vmatprep.subr.bf16.mxu1 %v3675_v2 }
 0xd2e   : > { %2387 = vmatpush1.bf16.msra.mxu1 %v3673_v3  ;;  %v3706_v3 = vld [vmem:[#allocation14 + $0x40] sm:$0xff]  }
 0xd2f   : > { %2388 = vmatprep.subr.bf16.mxu1 %v3681_v5  ;;  %v3709_v5 = vld [vmem:[#allocation14 + $0x80] sm:$0xff]  }
 0xd32   : > { %2389 = vmatpush1.bf16.msra.mxu1 %v3679_v7  ;;  %v3712_v7 = vld [vmem:[#allocation14 + $0x8] sm:$0xff]  }
 0xd33   : > { %2390 = vmatprep.subr.bf16.mxu1 %v3687_v9  ;;  %v3715_v9 = vld [vmem:[#allocation14 + $0xd0] sm:$0xff]  }
 0xd36   : > { %2391 = vmatpush1.bf16.msra.mxu1 %v3685_v11  ;;  %v3717_v11 = vld [vmem:[#allocation14 + $0x90] sm:$0xff]  }
 0xd37   : > { %2392 = vmatprep.subr.bf16.mxu1 %v3693_v13  ;;  %v3719_v13 = vld [vmem:[#allocation14 + $0xd8] sm:$0xff]  }
 0xd3a   : > { %2393 = vmatpush1.bf16.msra.mxu1 %v3691_v19  ;;  %v3721_v19 = vld [vmem:[#allocation14 + $0x98] sm:$0xff]  }
 0xd3b   : > { %2394 = vmatprep.subr.bf16.mxu1 %v3699_v21  ;;  %v3723_v21 = vld [vmem:[#allocation14 + $0xe0] sm:$0xff]  }
 0xdf8   : > { %v3493_v23 = vpop.f32.mrb[32].mxu1 }
 0xdf9   : > { %v2028_v24 = vpop.f32.mrb[33].mxu1  ;;  %v2037_v60 = vadd.f32 %v3493_v23, %v3149_v22  ;;  %v3697_v23 = vld [vmem:[#allocation12 + $0xc8] ss:$16 sps:$4 sm:$0xff]  }
 0xdfa   : > { %v2029_v58 = vadd.f32 %v3149_v22, %v2028_v24  ;;  %v3494_v26 = vpop.f32.mrb[34].mxu1  ;;  %v3702_v24 = vld [vmem:[#allocation12 + $0xe4] ss:$16 sps:$4 sm:$0xff]   ;;  %2395 = vmatpush1.bf16.msra.mxu1 %v3697_v23 }
 0xdfb   : > { %v2031_v29 = vpop.f32.mrb[35].mxu1  ;;  %v4799_v35 = vadd.f32 %v3884_v33, %v2037_v60  ;;  %v2040_v36 = vadd.f32 %v3494_v26, %v3149_v22  ;;  %v3700_v26 = vld [vmem:[#allocation12 + $0xe0] ss:$16 sps:$4 sm:$0xff]  }
 0xdfc   : > { %v4792_v32 = vadd.f32 %v3882_v30, %v2029_v58  ;;  %v2032_v31 = vadd.f32 %v3149_v22, %v2031_v29  ;;  %v3694_v22 = vld [vmem:[#allocation12 + $0xc0] ss:$16 sps:$4 sm:$0xff]   ;;  %v3705_v58 = vld [vmem:[#allocation12 + $0xec] ss:$16 sps:$4 sm:$0xff]   ;;  %v3703_v29 = vld [vmem:[#allocation12 + $0xe8] ss:$16 sps:$4 sm:$0xff]  }
 0xdfd   : > { %v4804_v38 = vadd.f32 %v3885_v37, %v2040_v36  ;;  %2342 = vmatpush1.bf16.msra.mxu0 %v3694_v22  ;;  %2396 = vmatprep.subr.bf16.mxu1 %v3705_v58  ;;  %v3724_v22 = vld [vmem:[#allocation14 + $0x20] sm:$0xff]   ;;  %v3727_v58 = vld [vmem:[#allocation14 + $0xe8] sm:$0xff]  }
 0xdfe   : > { %v4795_v54 = vadd.f32 %v3883_v53, %v2032_v31  ;;  %2049 = vadd.xlane.f32.xlu0 %v4792_v32  ;;  %2343 = vmatprep.subr.bf16.mxu0 %v3702_v24  ;;  %v3725_v23 = vld [vmem:[#allocation14 + $0xa0] sm:$0xff]   ;;  %v3726_v24 = vld [vmem:[#allocation14 + $0x68] sm:$0xff]  }
 0xdff   : > { %2397 = vmatpush1.bf16.msra.mxu1 %v3703_v29  ;;  %v3729_v29 = vld [vmem:[#allocation14 + $0xa8] sm:$0xff]  }
 0xe00   : > { %2051 = vadd.xlane.f32.xlu1 %v4795_v54  ;;  %3331 = vmatprep.subr.bf16.mxu1 %v3707_v4 }
 0xe01   : > { %2344 = vmatpush1.bf16.msra.mxu0 %v3700_v26  ;;  %v3728_v26 = vld [vmem:[#allocation14 + $0x28] sm:$0xff]  }
 0xe02   : > { %2053 = vadd.xlane.f32.xlu0 %v4799_v35  ;;  %3303 = vmatprep.subr.bf16.mxu0 %v3706_v3 }
 0xe06   : > { %2055 = vadd.xlane.f32.xlu0 %v4804_v38 }
 0xe8b   : > { %v2050_v28 = vpop.xlane.xlu0 %2049 }
 0xe8c   : > { %v2057_v49 = vmul.f32 0.0078125, %v2050_v28 }
 0xe8d   : > { %v2052_v50 = vpop.xlane.xlu1 %2051 }
 0xe8e   : > { %v4808_v41 = vsub.f32 %v4792_v32, %v2057_v49  ;;  %v2058_v43 = vmul.f32 0.0078125, %v2052_v50 }
 0xe8f   : > { %v2054_v45 = vpop.xlane.xlu0 %2053 }
 0xe90   : > { %v4811_v51 = vsub.f32 %v4795_v54, %v2058_v43  ;;  %v2059_v52 = vmul.f32 0.0078125, %v2054_v45  ;;  %v2065_v55 = vmul.f32 %v4808_v41, %v4808_v41  ;;  %v3159_v45 = vld [vmem:[%s5034_s30] ss:$0 sm:$0xff]  ;;  %s2941_s30 = scalar_lea.sflag [#allocation5], %s4514_s1 }
 0xe92   : > { %v4816_v56 = vsub.f32 %v4799_v35, %v2059_v52  ;;  %2069 = vadd.xlane.f32.xlu0 %v2065_v55  ;;  %v2066_v57 = vmul.f32 %v4811_v51, %v4811_v51 }
 0xe93   : > { %v2056_v59 = vpop.xlane.xlu0 %2055 }
 0xe94   : > { %v2060_v61 = vmul.f32 0.0078125, %v2056_v59  ;;  %2071 = vadd.xlane.f32.xlu1 %v2066_v57  ;;  %v2067_v62 = vmul.f32 %v4816_v56, %v4816_v56 }
 0xe96   : > { %v4823_v63 = vsub.f32 %v4804_v38, %v2060_v61  ;;  %2073 = vadd.xlane.f32.xlu0 %v2067_v62 }
 0xe98   : > { %v2068_v0 = vmul.f32 %v4823_v63, %v4823_v63 }
 0xe9a   : > { %2075 = vadd.xlane.f32.xlu1 %v2068_v0 }
 0xf1f   : > { %v2070_v60 = vpop.xlane.xlu0 %2069 }
 0xf20   : > { %v2077_v30 = vmul.f32 0.0078125, %v2070_v60  ;;  %v3730_v60 = vld [vmem:[#allocation14 + $0x70] sm:$0xff]  }
 0xf21   : > { %v2072_v31 = vpop.xlane.xlu1 %2071 }
 0xf22   : > { %v2081_v53 = vadd.f32 1e-05, %v2077_v30  ;;  %v2078_v33 = vmul.f32 0.0078125, %v2072_v31  ;;  %v3731_v30 = vld [vmem:[#allocation14 + $0xf0] sm:$0xff]  }
 0xf23   : > { %v2074_v36 = vpop.xlane.xlu0 %2073  ;;  %v3732_v31 = vld [vmem:[#allocation14 + $0x30] sm:$0xff]  }
 0xf24   : > { %3810 = vrsqrt.f32 %v2081_v53  ;;  %v2082_v37 = vadd.f32 1e-05, %v2078_v33  ;;  %v2079_v40 = vmul.f32 0.0078125, %v2074_v36  ;;  %v3733_v53 = vld [vmem:[#allocation14 + $0xb0] sm:$0xff]   ;;  %v3734_v33 = vld [vmem:[#allocation14 + $0x78] sm:$0xff]  }
 0xf25   : > { %v3735_v36 = vld [vmem:[#allocation14 + $0xf8] sm:$0xff]  }
 0xf26   : > { %3812 = vrsqrt.f32 %v2082_v37  ;;  %v2083_v42 = vadd.f32 1e-05, %v2079_v40  ;;  %v3736_v37 = vld [vmem:[#allocation14 + $0x38] sm:$0xff]  }
 0xf27   : > { %v2076_v44 = vpop.xlane.xlu1 %2075  ;;  %v3737_v40 = vld [vmem:[#allocation14 + $0xb8] sm:$0xff]  }
 0xf28   : > { %3814 = vrsqrt.f32 %v2083_v42  ;;  %v2080_v46 = vmul.f32 0.0078125, %v2076_v44  ;;  %v2147_v42 = vld [vmem:[%s5035_s29] sm:$0xf]  ;;  %v2163_v44 = vsub.s32 3, %v4570_v15  ;;  %s4090_s29 = scalar_lea.vmem %s4089_s24, 1024 }
 0xf29   : > { %p4092_p3 = scmp.lt.s32.totalorder %s4090_s29, %s4084_s15 }
 0xf2a   : > { %v2084_v47 = vadd.f32 1e-05, %v2080_v46  ;;  %v2152_v46 = vrot.slane %v2147_v42, %v655_v16 }
 0xf2b   : > { %p4093_p2 = por %p4092_p3, %p4091_p1 }
 0xf2c   : > { %3816 = vrsqrt.f32 %v2084_v47  ;;  %v4847_v47 = vrot.slane %v2147_v42, %v663_v20 }
 0xf2d   : > { %p4094_p8 = pnand %p4093_p2, %p4087_p13 }
 0xf2e   : > { %v3811_v48 = vpop.eup %3810 }
 0xf2f   : > { %v2089_v27 = vmul.f32 %v3811_v48, %v4808_v41  ;;  %v4851_v48 = vrot.slane %v2147_v42, %v659_v18 }
 0xf30   : > { %v3813_v28 = vpop.eup %3812 }
 0xf31   : > { %v2090_v49 = vmul.f32 %v3813_v28, %v4811_v51  ;;  %v2099_v50 = vmul.f32 %v3158_v25, %v2089_v27 }
 0xf32   : > { %v3815_v43 = vpop.eup %3814 }
 0xf33   : > { %v2100_v52 = vmul.f32 %v3158_v25, %v2090_v49  ;;  %v2109_v55 = vadd.f32 %v3159_v45, %v2099_v50  ;;  %v2091_v59 = vmul.f32 %v3815_v43, %v4816_v56  ;;  %v3708_v56 = vld [vmem:[#allocation14] sm:$0xff]  }
 0xf35   : > { %v2110_v57 = vadd.f32 %v3159_v45, %v2100_v52  ;;  %v2101_v41 = vmul.f32 %v3158_v25, %v2091_v59 }
 0xf36   : > { %v3817_v61 = vpop.eup %3816 }
 0xf37   : > { %v2113_v62 = vpack.c.bf16 %v2110_v57, %v2109_v55  ;;  %v2092_v0 = vmul.f32 %v3817_v61, %v4823_v63  ;;  %v2111_v2 = vadd.f32 %v3159_v45, %v2101_v41  ;;  %v3710_v63 = vld [vmem:[#allocation14 + $0x48] sm:$0xff]  }
 0xf39   : > { %2362 = vmatmul.mubr.bf16.vlgmr.msra.gmra.mrb[44].mxu0 %v2113_v62  ;;  %2415 = vmatmul.mubr.bf16.vlgmr.msra.gmra.mrb[36].mxu1 %v2113_v62  ;;  %v2102_v1 = vmul.f32 %v3158_v25, %v2092_v0  ;;  %v4853_v25 = vrot.slane %v2147_v42, %v2163_v44 }
 0xf3a   : > { %2371 = vmatprep.mubr.bf16.mxu0 %v4179_v39  ;;  %2424 = vmatprep.mubr.bf16.mxu1 %v4179_v39  ;;  %v3714_v39 = vld [vmem:[#allocation14 + $0x50] sm:$0xff]  }
 0xf3b   : > { %v2112_v51 = vadd.f32 %v3159_v45, %v2102_v1  ;;  %3304 = vmatpush3.bf16.msra.mxu0 %v3708_v56  ;;  %3332 = vmatpush3.bf16.msra.mxu1 %v3709_v5 }
 0xf3c   : > { %3305 = vmatprep.subr.bf16.mxu0 %v3710_v63  ;;  %3333 = vmatprep.subr.bf16.mxu1 %v3711_v6 }
 0xf3d   : > { %v2114_v14 = vpack.c.bf16 %v2112_v51, %v2111_v2 }
 0xf3f   : > { %3306 = vmatpush3.bf16.msra.mxu0 %v3712_v7  ;;  %3334 = vmatpush3.bf16.msra.mxu1 %v3713_v8 }
 0xf40   : > { %3307 = vmatprep.subr.bf16.mxu0 %v3714_v39  ;;  %3335 = vmatprep.subr.bf16.mxu1 %v3715_v9 }
 0xf41   : > { %2372 = vmatmul.mubr.bf16.gmra.mrb[48].mxu0 %v2114_v14  ;;  %2425 = vmatmul.mubr.bf16.gmra.mrb[40].mxu1 %v2114_v14 }
 0xf43   : > { %3308 = vmatpush3.bf16.msra.mxu0 %v3716_v10  ;;  %3336 = vmatpush3.bf16.msra.mxu1 %v3717_v11 }
 0xf44   : > { %3309 = vmatprep.subr.bf16.mxu0 %v3718_v12  ;;  %3337 = vmatprep.subr.bf16.mxu1 %v3719_v13 }
 0xf47   : > { %3310 = vmatpush3.bf16.msra.mxu0 %v3720_v17  ;;  %3338 = vmatpush3.bf16.msra.mxu1 %v3721_v19 }
 0xf48   : > { %3311 = vmatprep.subr.bf16.mxu0 %v3722_v34  ;;  %3339 = vmatprep.subr.bf16.mxu1 %v3723_v21 }
 0xf4b   : > { %3312 = vmatpush3.bf16.msra.mxu0 %v3724_v22  ;;  %3340 = vmatpush3.bf16.msra.mxu1 %v3725_v23 }
 0xf4c   : > { %3313 = vmatprep.subr.bf16.mxu0 %v3726_v24  ;;  %3341 = vmatprep.subr.bf16.mxu1 %v3727_v58 }
 0xf4f   : > { %3314 = vmatpush3.bf16.msra.mxu0 %v3728_v26  ;;  %3342 = vmatpush3.bf16.msra.mxu1 %v3729_v29 }
 0xf50   : > { %3315 = vmatprep.subr.bf16.mxu0 %v3730_v60  ;;  %3343 = vmatprep.subr.bf16.mxu1 %v3731_v30 }
 0xf53   : > { %3316 = vmatpush3.bf16.msra.mxu0 %v3732_v31  ;;  %3344 = vmatpush3.bf16.msra.mxu1 %v3733_v53 }
 0xf54   : > { %3317 = vmatprep.subr.bf16.mxu0 %v3734_v33  ;;  %3345 = vmatprep.subr.bf16.mxu1 %v3735_v36 }
 0xf57   : > { %3318 = vmatpush3.bf16.msra.mxu0 %v3736_v37  ;;  %3346 = vmatpush3.bf16.msra.mxu1 %v3737_v40 }
0x100c   : > { %v2363_v27 = vpop.f32.mrb[44].mxu0  ;;  %v2416_v28 = vpop.f32.mrb[36].mxu1 }
0x100d   : > { %v4855_v49 = vadd.f32 %v2363_v27, %v2152_v46  ;;  %v4858_v50 = vadd.f32 %v2416_v28, %v4847_v47  ;;  %v2365_v43 = vpop.f32.mrb[45].mxu0  ;;  %v2418_v45 = vpop.f32.mrb[37].mxu1 }
0x100e   : > { %v4861_v16 = vadd.f32 %v2365_v43, %v4851_v48  ;;  %v4864_v20 = vadd.f32 %v2418_v45, %v4853_v25  ;;  %v2367_v15 = vpop.f32.mrb[46].mxu0  ;;  %v2420_v18 = vpop.f32.mrb[38].mxu1 }
0x100f   : > { %v3192_v52 = vmul.f32 -1.702, %v4855_v49  ;;  %v3194_v55 = vmul.f32 -1.702, %v4858_v50  ;;  %v4868_v57 = vadd.f32 %v2367_v15, %v2152_v46  ;;  %v4871_v59 = vadd.f32 %v2420_v18, %v4847_v47  ;;  %v2369_v61 = vpop.f32.mrb[47].mxu0  ;;  %v2422_v62 = vpop.f32.mrb[39].mxu1 }
0x1010   : > { %v3193_v0 = vmul.f32 -1.702, %v4861_v16  ;;  %v3195_v41 = vmul.f32 -1.702, %v4864_v20  ;;  %v4876_v1 = vadd.f32 %v2369_v61, %v4851_v48  ;;  %v4879_v51 = vadd.f32 %v2422_v62, %v4853_v25 }
0x1011   : > { %v2467_v2 = vmul.f32 1.442695, %v3192_v52  ;;  %v2471_v14 = vmul.f32 1.442695, %v3194_v55  ;;  %v3196_v3 = vmul.f32 -1.702, %v4868_v57 }
0x1012   : > { %v2469_v4 = vmul.f32 1.442695, %v3193_v0  ;;  %v2473_v56 = vmul.f32 1.442695, %v3195_v41  ;;  %v3198_v5 = vmul.f32 -1.702, %v4871_v59 }
0x1013   : > { %3818 = vpow2.f32 %v2467_v2  ;;  %v2475_v63 = vmul.f32 1.442695, %v3196_v3  ;;  %v3197_v6 = vmul.f32 -1.702, %v4876_v1  ;;  %v3199_v7 = vmul.f32 -1.702, %v4879_v51 }
0x1014   : > { %3820 = vpow2.f32 %v2471_v14  ;;  %v2479_v8 = vmul.f32 1.442695, %v3198_v5  ;;  %v2373_v39 = vpop.f32.mrb[48].mxu0  ;;  %v2426_v9 = vpop.f32.mrb[40].mxu1 }
0x1015   : > { %3822 = vpow2.f32 %v2469_v4  ;;  %v2477_v10 = vmul.f32 1.442695, %v3197_v6  ;;  %v4885_v11 = vadd.f32 %v2373_v39, %v2152_v46  ;;  %v2375_v12 = vpop.f32.mrb[49].mxu0  ;;  %v2428_v13 = vpop.f32.mrb[41].mxu1  ;;  %v2481_v17 = vmul.f32 1.442695, %v3199_v7 }
0x1016   : > { %3824 = vpow2.f32 %v2473_v56  ;;  %v4888_v19 = vadd.f32 %v2426_v9, %v4847_v47  ;;  %v4891_v34 = vadd.f32 %v2375_v12, %v4851_v48  ;;  %v2377_v21 = vpop.f32.mrb[50].mxu0  ;;  %v2430_v22 = vpop.f32.mrb[42].mxu1  ;;  %v4900_v37 = vadd.f32 %v2428_v13, %v4853_v25 }
0x1017   : > { %3826 = vpow2.f32 %v2475_v63  ;;  %v3200_v23 = vmul.f32 -1.702, %v4885_v11  ;;  %v4894_v24 = vadd.f32 %v2377_v21, %v2152_v46  ;;  %v2379_v58 = vpop.f32.mrb[51].mxu0  ;;  %v2432_v26 = vpop.f32.mrb[43].mxu1  ;;  %v4904_v52 = vadd.f32 %v2430_v22, %v4847_v47 }
0x1018   : > { %3828 = vpow2.f32 %v2479_v8  ;;  %v3202_v29 = vmul.f32 -1.702, %v4888_v19  ;;  %v3201_v60 = vmul.f32 -1.702, %v4891_v34  ;;  %v3203_v45 = vmul.f32 -1.702, %v4900_v37 }
0x1019   : > { %3830 = vpow2.f32 %v2477_v10  ;;  %v2483_v30 = vmul.f32 1.442695, %v3200_v23  ;;  %v3204_v31 = vmul.f32 -1.702, %v4894_v24  ;;  %v4907_v62 = vadd.f32 %v2379_v58, %v4851_v48 }
0x101a   : > { %3832 = vpow2.f32 %v2481_v17  ;;  %v2487_v53 = vmul.f32 1.442695, %v3202_v29  ;;  %v2485_v33 = vmul.f32 1.442695, %v3201_v60  ;;  %v4910_v2 = vadd.f32 %v2432_v26, %v4853_v25 }
0x101b   : > { %3834 = vpow2.f32 %v2483_v30  ;;  %v2491_v36 = vmul.f32 1.442695, %v3204_v31  ;;  %v2489_v4 = vmul.f32 1.442695, %v3203_v45  ;;  %v3206_v5 = vmul.f32 -1.702, %v4904_v52 }
0x101c   : > { %3836 = vpow2.f32 %v2487_v53  ;;  %v3205_v48 = vmul.f32 -1.702, %v4907_v62  ;;  %v3207_v7 = vmul.f32 -1.702, %v4910_v2 }
0x101d   : > { %v3819_v40 = vpop.eup %3818  ;;  %3838 = vpow2.f32 %v2485_v33  ;;  %v2495_v39 = vmul.f32 1.442695, %v3206_v5 }
0x101e   : > { %v3821_v42 = vpop.eup %3820  ;;  %v2499_v44 = vadd.f32 1.0, %v3819_v40  ;;  %3840 = vpow2.f32 %v2491_v36  ;;  %v2493_v12 = vmul.f32 1.442695, %v3205_v48  ;;  %v2497_v17 = vmul.f32 1.442695, %v3207_v7 }
0x101f   : > { %v3823_v46 = vpop.eup %3822  ;;  %v2501_v27 = vadd.f32 1.0, %v3821_v42 }
0x1020   : > { %v3825_v28 = vpop.eup %3824  ;;  %3842 = vrcp.f32 %v2499_v44  ;;  %v2500_v43 = vadd.f32 1.0, %v3823_v46 }
0x1021   : > { %v3827_v15 = vpop.eup %3826  ;;  %3844 = vrcp.f32 %v2501_v27  ;;  %v2502_v18 = vadd.f32 1.0, %v3825_v28 }
0x1022   : > { %v3829_v55 = vpop.eup %3828  ;;  %3846 = vrcp.f32 %v2500_v43  ;;  %v2503_v61 = vadd.f32 1.0, %v3827_v15 }
0x1023   : > { %v3831_v0 = vpop.eup %3830  ;;  %3848 = vrcp.f32 %v2502_v18  ;;  %v2505_v41 = vadd.f32 1.0, %v3829_v55 }
0x1024   : > { %v3833_v14 = vpop.eup %3832  ;;  %3850 = vrcp.f32 %v2503_v61  ;;  %v2504_v3 = vadd.f32 1.0, %v3831_v0 }
0x1025   : > { %v3835_v56 = vpop.eup %3834  ;;  %3852 = vrcp.f32 %v2505_v41  ;;  %v2506_v47 = vadd.f32 1.0, %v3833_v14 }
0x1026   : > { %3854 = vrcp.f32 %v2504_v3  ;;  %v2507_v63 = vadd.f32 1.0, %v3835_v56  ;;  %v3837_v6 = vpop.eup %3836 }
0x1027   : > { %3856 = vrcp.f32 %v2506_v47  ;;  %v3839_v8 = vpop.eup %3838  ;;  %v2509_v27 = vadd.f32 1.0, %v3837_v6 }
0x1028   : > { %3858 = vpow2.f32 %v2489_v4  ;;  %v3841_v25 = vpop.eup %3840  ;;  %v2508_v43 = vadd.f32 1.0, %v3839_v8 }
0x1029   : > { %3860 = vrcp.f32 %v2507_v63  ;;  %v2511_v10 = vadd.f32 1.0, %v3841_v25 }
0x102a   : > { %v3843_v9 = vpop.eup %3842 }
0x102b   : > { %v3845_v13 = vpop.eup %3844  ;;  %3862 = vrcp.f32 %v2511_v10  ;;  %v2547_v26 = vmul.f32 %v3843_v9, %v4855_v49 }
0x102c   : > { %v3847_v21 = vpop.eup %3846  ;;  %3864 = vpow2.f32 %v2495_v39  ;;  %v2549_v30 = vmul.f32 %v3845_v13, %v4858_v50 }
0x102d   : > { %v3849_v22 = vpop.eup %3848  ;;  %3866 = vpow2.f32 %v2493_v12  ;;  %v2548_v33 = vmul.f32 %v3847_v21, %v4861_v16 }
0x102e   : > { %v3851_v23 = vpop.eup %3850  ;;  %3868 = vpow2.f32 %v2497_v17  ;;  %v2550_v44 = vmul.f32 %v3849_v22, %v4864_v20 }
0x102f   : > { %v3853_v58 = vpop.eup %3852  ;;  %v2551_v29 = vmul.f32 %v3851_v23, %v4868_v57  ;;  %3870 = vrcp.f32 %v2509_v27 }
0x1030   : > { %v3855_v60 = vpop.eup %3854  ;;  %v2553_v31 = vmul.f32 %v3853_v58, %v4871_v59  ;;  %3872 = vrcp.f32 %v2508_v43 }
0x1031   : > { %v3857_v53 = vpop.eup %3856  ;;  %v2563_v36 = vpack.c.bf16 %v2551_v29, %v2547_v26  ;;  %v2552_v40 = vmul.f32 %v3855_v60, %v4876_v1 }
0x1032   : > { %v3859_v42 = vpop.eup %3858  ;;  %v2565_v46 = vpack.c.bf16 %v2553_v31, %v2549_v30  ;;  %v2554_v49 = vmul.f32 %v3857_v53, %v4879_v51 }
0x1033   : > { %v2564_v57 = vpack.c.bf16 %v2552_v40, %v2548_v33  ;;  %v3861_v28 = vpop.eup %3860  ;;  %v2510_v50 = vadd.f32 1.0, %v3859_v42 }
0x1034   : > { %v2566_v45 = vpack.c.bf16 %v2554_v49, %v2550_v44  ;;  %v2555_v15 = vmul.f32 %v3861_v28, %v4885_v11 }
0x1035   : > { %2866 = vmatprep.mubr.bf16.mxu0 %v2564_v57  ;;  %v3863_v59 = vpop.eup %3862  ;;  %3874 = vrcp.f32 %v2510_v50 }
0x1036   : > { %2915 = vmatprep.mubr.bf16.mxu1 %v2566_v45  ;;  %2867 = vmatmul.mubr.bf16.vlgmr.msra.gmra.mrb[52].mxu0 %v2563_v36  ;;  %v3865_v16 = vpop.eup %3864  ;;  %v2559_v1 = vmul.f32 %v3863_v59, %v4894_v24 }
0x1037   : > { %2916 = vmatmul.mubr.bf16.vlgmr.msra.gmra.mrb[44].mxu1 %v2565_v46  ;;  %v3867_v20 = vpop.eup %3866  ;;  %v2513_v51 = vadd.f32 1.0, %v3865_v16 }
0x1038   : > { %v3869_v18 = vpop.eup %3868  ;;  %v2512_v55 = vadd.f32 1.0, %v3867_v20  ;;  %v2567_v61 = vpack.c.bf16 %v2559_v1, %v2555_v15 }
0x1039   : > { %3876 = vrcp.f32 %v2513_v51  ;;  %v2514_v0 = vadd.f32 1.0, %v3869_v18  ;;  %v3871_v41 = vpop.eup %3870 }
0x103a   : > { %3878 = vrcp.f32 %v2512_v55  ;;  %v3873_v14 = vpop.eup %3872  ;;  %v2557_v56 = vmul.f32 %v3871_v41, %v4888_v19 }
0x103b   : > { %3880 = vrcp.f32 %v2514_v0  ;;  %v2556_v5 = vmul.f32 %v3873_v14, %v4891_v34 }
0x103f   : > { %v3875_v3 = vpop.eup %3874 }
0x1040   : > { %v2558_v48 = vmul.f32 %v3875_v3, %v4900_v37 }
0x1043   : > { %v3877_v4 = vpop.eup %3876 }
0x1044   : > { %v3879_v11 = vpop.eup %3878  ;;  %v2561_v24 = vmul.f32 %v3877_v4, %v4904_v52  ;;  %v3208_v52 = vld [vmem:[%s5036_s16] ss:$0 sm:$0xff] }
0x1045   : > { %v3881_v47 = vpop.eup %3880  ;;  %v2560_v63 = vmul.f32 %v3879_v11, %v4907_v62 }
0x1046   : > { %v2562_v6 = vmul.f32 %v3881_v47, %v4910_v2  ;;  %v2569_v7 = vpack.c.bf16 %v2561_v24, %v2557_v56 }
0x1047   : > { %v2568_v8 = vpack.c.bf16 %v2560_v63, %v2556_v5 }
0x1048   : > { %v2570_v25 = vpack.c.bf16 %v2562_v6, %v2558_v48 }
0x1049   : > { %2874 = vmatprep.mubr.bf16.mxu0 %v2568_v8 }
0x104a   : > { %2923 = vmatprep.mubr.bf16.mxu1 %v2570_v25  ;;  %2875 = vmatmul.mubr.bf16.gmra.mrb[56].mxu0 %v2567_v61 }
0x104b   : > { %2924 = vmatmul.mubr.bf16.gmra.mrb[48].mxu1 %v2569_v7 }
0x1109   : > { %v3319_v39 = vpop.f32.mrb[52].mxu0 }
0x110a   : > { %v3347_v19 = vpop.f32.mrb[44].mxu1  ;;  %v3320_v34 = vpop.f32.mrb[53].mxu0 }
0x110b   : > { %v3321_v62 = vadd.f32 %v3320_v34, %v3319_v39  ;;  %v3348_v9 = vpop.f32.mrb[45].mxu1  ;;  %v3322_v37 = vpop.f32.mrb[54].mxu0 }
0x110c   : > { %v3349_v10 = vadd.f32 %v3348_v9, %v3347_v19  ;;  %v3350_v2 = vpop.f32.mrb[46].mxu1  ;;  %v3323_v12 = vpop.f32.mrb[55].mxu0 }
0x110d   : > { %v2869_v13 = vadd.f32 %v3321_v62, %v3208_v52  ;;  %v3324_v17 = vadd.f32 %v3323_v12, %v3322_v37  ;;  %v3351_v21 = vpop.f32.mrb[47].mxu1 }
0x110e   : > { %v3352_v22 = vadd.f32 %v3351_v21, %v3350_v2 }
0x110f   : > { %v2918_v23 = vadd.f32 %v3349_v10, %v2869_v13  ;;  %v2872_v58 = vadd.f32 %v3324_v17, %v3208_v52 }
0x1111   : > { %v2932_v26 = vadd.f32 %v2918_v23, %v4792_v32  ;;  %v2921_v29 = vadd.f32 %v3352_v22, %v2872_v58 }
0x1113   : > { %2936 = vst [vmem:[%s542_s23] sm:$0xff] %v2932_v26  ;;  %v2933_v60 = vadd.f32 %v2921_v29, %v4795_v54 }
0x1115   : > { %2937 = vst [vmem:[%s542_s23 + $0x8] sm:$0xff] %v2933_v60 }
0x111d   : > { %v3325_v30 = vpop.f32.mrb[56].mxu0 }
0x111e   : > { %v3353_v31 = vpop.f32.mrb[48].mxu1  ;;  %v3326_v53 = vpop.f32.mrb[57].mxu0 }
0x111f   : > { %v3327_v33 = vadd.f32 %v3326_v53, %v3325_v30  ;;  %v3354_v36 = vpop.f32.mrb[49].mxu1  ;;  %v3328_v40 = vpop.f32.mrb[58].mxu0 }
0x1120   : > { %v3355_v42 = vadd.f32 %v3354_v36, %v3353_v31  ;;  %v3356_v44 = vpop.f32.mrb[50].mxu1  ;;  %v3329_v46 = vpop.f32.mrb[59].mxu0 }
0x1121   : > { %v2877_v49 = vadd.f32 %v3327_v33, %v3208_v52  ;;  %v3330_v32 = vadd.f32 %v3329_v46, %v3328_v40  ;;  %v3357_v27 = vpop.f32.mrb[51].mxu1 }
0x1122   : > { %v3358_v57 = vadd.f32 %v3357_v27, %v3356_v44 }
0x1123   : > { %v2926_v28 = vadd.f32 %v3355_v42, %v2877_v49  ;;  %v2880_v54 = vadd.f32 %v3330_v32, %v3208_v52 }
0x1125   : > { %v2934_v43 = vadd.f32 %v2926_v28, %v4799_v35  ;;  %v2929_v45 = vadd.f32 %v3358_v57, %v2880_v54 }
0x1127   : > { %2938 = vst [vmem:[%s542_s23 + $0x10] sm:$0xff] %v2934_v43  ;;  %v2935_v50 = vadd.f32 %v2929_v45, %v4804_v38 }
0x1129   : > { %2939 = vst [vmem:[%s542_s23 + $0x18] sm:$0xff] %v2935_v50 }
0x112a   : > { %4097 = shalt.err (!%p4094_p8)
}
0x112b   : > { %s4098_s21 = scalar_lea.hbm %s4945_s13, 512  ;;  %s4102_s23 = scalar_lea.hbm %s5037_s8, 1024 }
0x112c   : > { %p4099_p10 = scmp.ne.s32.totalorder %s4945_s13, %s4098_s21  ;;  %p4103_p0 = scmp.lt.u32.totalorder %s4945_s13, %s5037_s8 }
0x112d   : > { %p4104_p5 = scmp.lt.u32.totalorder %s4102_s23, %s4098_s21  ;;  %p4106_p6 = scmp.lt.u32.totalorder %s4098_s21, %s4945_s13 }
0x112e   : > { %p4100_p11 = pnand %p4099_p10, %p5038_p9 }
0x112f   : > { %p4105_p7 = por %p4104_p5, %p4103_p0 }
0x1130   : > { %p4101_p12 = pneg %p4100_p11 }
0x1131   : > { %p4107_p4 = por %p4106_p6, %p4105_p7 }
0x1133   : > { %p4108_p13 = pnand %p4107_p4, %p4101_p12 }
0x1135   : > { %4111 = shalt.err (!%p4108_p13)
}
0x1136   : > { %s4186_s17 = smov 128   ;;  %s4187_s15 = smov 8  }
0x1137   : > { %3521 = dma.vmem_to_hbm [thread:$0]  (%p5038_p9), %s4939_s12, 512, %s4945_s13, %s2941_s30, %s4186_s17, %s4186_s17, %s4187_s15  }
0x1138 PF: > { %s2970_s14 = sand.u32 1, %s4150_s25   ;;  %p5039_p1 = scmp.ne.s32.totalorder %s5024_s7, 0 }
0x1139   : > { %p5040_p3 = scmp.ge.s32.totalorder %s4162_s28, 2  ;;  %s2971_s24 = scalar_lea.sflag [#allocation5], %s2970_s14 }
0x113b   : > { %p3547_p2 = pnand %p5040_p3, %p5039_p1 }
0x113d   : > { %4145 = dma.done.wait (!%p3547_p2), %s2971_s24, 512  }
0x113e   : > { %4147 = vsyncadd (!%p3547_p2), %s2971_s24, 4294966784  ;;  %p29_p8 = scmp.ge.s32.totalorder %s4435_s18, 4   ;;  %s5041_s25 = smov %s4154_s26 }
0x113f   : > { %s5042_s26 = smov %s4158_s27  ;;  %s5043_s27 = smov %s4446_s10 }
0x1140   : > { %s5044_s28 = smov %s4435_s18  ;;  %31 = sbr.rel (!%p29_p8) target bundleno = 16 (0x10), region = 141 }
0x1147   :  { %2976 = vsyncpa [#allocation4], 1 }
0x1148   :  { %2978 = vsyncpa [#allocation4 + $0x1], 1 }
0x1149   :  { %2979 = vsyncpa [#allocation7], 1 }
0x114a   :  { %2980 = vsyncpa [#allocation10], 1 }
0x114b   :  { %2981 = vsyncpa [#allocation13], 1 }
0x114c   :  { %2982 = vsyncpa [#allocation5], 1 }
0x114d   :  { %2984 = vsyncpa [#allocation5 + $0x1], 1 }

</bundles_post_ra>
